<compile_context>
chip_gen: v6e
topology: v6e:2x2x1
jax: 0.10.0
libtpu: 0.0.40
codegen_flags: <defaults>
</compile_context>

<pallas_src>
import jax
import jax.numpy as jnp
from jax import lax
from jax.experimental import pallas as pl
from jax.experimental.pallas import tpu as pltpu

_EPS = 1e-07           # matches _eps in the PyTorch script
_R = 8.314             # gas constant used in the RK Gibbs free energy
_LANES = 128
_SUBLANES = 8
_MAX_NR_ITERS = 1000   # newton_raphson iteration cap (n_iter < 1000)
_NR_THRESHOLD = 1e-06  # CommonTangent.f_thres
_UNROLL = 8            # Newton steps per while-loop convergence check (1000 % 8 == 0)


def _common_tangent_kernel(x_ref, params_ref, out_ref):
    # x_ref:      VMEM (2, 8, 128) f32 -- [x_alpha, x_beta] for 1024 problems
    # params_ref: SMEM (6,)        f32 -- [Omega0, Omega1, Omega2, Omega3, G0, T]
    # out_ref:    VMEM (2, 8, 128) f32 -- [x_alpha*, x_beta*] (lane-dense)
    shp = (_SUBLANES, _LANES)
    om0 = jnp.full(shp, params_ref[0], jnp.float32)
    om1 = jnp.full(shp, params_ref[1], jnp.float32)
    om2 = jnp.full(shp, params_ref[2], jnp.float32)
    om3 = jnp.full(shp, params_ref[3], jnp.float32)
    g0 = jnp.full(shp, params_ref[4], jnp.float32)
    rt = jnp.full(shp, _R * params_ref[5], jnp.float32)
    # Hoisted Horner constants (loop-invariant vregs).
    c2 = 2.0 * om2
    c3 = 3.0 * om3

    def energy(x, with_deriv):
        """G(x), mu(x)=dG/dx and (optionally) mu'(x), Horner-shared RK polynomial."""
        one_m_x = 1.0 - x
        t = 1.0 - 2.0 * x
        p = x * one_m_x
        logx = jnp.log(x)
        log1mx = jnp.log(one_m_x)
        # P(t)   = Om0 + Om1 t + Om2 t^2 + Om3 t^3          (Horner)
        # P'(t)  = Om1 + 2 Om2 t + 3 Om3 t^2 = om1 + t*(c2 + u)
        # P''(t) = 2 Om2 + 6 Om3 t           = q + u
        u = c3 * t
        q = c2 + u
        dpoly = om1 + t * q
        poly = om0 + t * (om1 + t * (om2 + om3 * t))
        g = g0 * x + rt * (x * logx + one_m_x * log1mx) + p * poly
        mu = g0 + rt * (logx - log1mx) + t * poly - 2.0 * p * dpoly
        if not with_deriv:
            return g, mu, None
        ddpoly = q + u
        # 1/(x(1-x)) only feeds the Jacobian (Newton direction), never the
        # fixed-point value itself, so the approx EUP reciprocal is safe.
        inv_p = pl.reciprocal(p, approx=True)
        mup = rt * inv_p - 2.0 * (poly + 2.0 * (t * dpoly - p * ddpoly))
        return g, mu, mup

    def apply_f(xa, xb):
        """One exact application of the fixed-point map f (FixedPointOperation.forward)."""
        ga, mua, _ = energy(xa, False)
        gb, mub, _ = energy(xb, False)
        d = gb - ga
        fa = jnp.clip(xb - d / (mua + _EPS), _EPS, 1.0 - _EPS)
        fb = jnp.clip(xa + d / (mub + _EPS), _EPS, 1.0 - _EPS)
        return fa, fb

    def nr_step(xa, xb, err):
        ga, mua, mupa = energy(xa, True)
        gb, mub, mupb = energy(xb, True)
        d = gb - ga                       # g_right - g_left
        # Exact reciprocals: they determine the fixed-point value / residual.
        inv_a = 1.0 / (mua + _EPS)
        inv_b = 1.0 / (mub + _EPS)
        d_inv_a = d * inv_a
        d_inv_b = d * inv_b
        ua = xb - d_inv_a                 # x_alpha_new (pre-clamp)
        ub = xa + d_inv_b                 # x_beta_new  (pre-clamp)
        fa = jnp.clip(ua, _EPS, 1.0 - _EPS)
        fb = jnp.clip(ub, _EPS, 1.0 - _EPS)
        # Jacobian of f; torch.clamp contributes a 0/1 pass-through mask.
        dua_da = inv_a * (mua + d_inv_a * mupa)
        dua_db = 1.0 - mub * inv_a
        dub_da = 1.0 - mua * inv_b
        dub_db = inv_b * (mub - d_inv_b * mupb)
        in_a = ua == fa                   # "clip was a no-op" == in-range
        in_b = ub == fb
        zero = jnp.zeros_like(ua)
        # J_g = J_f - I ; Newton step x_new = x - J_g^{-1} (f(x) - x)
        jg00 = jnp.where(in_a, dua_da, zero) - 1.0
        jg01 = jnp.where(in_a, dua_db, zero)
        jg10 = jnp.where(in_b, dub_da, zero)
        jg11 = jnp.where(in_b, dub_db, zero) - 1.0
        r0 = fa - xa
        r1 = fb - xb
        det = jg00 * jg11 - jg01 * jg10
        # TODO(synk): torch.linalg.pinv replaced by closed-form 2x2 inverse with a
        # zero-det floor; identical unless the Jacobian is exactly singular.
        det = jnp.where(jnp.abs(det) > 0.0, det, jnp.full_like(det, 1e-30))
        inv_det = pl.reciprocal(det, approx=True)   # only scales the direction
        xa_new = xa - (jg11 * r0 - jg01 * r1) * inv_det
        xb_new = xb - (jg00 * r1 - jg10 * r0) * inv_det
        # Reference clamps: x_new[0] = max(0+eps, .), x_new[1] = min(1-eps, .)
        xa_new = jnp.maximum(xa_new, _EPS)
        xb_new = jnp.minimum(xb_new, 1.0 - _EPS)
        # TODO(synk): safeguard clamps on the other side keep iterates inside (0,1)
        # where the reference newton_raphson would produce NaN and CommonTangent
        # would fall back to FixedPointOperationForwardPass (fallback not ported);
        # inactive on convergent trajectories.
        xa_new = jnp.minimum(xa_new, 1.0 - _EPS)
        xb_new = jnp.maximum(xb_new, _EPS)
        err_new = jnp.minimum(jnp.abs(xa_new - xa),
                              jnp.abs(xb_new - xb))   # matches reference error rule
        keep = err > _NR_THRESHOLD        # per-lane freeze once converged
        xa = jnp.where(keep, xa_new, xa)
        xb = jnp.where(keep, xb_new, xb)
        err = jnp.where(keep, err_new, err)
        return xa, xb, err

    def cond(carry):
        it, _, _, err = carry
        # Simplified predicate (review): no isnan/where masking needed — a NaN max
        # compares false against the threshold, so NaN lanes read as "done".
        return jnp.logical_and(it < _MAX_NR_ITERS, jnp.max(err) > _NR_THRESHOLD)

    def body(carry):
        it, xa, xb, err = carry
        for _ in range(_UNROLL):          # amortize the reduce + scalar sync
            xa, xb, err = nr_step(xa, xb, err)
        return it + _UNROLL, xa, xb, err

    # Safeguard clamp of the initial guess (identical for valid inputs in (0,1)).
    xa0 = jnp.clip(x_ref[0], _EPS, 1.0 - _EPS)
    xb0 = jnp.clip(x_ref[1], _EPS, 1.0 - _EPS)
    err0 = jnp.full(shp, 9999999.9, jnp.float32)
    _, xa_star, xb_star, _ = lax.while_loop(
        cond, body, (jnp.int32(0), xa0, xb0, err0))

    # new_x_star = f(x_star): one exact final application of the fixed-point map.
    fa, fb = apply_f(xa_star, xb_star)
    out_ref[0] = fa
    out_ref[1] = fb


def _round_up(n, m):
    return ((n + m - 1) // m) * m


def common_tangent_batched(xs, params):
    """Solve N independent common-tangent problems sharing one parameter set.

    xs:     (N, 2) f32 initial guesses [x_alpha, x_beta] per problem.
    params: (6,)   f32 [Omega0, Omega1, Omega2, Omega3, G0, T].
    returns (N, 2) f32 [x_alpha*, x_beta*] = f(newton_raphson(f, x)).
    """
    xs = jnp.asarray(xs, jnp.float32)
    params = jnp.asarray(params, jnp.float32)
    n = xs.shape[0]
    rows = _round_up(max(pl.cdiv(n, _LANES), 1), _SUBLANES)
    total = rows * _LANES
    pad = total - n
    # pad slots replicate the first problem so every lane converges normally.
    flat = jnp.concatenate([xs, jnp.broadcast_to(xs[:1], (pad, 2))], axis=0) \
        if pad else xs
    x_in = flat.T.reshape(2, rows, _LANES)

    out = pl.pallas_call(
        _common_tangent_kernel,
        out_shape=jax.ShapeDtypeStruct((2, rows, _LANES), jnp.float32),
        grid=(rows // _SUBLANES,),
        in_specs=[
            pl.BlockSpec((2, _SUBLANES, _LANES), lambda i: (0, i, 0)),
            pl.BlockSpec(memory_space=pltpu.MemorySpace.SMEM),
        ],
        out_specs=pl.BlockSpec((2, _SUBLANES, _LANES), lambda i: (0, i, 0)),
        compiler_params=pltpu.CompilerParams(
            dimension_semantics=("parallel",)),   # ≥2 tiles → v7x megacore split
    )(x_in, params)
    return out.reshape(2, total).T[:n]


def common_tangent(x, params):
    """CommonTangent.forward for a single (2,) guess (matches the PyTorch module)."""
    x = jnp.asarray(x, jnp.float32).reshape(1, 2)
    return common_tangent_batched(x, params)[0]


if __name__ == "__main__":
    # Deterministic parameter set [Omega0..Omega3, G0, T] with a genuine miscibility
    # gap (Omega0 > 2*R*T at 300 K → binodal near (0.17, 0.83)) and a moderate G0 so
    # the f32 Newton iteration is well-conditioned from the (0.2, 0.8) initial guess.
    params = jnp.array([6000.0, -200.0, 100.0, -50.0, -2000.0, 300.0], jnp.float32)

    # Single-problem input exactly matching the module's (2,) forward signature.
    key = jax.random.PRNGKey(0)
    noise = jax.random.uniform(key, (2,), minval=-0.01, maxval=0.01).astype(jnp.float32)
    x0 = jnp.array([0.20, 0.80], jnp.float32) + noise
    x_star = jax.block_until_ready(common_tangent(x0, params))
    assert x_star.shape == (2,)
    assert bool(jnp.all(jnp.isfinite(x_star)))
    assert bool(jnp.all((x_star > 0.0) & (x_star < 1.0)))

    # Small batch of independent guesses exercising the lane-batched layout.
    noise_b = jax.random.uniform(jax.random.PRNGKey(0), (4, 2),
                                 minval=-0.01, maxval=0.01).astype(jnp.float32)
    xs = jnp.array([[0.20, 0.80]] * 4, jnp.float32) + noise_b
    xs_star = jax.block_until_ready(common_tangent_batched(xs, params))
    assert xs_star.shape == (4, 2)
    assert bool(jnp.all(jnp.isfinite(xs_star)))

    print("KERNEL_OK")
</pallas_src>

<mosaic_0001>
module attributes {stable_mosaic.version = 11 : i64} {
  func.func @_common_tangent_kernel(%arg0: i32, %arg1: memref<2x8x128xf32, #tpu.memory_space<vmem>>, %arg2: memref<6xf32, #tpu.memory_space<smem>>, %arg3: memref<2x8x128xf32, #tpu.memory_space<vmem>>) attributes {dimension_semantics = [#tpu.dimension_semantics<parallel>], iteration_bounds = array<i64: 1>, scalar_prefetch = 0 : i64, scratch_operands = 0 : i64, tpu.core_type = #tpu.core_type<tc>, window_params = [{transform_indices = @transform_0, window_bounds = array<i64: 2, 8, 128>}, {transform_indices = @transform_1, window_bounds = array<i64: 6>}, {transform_indices = @transform_2, window_bounds = array<i64: 2, 8, 128>}]} {
    %c0 = arith.constant 0 : index
    %0 = memref.load %arg2[%c0] : memref<6xf32, #tpu.memory_space<smem>>
    %1 = vector.broadcast %0 : f32 to vector<8x128xf32>
    %c1 = arith.constant 1 : index
    %2 = memref.load %arg2[%c1] : memref<6xf32, #tpu.memory_space<smem>>
    %3 = vector.broadcast %2 : f32 to vector<8x128xf32>
    %c2 = arith.constant 2 : index
    %4 = memref.load %arg2[%c2] : memref<6xf32, #tpu.memory_space<smem>>
    %5 = vector.broadcast %4 : f32 to vector<8x128xf32>
    %c3 = arith.constant 3 : index
    %6 = memref.load %arg2[%c3] : memref<6xf32, #tpu.memory_space<smem>>
    %7 = vector.broadcast %6 : f32 to vector<8x128xf32>
    %c4 = arith.constant 4 : index
    %8 = memref.load %arg2[%c4] : memref<6xf32, #tpu.memory_space<smem>>
    %9 = vector.broadcast %8 : f32 to vector<8x128xf32>
    %c5 = arith.constant 5 : index
    %10 = memref.load %arg2[%c5] : memref<6xf32, #tpu.memory_space<smem>>
    %cst = arith.constant 8.314000e+00 : f32
    %11 = arith.mulf %cst, %10 : f32
    %12 = vector.broadcast %11 : f32 to vector<8x128xf32>
    %cst_0 = arith.constant 2.000000e+00 : f32
    %13 = vector.broadcast %cst_0 : f32 to vector<8x128xf32>
    %14 = arith.mulf %13, %5 : vector<8x128xf32>
    %cst_1 = arith.constant 3.000000e+00 : f32
    %15 = vector.broadcast %cst_1 : f32 to vector<8x128xf32>
    %16 = arith.mulf %15, %7 : vector<8x128xf32>
    %c0_2 = arith.constant 0 : index
    %c0_3 = arith.constant 0 : index
    %c0_4 = arith.constant 0 : index
    %17 = vector.load %arg1[%c0_2, %c0_3, %c0_4] : memref<2x8x128xf32, #tpu.memory_space<vmem>>, vector<1x8x128xf32>
    %18 = vector.shape_cast %17 : vector<1x8x128xf32> to vector<8x128xf32>
    %cst_5 = arith.constant 1.000000e-07 : f32
    %cst_6 = arith.constant 0.99999988 : f32
    %19 = vector.broadcast %cst_5 : f32 to vector<8x128xf32>
    %20 = arith.maximumf %19, %18 : vector<8x128xf32>
    %21 = vector.broadcast %cst_6 : f32 to vector<8x128xf32>
    %22 = arith.minimumf %21, %20 : vector<8x128xf32>
    %c1_7 = arith.constant 1 : index
    %c0_8 = arith.constant 0 : index
    %c0_9 = arith.constant 0 : index
    %23 = vector.load %arg1[%c1_7, %c0_8, %c0_9] : memref<2x8x128xf32, #tpu.memory_space<vmem>>, vector<1x8x128xf32>
    %24 = vector.shape_cast %23 : vector<1x8x128xf32> to vector<8x128xf32>
    %cst_10 = arith.constant 1.000000e-07 : f32
    %cst_11 = arith.constant 0.99999988 : f32
    %25 = vector.broadcast %cst_10 : f32 to vector<8x128xf32>
    %26 = arith.maximumf %25, %24 : vector<8x128xf32>
    %27 = vector.broadcast %cst_11 : f32 to vector<8x128xf32>
    %28 = arith.minimumf %27, %26 : vector<8x128xf32>
    %cst_12 = arith.constant 1.000000e+07 : f32
    %29 = vector.broadcast %cst_12 : f32 to vector<8x128xf32>
    %c0_i32 = arith.constant 0 : i32
    %30:4 = scf.while (%arg4 = %c0_i32, %arg5 = %22, %arg6 = %28, %arg7 = %29) : (i32, vector<8x128xf32>, vector<8x128xf32>, vector<8x128xf32>) -> (i32, vector<8x128xf32>, vector<8x128xf32>, vector<8x128xf32>) {
      %c1000_i32 = arith.constant 1000 : i32
      %126 = arith.cmpi slt, %arg4, %c1000_i32 : i32
      %127 = vector.shape_cast %arg7 : vector<8x128xf32> to vector<1x8x128xf32>
      %cst_33 = arith.constant dense<0xFF800000> : vector<1xf32>
      %128 = vector.multi_reduction <maximumf>, %127, %cst_33 [1, 2] : vector<1x8x128xf32> to vector<1xf32>
      %129 = vector.shape_cast %128 : vector<1xf32> to vector<1x1x1xf32>
      %130 = vector.extract %129[0, 0, 0] : f32 from vector<1x1x1xf32>
      %cst_34 = arith.constant 9.99999997E-7 : f32
      %131 = arith.cmpf ogt, %130, %cst_34 : f32
      %132 = arith.andi %126, %131 : i1
      scf.condition(%132) %arg4, %arg5, %arg6, %arg7 : i32, vector<8x128xf32>, vector<8x128xf32>, vector<8x128xf32>
    } do {
    ^bb0(%arg4: i32, %arg5: vector<8x128xf32>, %arg6: vector<8x128xf32>, %arg7: vector<8x128xf32>):
      %cst_33 = arith.constant 1.000000e+00 : f32
      %126 = vector.broadcast %cst_33 : f32 to vector<8x128xf32>
      %127 = arith.subf %126, %arg5 : vector<8x128xf32>
      %cst_34 = arith.constant 2.000000e+00 : f32
      %128 = vector.broadcast %cst_34 : f32 to vector<8x128xf32>
      %129 = arith.mulf %128, %arg5 : vector<8x128xf32>
      %cst_35 = arith.constant 1.000000e+00 : f32
      %130 = vector.broadcast %cst_35 : f32 to vector<8x128xf32>
      %131 = arith.subf %130, %129 : vector<8x128xf32>
      %132 = arith.mulf %arg5, %127 : vector<8x128xf32>
      %133 = math.log %arg5 : vector<8x128xf32>
      %134 = math.log %127 : vector<8x128xf32>
      %135 = arith.mulf %16, %131 : vector<8x128xf32>
      %136 = arith.addf %14, %135 : vector<8x128xf32>
      %137 = arith.mulf %131, %136 : vector<8x128xf32>
      %138 = arith.addf %3, %137 : vector<8x128xf32>
      %139 = arith.mulf %7, %131 : vector<8x128xf32>
      %140 = arith.addf %5, %139 : vector<8x128xf32>
      %141 = arith.mulf %131, %140 : vector<8x128xf32>
      %142 = arith.addf %3, %141 : vector<8x128xf32>
      %143 = arith.mulf %131, %142 : vector<8x128xf32>
      %144 = arith.addf %1, %143 : vector<8x128xf32>
      %145 = arith.mulf %9, %arg5 : vector<8x128xf32>
      %146 = arith.mulf %arg5, %133 : vector<8x128xf32>
      %147 = arith.mulf %127, %134 : vector<8x128xf32>
      %148 = arith.addf %146, %147 : vector<8x128xf32>
      %149 = arith.mulf %12, %148 : vector<8x128xf32>
      %150 = arith.addf %145, %149 : vector<8x128xf32>
      %151 = arith.mulf %132, %144 : vector<8x128xf32>
      %152 = arith.addf %150, %151 : vector<8x128xf32>
      %153 = arith.subf %133, %134 : vector<8x128xf32>
      %154 = arith.mulf %12, %153 : vector<8x128xf32>
      %155 = arith.addf %9, %154 : vector<8x128xf32>
      %156 = arith.mulf %131, %144 : vector<8x128xf32>
      %157 = arith.addf %155, %156 : vector<8x128xf32>
      %cst_36 = arith.constant 2.000000e+00 : f32
      %158 = vector.broadcast %cst_36 : f32 to vector<8x128xf32>
      %159 = arith.mulf %158, %132 : vector<8x128xf32>
      %160 = arith.mulf %159, %138 : vector<8x128xf32>
      %161 = arith.subf %157, %160 : vector<8x128xf32>
      %162 = arith.addf %136, %135 : vector<8x128xf32>
      %163 = tpu.reciprocal %132 {approx = true} : vector<8x128xf32> -> vector<8x128xf32>
      %164 = arith.mulf %12, %163 : vector<8x128xf32>
      %165 = arith.mulf %131, %138 : vector<8x128xf32>
      %166 = arith.mulf %132, %162 : vector<8x128xf32>
      %167 = arith.subf %165, %166 : vector<8x128xf32>
      %cst_37 = arith.constant 2.000000e+00 : f32
      %168 = vector.broadcast %cst_37 : f32 to vector<8x128xf32>
      %169 = arith.mulf %168, %167 : vector<8x128xf32>
      %170 = arith.addf %144, %169 : vector<8x128xf32>
      %cst_38 = arith.constant 2.000000e+00 : f32
      %171 = vector.broadcast %cst_38 : f32 to vector<8x128xf32>
      %172 = arith.mulf %171, %170 : vector<8x128xf32>
      %173 = arith.subf %164, %172 : vector<8x128xf32>
      %cst_39 = arith.constant 1.000000e+00 : f32
      %174 = vector.broadcast %cst_39 : f32 to vector<8x128xf32>
      %175 = arith.subf %174, %arg6 : vector<8x128xf32>
      %cst_40 = arith.constant 2.000000e+00 : f32
      %176 = vector.broadcast %cst_40 : f32 to vector<8x128xf32>
      %177 = arith.mulf %176, %arg6 : vector<8x128xf32>
      %cst_41 = arith.constant 1.000000e+00 : f32
      %178 = vector.broadcast %cst_41 : f32 to vector<8x128xf32>
      %179 = arith.subf %178, %177 : vector<8x128xf32>
      %180 = arith.mulf %arg6, %175 : vector<8x128xf32>
      %181 = math.log %arg6 : vector<8x128xf32>
      %182 = math.log %175 : vector<8x128xf32>
      %183 = arith.mulf %16, %179 : vector<8x128xf32>
      %184 = arith.addf %14, %183 : vector<8x128xf32>
      %185 = arith.mulf %179, %184 : vector<8x128xf32>
      %186 = arith.addf %3, %185 : vector<8x128xf32>
      %187 = arith.mulf %7, %179 : vector<8x128xf32>
      %188 = arith.addf %5, %187 : vector<8x128xf32>
      %189 = arith.mulf %179, %188 : vector<8x128xf32>
      %190 = arith.addf %3, %189 : vector<8x128xf32>
      %191 = arith.mulf %179, %190 : vector<8x128xf32>
      %192 = arith.addf %1, %191 : vector<8x128xf32>
      %193 = arith.mulf %9, %arg6 : vector<8x128xf32>
      %194 = arith.mulf %arg6, %181 : vector<8x128xf32>
      %195 = arith.mulf %175, %182 : vector<8x128xf32>
      %196 = arith.addf %194, %195 : vector<8x128xf32>
      %197 = arith.mulf %12, %196 : vector<8x128xf32>
      %198 = arith.addf %193, %197 : vector<8x128xf32>
      %199 = arith.mulf %180, %192 : vector<8x128xf32>
      %200 = arith.addf %198, %199 : vector<8x128xf32>
      %201 = arith.subf %181, %182 : vector<8x128xf32>
      %202 = arith.mulf %12, %201 : vector<8x128xf32>
      %203 = arith.addf %9, %202 : vector<8x128xf32>
      %204 = arith.mulf %179, %192 : vector<8x128xf32>
      %205 = arith.addf %203, %204 : vector<8x128xf32>
      %cst_42 = arith.constant 2.000000e+00 : f32
      %206 = vector.broadcast %cst_42 : f32 to vector<8x128xf32>
      %207 = arith.mulf %206, %180 : vector<8x128xf32>
      %208 = arith.mulf %207, %186 : vector<8x128xf32>
      %209 = arith.subf %205, %208 : vector<8x128xf32>
      %210 = arith.addf %184, %183 : vector<8x128xf32>
      %211 = tpu.reciprocal %180 {approx = true} : vector<8x128xf32> -> vector<8x128xf32>
      %212 = arith.mulf %12, %211 : vector<8x128xf32>
      %213 = arith.mulf %179, %186 : vector<8x128xf32>
      %214 = arith.mulf %180, %210 : vector<8x128xf32>
      %215 = arith.subf %213, %214 : vector<8x128xf32>
      %cst_43 = arith.constant 2.000000e+00 : f32
      %216 = vector.broadcast %cst_43 : f32 to vector<8x128xf32>
      %217 = arith.mulf %216, %215 : vector<8x128xf32>
      %218 = arith.addf %192, %217 : vector<8x128xf32>
      %cst_44 = arith.constant 2.000000e+00 : f32
      %219 = vector.broadcast %cst_44 : f32 to vector<8x128xf32>
      %220 = arith.mulf %219, %218 : vector<8x128xf32>
      %221 = arith.subf %212, %220 : vector<8x128xf32>
      %222 = arith.subf %200, %152 : vector<8x128xf32>
      %cst_45 = arith.constant 1.000000e-07 : f32
      %223 = vector.broadcast %cst_45 : f32 to vector<8x128xf32>
      %224 = arith.addf %161, %223 : vector<8x128xf32>
      %cst_46 = arith.constant 1.000000e+00 : f32
      %225 = vector.broadcast %cst_46 : f32 to vector<8x128xf32>
      %226 = arith.divf %225, %224 : vector<8x128xf32>
      %cst_47 = arith.constant 1.000000e-07 : f32
      %227 = vector.broadcast %cst_47 : f32 to vector<8x128xf32>
      %228 = arith.addf %209, %227 : vector<8x128xf32>
      %cst_48 = arith.constant 1.000000e+00 : f32
      %229 = vector.broadcast %cst_48 : f32 to vector<8x128xf32>
      %230 = arith.divf %229, %228 : vector<8x128xf32>
      %231 = arith.mulf %222, %226 : vector<8x128xf32>
      %232 = arith.mulf %222, %230 : vector<8x128xf32>
      %233 = arith.subf %arg6, %231 : vector<8x128xf32>
      %234 = arith.addf %arg5, %232 : vector<8x128xf32>
      %cst_49 = arith.constant 1.000000e-07 : f32
      %cst_50 = arith.constant 0.99999988 : f32
      %235 = vector.broadcast %cst_49 : f32 to vector<8x128xf32>
      %236 = arith.maximumf %235, %233 : vector<8x128xf32>
      %237 = vector.broadcast %cst_50 : f32 to vector<8x128xf32>
      %238 = arith.minimumf %237, %236 : vector<8x128xf32>
      %cst_51 = arith.constant 1.000000e-07 : f32
      %cst_52 = arith.constant 0.99999988 : f32
      %239 = vector.broadcast %cst_51 : f32 to vector<8x128xf32>
      %240 = arith.maximumf %239, %234 : vector<8x128xf32>
      %241 = vector.broadcast %cst_52 : f32 to vector<8x128xf32>
      %242 = arith.minimumf %241, %240 : vector<8x128xf32>
      %243 = arith.mulf %231, %173 : vector<8x128xf32>
      %244 = arith.addf %161, %243 : vector<8x128xf32>
      %245 = arith.mulf %226, %244 : vector<8x128xf32>
      %246 = arith.mulf %209, %226 : vector<8x128xf32>
      %cst_53 = arith.constant 1.000000e+00 : f32
      %247 = vector.broadcast %cst_53 : f32 to vector<8x128xf32>
      %248 = arith.subf %247, %246 : vector<8x128xf32>
      %249 = arith.mulf %161, %230 : vector<8x128xf32>
      %cst_54 = arith.constant 1.000000e+00 : f32
      %250 = vector.broadcast %cst_54 : f32 to vector<8x128xf32>
      %251 = arith.subf %250, %249 : vector<8x128xf32>
      %252 = arith.mulf %232, %221 : vector<8x128xf32>
      %253 = arith.subf %209, %252 : vector<8x128xf32>
      %254 = arith.mulf %230, %253 : vector<8x128xf32>
      %255 = arith.cmpf oeq, %233, %238 : vector<8x128xf32>
      %256 = arith.cmpf oeq, %234, %242 : vector<8x128xf32>
      %cst_55 = arith.constant 0.000000e+00 : f32
      %257 = vector.broadcast %cst_55 : f32 to vector<8x128xf32>
      %258 = arith.select %255, %245, %257 : vector<8x128xi1>, vector<8x128xf32>
      %cst_56 = arith.constant 1.000000e+00 : f32
      %259 = vector.broadcast %cst_56 : f32 to vector<8x128xf32>
      %260 = arith.subf %258, %259 : vector<8x128xf32>
      %261 = arith.select %255, %248, %257 : vector<8x128xi1>, vector<8x128xf32>
      %262 = arith.select %256, %251, %257 : vector<8x128xi1>, vector<8x128xf32>
      %263 = arith.select %256, %254, %257 : vector<8x128xi1>, vector<8x128xf32>
      %cst_57 = arith.constant 1.000000e+00 : f32
      %264 = vector.broadcast %cst_57 : f32 to vector<8x128xf32>
      %265 = arith.subf %263, %264 : vector<8x128xf32>
      %266 = arith.subf %238, %arg5 : vector<8x128xf32>
      %267 = arith.subf %242, %arg6 : vector<8x128xf32>
      %268 = arith.mulf %260, %265 : vector<8x128xf32>
      %269 = arith.mulf %261, %262 : vector<8x128xf32>
      %270 = arith.subf %268, %269 : vector<8x128xf32>
      %271 = math.absf %270 : vector<8x128xf32>
      %cst_58 = arith.constant 0.000000e+00 : f32
      %272 = vector.broadcast %cst_58 : f32 to vector<8x128xf32>
      %273 = arith.cmpf ogt, %271, %272 : vector<8x128xf32>
      %cst_59 = arith.constant 1.000000e-30 : f32
      %274 = vector.broadcast %cst_59 : f32 to vector<8x128xf32>
      %275 = arith.select %273, %270, %274 : vector<8x128xi1>, vector<8x128xf32>
      %276 = tpu.reciprocal %275 {approx = true} : vector<8x128xf32> -> vector<8x128xf32>
      %277 = arith.mulf %265, %266 : vector<8x128xf32>
      %278 = arith.mulf %261, %267 : vector<8x128xf32>
      %279 = arith.subf %277, %278 : vector<8x128xf32>
      %280 = arith.mulf %279, %276 : vector<8x128xf32>
      %281 = arith.subf %arg5, %280 : vector<8x128xf32>
      %282 = arith.mulf %260, %267 : vector<8x128xf32>
      %283 = arith.mulf %262, %266 : vector<8x128xf32>
      %284 = arith.subf %282, %283 : vector<8x128xf32>
      %285 = arith.mulf %284, %276 : vector<8x128xf32>
      %286 = arith.subf %arg6, %285 : vector<8x128xf32>
      %cst_60 = arith.constant 1.000000e-07 : f32
      %287 = vector.broadcast %cst_60 : f32 to vector<8x128xf32>
      %288 = arith.maximumf %281, %287 : vector<8x128xf32>
      %cst_61 = arith.constant 0.99999988 : f32
      %289 = vector.broadcast %cst_61 : f32 to vector<8x128xf32>
      %290 = arith.minimumf %286, %289 : vector<8x128xf32>
      %cst_62 = arith.constant 0.99999988 : f32
      %291 = vector.broadcast %cst_62 : f32 to vector<8x128xf32>
      %292 = arith.minimumf %288, %291 : vector<8x128xf32>
      %cst_63 = arith.constant 1.000000e-07 : f32
      %293 = vector.broadcast %cst_63 : f32 to vector<8x128xf32>
      %294 = arith.maximumf %290, %293 : vector<8x128xf32>
      %295 = arith.subf %292, %arg5 : vector<8x128xf32>
      %296 = math.absf %295 : vector<8x128xf32>
      %297 = arith.subf %294, %arg6 : vector<8x128xf32>
      %298 = math.absf %297 : vector<8x128xf32>
      %299 = arith.minimumf %296, %298 : vector<8x128xf32>
      %cst_64 = arith.constant 9.99999997E-7 : f32
      %300 = vector.broadcast %cst_64 : f32 to vector<8x128xf32>
      %301 = arith.cmpf ogt, %arg7, %300 : vector<8x128xf32>
      %302 = arith.select %301, %292, %arg5 : vector<8x128xi1>, vector<8x128xf32>
      %303 = arith.select %301, %294, %arg6 : vector<8x128xi1>, vector<8x128xf32>
      %304 = arith.select %301, %299, %arg7 : vector<8x128xi1>, vector<8x128xf32>
      %cst_65 = arith.constant 1.000000e+00 : f32
      %305 = vector.broadcast %cst_65 : f32 to vector<8x128xf32>
      %306 = arith.subf %305, %302 : vector<8x128xf32>
      %cst_66 = arith.constant 2.000000e+00 : f32
      %307 = vector.broadcast %cst_66 : f32 to vector<8x128xf32>
      %308 = arith.mulf %307, %302 : vector<8x128xf32>
      %cst_67 = arith.constant 1.000000e+00 : f32
      %309 = vector.broadcast %cst_67 : f32 to vector<8x128xf32>
      %310 = arith.subf %309, %308 : vector<8x128xf32>
      %311 = arith.mulf %302, %306 : vector<8x128xf32>
      %312 = math.log %302 : vector<8x128xf32>
      %313 = math.log %306 : vector<8x128xf32>
      %314 = arith.mulf %16, %310 : vector<8x128xf32>
      %315 = arith.addf %14, %314 : vector<8x128xf32>
      %316 = arith.mulf %310, %315 : vector<8x128xf32>
      %317 = arith.addf %3, %316 : vector<8x128xf32>
      %318 = arith.mulf %7, %310 : vector<8x128xf32>
      %319 = arith.addf %5, %318 : vector<8x128xf32>
      %320 = arith.mulf %310, %319 : vector<8x128xf32>
      %321 = arith.addf %3, %320 : vector<8x128xf32>
      %322 = arith.mulf %310, %321 : vector<8x128xf32>
      %323 = arith.addf %1, %322 : vector<8x128xf32>
      %324 = arith.mulf %9, %302 : vector<8x128xf32>
      %325 = arith.mulf %302, %312 : vector<8x128xf32>
      %326 = arith.mulf %306, %313 : vector<8x128xf32>
      %327 = arith.addf %325, %326 : vector<8x128xf32>
      %328 = arith.mulf %12, %327 : vector<8x128xf32>
      %329 = arith.addf %324, %328 : vector<8x128xf32>
      %330 = arith.mulf %311, %323 : vector<8x128xf32>
      %331 = arith.addf %329, %330 : vector<8x128xf32>
      %332 = arith.subf %312, %313 : vector<8x128xf32>
      %333 = arith.mulf %12, %332 : vector<8x128xf32>
      %334 = arith.addf %9, %333 : vector<8x128xf32>
      %335 = arith.mulf %310, %323 : vector<8x128xf32>
      %336 = arith.addf %334, %335 : vector<8x128xf32>
      %cst_68 = arith.constant 2.000000e+00 : f32
      %337 = vector.broadcast %cst_68 : f32 to vector<8x128xf32>
      %338 = arith.mulf %337, %311 : vector<8x128xf32>
      %339 = arith.mulf %338, %317 : vector<8x128xf32>
      %340 = arith.subf %336, %339 : vector<8x128xf32>
      %341 = arith.addf %315, %314 : vector<8x128xf32>
      %342 = tpu.reciprocal %311 {approx = true} : vector<8x128xf32> -> vector<8x128xf32>
      %343 = arith.mulf %12, %342 : vector<8x128xf32>
      %344 = arith.mulf %310, %317 : vector<8x128xf32>
      %345 = arith.mulf %311, %341 : vector<8x128xf32>
      %346 = arith.subf %344, %345 : vector<8x128xf32>
      %cst_69 = arith.constant 2.000000e+00 : f32
      %347 = vector.broadcast %cst_69 : f32 to vector<8x128xf32>
      %348 = arith.mulf %347, %346 : vector<8x128xf32>
      %349 = arith.addf %323, %348 : vector<8x128xf32>
      %cst_70 = arith.constant 2.000000e+00 : f32
      %350 = vector.broadcast %cst_70 : f32 to vector<8x128xf32>
      %351 = arith.mulf %350, %349 : vector<8x128xf32>
      %352 = arith.subf %343, %351 : vector<8x128xf32>
      %cst_71 = arith.constant 1.000000e+00 : f32
      %353 = vector.broadcast %cst_71 : f32 to vector<8x128xf32>
      %354 = arith.subf %353, %303 : vector<8x128xf32>
      %cst_72 = arith.constant 2.000000e+00 : f32
      %355 = vector.broadcast %cst_72 : f32 to vector<8x128xf32>
      %356 = arith.mulf %355, %303 : vector<8x128xf32>
      %cst_73 = arith.constant 1.000000e+00 : f32
      %357 = vector.broadcast %cst_73 : f32 to vector<8x128xf32>
      %358 = arith.subf %357, %356 : vector<8x128xf32>
      %359 = arith.mulf %303, %354 : vector<8x128xf32>
      %360 = math.log %303 : vector<8x128xf32>
      %361 = math.log %354 : vector<8x128xf32>
      %362 = arith.mulf %16, %358 : vector<8x128xf32>
      %363 = arith.addf %14, %362 : vector<8x128xf32>
      %364 = arith.mulf %358, %363 : vector<8x128xf32>
      %365 = arith.addf %3, %364 : vector<8x128xf32>
      %366 = arith.mulf %7, %358 : vector<8x128xf32>
      %367 = arith.addf %5, %366 : vector<8x128xf32>
      %368 = arith.mulf %358, %367 : vector<8x128xf32>
      %369 = arith.addf %3, %368 : vector<8x128xf32>
      %370 = arith.mulf %358, %369 : vector<8x128xf32>
      %371 = arith.addf %1, %370 : vector<8x128xf32>
      %372 = arith.mulf %9, %303 : vector<8x128xf32>
      %373 = arith.mulf %303, %360 : vector<8x128xf32>
      %374 = arith.mulf %354, %361 : vector<8x128xf32>
      %375 = arith.addf %373, %374 : vector<8x128xf32>
      %376 = arith.mulf %12, %375 : vector<8x128xf32>
      %377 = arith.addf %372, %376 : vector<8x128xf32>
      %378 = arith.mulf %359, %371 : vector<8x128xf32>
      %379 = arith.addf %377, %378 : vector<8x128xf32>
      %380 = arith.subf %360, %361 : vector<8x128xf32>
      %381 = arith.mulf %12, %380 : vector<8x128xf32>
      %382 = arith.addf %9, %381 : vector<8x128xf32>
      %383 = arith.mulf %358, %371 : vector<8x128xf32>
      %384 = arith.addf %382, %383 : vector<8x128xf32>
      %cst_74 = arith.constant 2.000000e+00 : f32
      %385 = vector.broadcast %cst_74 : f32 to vector<8x128xf32>
      %386 = arith.mulf %385, %359 : vector<8x128xf32>
      %387 = arith.mulf %386, %365 : vector<8x128xf32>
      %388 = arith.subf %384, %387 : vector<8x128xf32>
      %389 = arith.addf %363, %362 : vector<8x128xf32>
      %390 = tpu.reciprocal %359 {approx = true} : vector<8x128xf32> -> vector<8x128xf32>
      %391 = arith.mulf %12, %390 : vector<8x128xf32>
      %392 = arith.mulf %358, %365 : vector<8x128xf32>
      %393 = arith.mulf %359, %389 : vector<8x128xf32>
      %394 = arith.subf %392, %393 : vector<8x128xf32>
      %cst_75 = arith.constant 2.000000e+00 : f32
      %395 = vector.broadcast %cst_75 : f32 to vector<8x128xf32>
      %396 = arith.mulf %395, %394 : vector<8x128xf32>
      %397 = arith.addf %371, %396 : vector<8x128xf32>
      %cst_76 = arith.constant 2.000000e+00 : f32
      %398 = vector.broadcast %cst_76 : f32 to vector<8x128xf32>
      %399 = arith.mulf %398, %397 : vector<8x128xf32>
      %400 = arith.subf %391, %399 : vector<8x128xf32>
      %401 = arith.subf %379, %331 : vector<8x128xf32>
      %cst_77 = arith.constant 1.000000e-07 : f32
      %402 = vector.broadcast %cst_77 : f32 to vector<8x128xf32>
      %403 = arith.addf %340, %402 : vector<8x128xf32>
      %cst_78 = arith.constant 1.000000e+00 : f32
      %404 = vector.broadcast %cst_78 : f32 to vector<8x128xf32>
      %405 = arith.divf %404, %403 : vector<8x128xf32>
      %cst_79 = arith.constant 1.000000e-07 : f32
      %406 = vector.broadcast %cst_79 : f32 to vector<8x128xf32>
      %407 = arith.addf %388, %406 : vector<8x128xf32>
      %cst_80 = arith.constant 1.000000e+00 : f32
      %408 = vector.broadcast %cst_80 : f32 to vector<8x128xf32>
      %409 = arith.divf %408, %407 : vector<8x128xf32>
      %410 = arith.mulf %401, %405 : vector<8x128xf32>
      %411 = arith.mulf %401, %409 : vector<8x128xf32>
      %412 = arith.subf %303, %410 : vector<8x128xf32>
      %413 = arith.addf %302, %411 : vector<8x128xf32>
      %cst_81 = arith.constant 1.000000e-07 : f32
      %cst_82 = arith.constant 0.99999988 : f32
      %414 = vector.broadcast %cst_81 : f32 to vector<8x128xf32>
      %415 = arith.maximumf %414, %412 : vector<8x128xf32>
      %416 = vector.broadcast %cst_82 : f32 to vector<8x128xf32>
      %417 = arith.minimumf %416, %415 : vector<8x128xf32>
      %cst_83 = arith.constant 1.000000e-07 : f32
      %cst_84 = arith.constant 0.99999988 : f32
      %418 = vector.broadcast %cst_83 : f32 to vector<8x128xf32>
      %419 = arith.maximumf %418, %413 : vector<8x128xf32>
      %420 = vector.broadcast %cst_84 : f32 to vector<8x128xf32>
      %421 = arith.minimumf %420, %419 : vector<8x128xf32>
      %422 = arith.mulf %410, %352 : vector<8x128xf32>
      %423 = arith.addf %340, %422 : vector<8x128xf32>
      %424 = arith.mulf %405, %423 : vector<8x128xf32>
      %425 = arith.mulf %388, %405 : vector<8x128xf32>
      %cst_85 = arith.constant 1.000000e+00 : f32
      %426 = vector.broadcast %cst_85 : f32 to vector<8x128xf32>
      %427 = arith.subf %426, %425 : vector<8x128xf32>
      %428 = arith.mulf %340, %409 : vector<8x128xf32>
      %cst_86 = arith.constant 1.000000e+00 : f32
      %429 = vector.broadcast %cst_86 : f32 to vector<8x128xf32>
      %430 = arith.subf %429, %428 : vector<8x128xf32>
      %431 = arith.mulf %411, %400 : vector<8x128xf32>
      %432 = arith.subf %388, %431 : vector<8x128xf32>
      %433 = arith.mulf %409, %432 : vector<8x128xf32>
      %434 = arith.cmpf oeq, %412, %417 : vector<8x128xf32>
      %435 = arith.cmpf oeq, %413, %421 : vector<8x128xf32>
      %cst_87 = arith.constant 0.000000e+00 : f32
      %436 = vector.broadcast %cst_87 : f32 to vector<8x128xf32>
      %437 = arith.select %434, %424, %436 : vector<8x128xi1>, vector<8x128xf32>
      %cst_88 = arith.constant 1.000000e+00 : f32
      %438 = vector.broadcast %cst_88 : f32 to vector<8x128xf32>
      %439 = arith.subf %437, %438 : vector<8x128xf32>
      %440 = arith.select %434, %427, %436 : vector<8x128xi1>, vector<8x128xf32>
      %441 = arith.select %435, %430, %436 : vector<8x128xi1>, vector<8x128xf32>
      %442 = arith.select %435, %433, %436 : vector<8x128xi1>, vector<8x128xf32>
      %cst_89 = arith.constant 1.000000e+00 : f32
      %443 = vector.broadcast %cst_89 : f32 to vector<8x128xf32>
      %444 = arith.subf %442, %443 : vector<8x128xf32>
      %445 = arith.subf %417, %302 : vector<8x128xf32>
      %446 = arith.subf %421, %303 : vector<8x128xf32>
      %447 = arith.mulf %439, %444 : vector<8x128xf32>
      %448 = arith.mulf %440, %441 : vector<8x128xf32>
      %449 = arith.subf %447, %448 : vector<8x128xf32>
      %450 = math.absf %449 : vector<8x128xf32>
      %cst_90 = arith.constant 0.000000e+00 : f32
      %451 = vector.broadcast %cst_90 : f32 to vector<8x128xf32>
      %452 = arith.cmpf ogt, %450, %451 : vector<8x128xf32>
      %cst_91 = arith.constant 1.000000e-30 : f32
      %453 = vector.broadcast %cst_91 : f32 to vector<8x128xf32>
      %454 = arith.select %452, %449, %453 : vector<8x128xi1>, vector<8x128xf32>
      %455 = tpu.reciprocal %454 {approx = true} : vector<8x128xf32> -> vector<8x128xf32>
      %456 = arith.mulf %444, %445 : vector<8x128xf32>
      %457 = arith.mulf %440, %446 : vector<8x128xf32>
      %458 = arith.subf %456, %457 : vector<8x128xf32>
      %459 = arith.mulf %458, %455 : vector<8x128xf32>
      %460 = arith.subf %302, %459 : vector<8x128xf32>
      %461 = arith.mulf %439, %446 : vector<8x128xf32>
      %462 = arith.mulf %441, %445 : vector<8x128xf32>
      %463 = arith.subf %461, %462 : vector<8x128xf32>
      %464 = arith.mulf %463, %455 : vector<8x128xf32>
      %465 = arith.subf %303, %464 : vector<8x128xf32>
      %cst_92 = arith.constant 1.000000e-07 : f32
      %466 = vector.broadcast %cst_92 : f32 to vector<8x128xf32>
      %467 = arith.maximumf %460, %466 : vector<8x128xf32>
      %cst_93 = arith.constant 0.99999988 : f32
      %468 = vector.broadcast %cst_93 : f32 to vector<8x128xf32>
      %469 = arith.minimumf %465, %468 : vector<8x128xf32>
      %cst_94 = arith.constant 0.99999988 : f32
      %470 = vector.broadcast %cst_94 : f32 to vector<8x128xf32>
      %471 = arith.minimumf %467, %470 : vector<8x128xf32>
      %cst_95 = arith.constant 1.000000e-07 : f32
      %472 = vector.broadcast %cst_95 : f32 to vector<8x128xf32>
      %473 = arith.maximumf %469, %472 : vector<8x128xf32>
      %474 = arith.subf %471, %302 : vector<8x128xf32>
      %475 = math.absf %474 : vector<8x128xf32>
      %476 = arith.subf %473, %303 : vector<8x128xf32>
      %477 = math.absf %476 : vector<8x128xf32>
      %478 = arith.minimumf %475, %477 : vector<8x128xf32>
      %cst_96 = arith.constant 9.99999997E-7 : f32
      %479 = vector.broadcast %cst_96 : f32 to vector<8x128xf32>
      %480 = arith.cmpf ogt, %304, %479 : vector<8x128xf32>
      %481 = arith.select %480, %471, %302 : vector<8x128xi1>, vector<8x128xf32>
      %482 = arith.select %480, %473, %303 : vector<8x128xi1>, vector<8x128xf32>
      %483 = arith.select %480, %478, %304 : vector<8x128xi1>, vector<8x128xf32>
      %cst_97 = arith.constant 1.000000e+00 : f32
      %484 = vector.broadcast %cst_97 : f32 to vector<8x128xf32>
      %485 = arith.subf %484, %481 : vector<8x128xf32>
      %cst_98 = arith.constant 2.000000e+00 : f32
      %486 = vector.broadcast %cst_98 : f32 to vector<8x128xf32>
      %487 = arith.mulf %486, %481 : vector<8x128xf32>
      %cst_99 = arith.constant 1.000000e+00 : f32
      %488 = vector.broadcast %cst_99 : f32 to vector<8x128xf32>
      %489 = arith.subf %488, %487 : vector<8x128xf32>
      %490 = arith.mulf %481, %485 : vector<8x128xf32>
      %491 = math.log %481 : vector<8x128xf32>
      %492 = math.log %485 : vector<8x128xf32>
      %493 = arith.mulf %16, %489 : vector<8x128xf32>
      %494 = arith.addf %14, %493 : vector<8x128xf32>
      %495 = arith.mulf %489, %494 : vector<8x128xf32>
      %496 = arith.addf %3, %495 : vector<8x128xf32>
      %497 = arith.mulf %7, %489 : vector<8x128xf32>
      %498 = arith.addf %5, %497 : vector<8x128xf32>
      %499 = arith.mulf %489, %498 : vector<8x128xf32>
      %500 = arith.addf %3, %499 : vector<8x128xf32>
      %501 = arith.mulf %489, %500 : vector<8x128xf32>
      %502 = arith.addf %1, %501 : vector<8x128xf32>
      %503 = arith.mulf %9, %481 : vector<8x128xf32>
      %504 = arith.mulf %481, %491 : vector<8x128xf32>
      %505 = arith.mulf %485, %492 : vector<8x128xf32>
      %506 = arith.addf %504, %505 : vector<8x128xf32>
      %507 = arith.mulf %12, %506 : vector<8x128xf32>
      %508 = arith.addf %503, %507 : vector<8x128xf32>
      %509 = arith.mulf %490, %502 : vector<8x128xf32>
      %510 = arith.addf %508, %509 : vector<8x128xf32>
      %511 = arith.subf %491, %492 : vector<8x128xf32>
      %512 = arith.mulf %12, %511 : vector<8x128xf32>
      %513 = arith.addf %9, %512 : vector<8x128xf32>
      %514 = arith.mulf %489, %502 : vector<8x128xf32>
      %515 = arith.addf %513, %514 : vector<8x128xf32>
      %cst_100 = arith.constant 2.000000e+00 : f32
      %516 = vector.broadcast %cst_100 : f32 to vector<8x128xf32>
      %517 = arith.mulf %516, %490 : vector<8x128xf32>
      %518 = arith.mulf %517, %496 : vector<8x128xf32>
      %519 = arith.subf %515, %518 : vector<8x128xf32>
      %520 = arith.addf %494, %493 : vector<8x128xf32>
      %521 = tpu.reciprocal %490 {approx = true} : vector<8x128xf32> -> vector<8x128xf32>
      %522 = arith.mulf %12, %521 : vector<8x128xf32>
      %523 = arith.mulf %489, %496 : vector<8x128xf32>
      %524 = arith.mulf %490, %520 : vector<8x128xf32>
      %525 = arith.subf %523, %524 : vector<8x128xf32>
      %cst_101 = arith.constant 2.000000e+00 : f32
      %526 = vector.broadcast %cst_101 : f32 to vector<8x128xf32>
      %527 = arith.mulf %526, %525 : vector<8x128xf32>
      %528 = arith.addf %502, %527 : vector<8x128xf32>
      %cst_102 = arith.constant 2.000000e+00 : f32
      %529 = vector.broadcast %cst_102 : f32 to vector<8x128xf32>
      %530 = arith.mulf %529, %528 : vector<8x128xf32>
      %531 = arith.subf %522, %530 : vector<8x128xf32>
      %cst_103 = arith.constant 1.000000e+00 : f32
      %532 = vector.broadcast %cst_103 : f32 to vector<8x128xf32>
      %533 = arith.subf %532, %482 : vector<8x128xf32>
      %cst_104 = arith.constant 2.000000e+00 : f32
      %534 = vector.broadcast %cst_104 : f32 to vector<8x128xf32>
      %535 = arith.mulf %534, %482 : vector<8x128xf32>
      %cst_105 = arith.constant 1.000000e+00 : f32
      %536 = vector.broadcast %cst_105 : f32 to vector<8x128xf32>
      %537 = arith.subf %536, %535 : vector<8x128xf32>
      %538 = arith.mulf %482, %533 : vector<8x128xf32>
      %539 = math.log %482 : vector<8x128xf32>
      %540 = math.log %533 : vector<8x128xf32>
      %541 = arith.mulf %16, %537 : vector<8x128xf32>
      %542 = arith.addf %14, %541 : vector<8x128xf32>
      %543 = arith.mulf %537, %542 : vector<8x128xf32>
      %544 = arith.addf %3, %543 : vector<8x128xf32>
      %545 = arith.mulf %7, %537 : vector<8x128xf32>
      %546 = arith.addf %5, %545 : vector<8x128xf32>
      %547 = arith.mulf %537, %546 : vector<8x128xf32>
      %548 = arith.addf %3, %547 : vector<8x128xf32>
      %549 = arith.mulf %537, %548 : vector<8x128xf32>
      %550 = arith.addf %1, %549 : vector<8x128xf32>
      %551 = arith.mulf %9, %482 : vector<8x128xf32>
      %552 = arith.mulf %482, %539 : vector<8x128xf32>
      %553 = arith.mulf %533, %540 : vector<8x128xf32>
      %554 = arith.addf %552, %553 : vector<8x128xf32>
      %555 = arith.mulf %12, %554 : vector<8x128xf32>
      %556 = arith.addf %551, %555 : vector<8x128xf32>
      %557 = arith.mulf %538, %550 : vector<8x128xf32>
      %558 = arith.addf %556, %557 : vector<8x128xf32>
      %559 = arith.subf %539, %540 : vector<8x128xf32>
      %560 = arith.mulf %12, %559 : vector<8x128xf32>
      %561 = arith.addf %9, %560 : vector<8x128xf32>
      %562 = arith.mulf %537, %550 : vector<8x128xf32>
      %563 = arith.addf %561, %562 : vector<8x128xf32>
      %cst_106 = arith.constant 2.000000e+00 : f32
      %564 = vector.broadcast %cst_106 : f32 to vector<8x128xf32>
      %565 = arith.mulf %564, %538 : vector<8x128xf32>
      %566 = arith.mulf %565, %544 : vector<8x128xf32>
      %567 = arith.subf %563, %566 : vector<8x128xf32>
      %568 = arith.addf %542, %541 : vector<8x128xf32>
      %569 = tpu.reciprocal %538 {approx = true} : vector<8x128xf32> -> vector<8x128xf32>
      %570 = arith.mulf %12, %569 : vector<8x128xf32>
      %571 = arith.mulf %537, %544 : vector<8x128xf32>
      %572 = arith.mulf %538, %568 : vector<8x128xf32>
      %573 = arith.subf %571, %572 : vector<8x128xf32>
      %cst_107 = arith.constant 2.000000e+00 : f32
      %574 = vector.broadcast %cst_107 : f32 to vector<8x128xf32>
      %575 = arith.mulf %574, %573 : vector<8x128xf32>
      %576 = arith.addf %550, %575 : vector<8x128xf32>
      %cst_108 = arith.constant 2.000000e+00 : f32
      %577 = vector.broadcast %cst_108 : f32 to vector<8x128xf32>
      %578 = arith.mulf %577, %576 : vector<8x128xf32>
      %579 = arith.subf %570, %578 : vector<8x128xf32>
      %580 = arith.subf %558, %510 : vector<8x128xf32>
      %cst_109 = arith.constant 1.000000e-07 : f32
      %581 = vector.broadcast %cst_109 : f32 to vector<8x128xf32>
      %582 = arith.addf %519, %581 : vector<8x128xf32>
      %cst_110 = arith.constant 1.000000e+00 : f32
      %583 = vector.broadcast %cst_110 : f32 to vector<8x128xf32>
      %584 = arith.divf %583, %582 : vector<8x128xf32>
      %cst_111 = arith.constant 1.000000e-07 : f32
      %585 = vector.broadcast %cst_111 : f32 to vector<8x128xf32>
      %586 = arith.addf %567, %585 : vector<8x128xf32>
      %cst_112 = arith.constant 1.000000e+00 : f32
      %587 = vector.broadcast %cst_112 : f32 to vector<8x128xf32>
      %588 = arith.divf %587, %586 : vector<8x128xf32>
      %589 = arith.mulf %580, %584 : vector<8x128xf32>
      %590 = arith.mulf %580, %588 : vector<8x128xf32>
      %591 = arith.subf %482, %589 : vector<8x128xf32>
      %592 = arith.addf %481, %590 : vector<8x128xf32>
      %cst_113 = arith.constant 1.000000e-07 : f32
      %cst_114 = arith.constant 0.99999988 : f32
      %593 = vector.broadcast %cst_113 : f32 to vector<8x128xf32>
      %594 = arith.maximumf %593, %591 : vector<8x128xf32>
      %595 = vector.broadcast %cst_114 : f32 to vector<8x128xf32>
      %596 = arith.minimumf %595, %594 : vector<8x128xf32>
      %cst_115 = arith.constant 1.000000e-07 : f32
      %cst_116 = arith.constant 0.99999988 : f32
      %597 = vector.broadcast %cst_115 : f32 to vector<8x128xf32>
      %598 = arith.maximumf %597, %592 : vector<8x128xf32>
      %599 = vector.broadcast %cst_116 : f32 to vector<8x128xf32>
      %600 = arith.minimumf %599, %598 : vector<8x128xf32>
      %601 = arith.mulf %589, %531 : vector<8x128xf32>
      %602 = arith.addf %519, %601 : vector<8x128xf32>
      %603 = arith.mulf %584, %602 : vector<8x128xf32>
      %604 = arith.mulf %567, %584 : vector<8x128xf32>
      %cst_117 = arith.constant 1.000000e+00 : f32
      %605 = vector.broadcast %cst_117 : f32 to vector<8x128xf32>
      %606 = arith.subf %605, %604 : vector<8x128xf32>
      %607 = arith.mulf %519, %588 : vector<8x128xf32>
      %cst_118 = arith.constant 1.000000e+00 : f32
      %608 = vector.broadcast %cst_118 : f32 to vector<8x128xf32>
      %609 = arith.subf %608, %607 : vector<8x128xf32>
      %610 = arith.mulf %590, %579 : vector<8x128xf32>
      %611 = arith.subf %567, %610 : vector<8x128xf32>
      %612 = arith.mulf %588, %611 : vector<8x128xf32>
      %613 = arith.cmpf oeq, %591, %596 : vector<8x128xf32>
      %614 = arith.cmpf oeq, %592, %600 : vector<8x128xf32>
      %cst_119 = arith.constant 0.000000e+00 : f32
      %615 = vector.broadcast %cst_119 : f32 to vector<8x128xf32>
      %616 = arith.select %613, %603, %615 : vector<8x128xi1>, vector<8x128xf32>
      %cst_120 = arith.constant 1.000000e+00 : f32
      %617 = vector.broadcast %cst_120 : f32 to vector<8x128xf32>
      %618 = arith.subf %616, %617 : vector<8x128xf32>
      %619 = arith.select %613, %606, %615 : vector<8x128xi1>, vector<8x128xf32>
      %620 = arith.select %614, %609, %615 : vector<8x128xi1>, vector<8x128xf32>
      %621 = arith.select %614, %612, %615 : vector<8x128xi1>, vector<8x128xf32>
      %cst_121 = arith.constant 1.000000e+00 : f32
      %622 = vector.broadcast %cst_121 : f32 to vector<8x128xf32>
      %623 = arith.subf %621, %622 : vector<8x128xf32>
      %624 = arith.subf %596, %481 : vector<8x128xf32>
      %625 = arith.subf %600, %482 : vector<8x128xf32>
      %626 = arith.mulf %618, %623 : vector<8x128xf32>
      %627 = arith.mulf %619, %620 : vector<8x128xf32>
      %628 = arith.subf %626, %627 : vector<8x128xf32>
      %629 = math.absf %628 : vector<8x128xf32>
      %cst_122 = arith.constant 0.000000e+00 : f32
      %630 = vector.broadcast %cst_122 : f32 to vector<8x128xf32>
      %631 = arith.cmpf ogt, %629, %630 : vector<8x128xf32>
      %cst_123 = arith.constant 1.000000e-30 : f32
      %632 = vector.broadcast %cst_123 : f32 to vector<8x128xf32>
      %633 = arith.select %631, %628, %632 : vector<8x128xi1>, vector<8x128xf32>
      %634 = tpu.reciprocal %633 {approx = true} : vector<8x128xf32> -> vector<8x128xf32>
      %635 = arith.mulf %623, %624 : vector<8x128xf32>
      %636 = arith.mulf %619, %625 : vector<8x128xf32>
      %637 = arith.subf %635, %636 : vector<8x128xf32>
      %638 = arith.mulf %637, %634 : vector<8x128xf32>
      %639 = arith.subf %481, %638 : vector<8x128xf32>
      %640 = arith.mulf %618, %625 : vector<8x128xf32>
      %641 = arith.mulf %620, %624 : vector<8x128xf32>
      %642 = arith.subf %640, %641 : vector<8x128xf32>
      %643 = arith.mulf %642, %634 : vector<8x128xf32>
      %644 = arith.subf %482, %643 : vector<8x128xf32>
      %cst_124 = arith.constant 1.000000e-07 : f32
      %645 = vector.broadcast %cst_124 : f32 to vector<8x128xf32>
      %646 = arith.maximumf %639, %645 : vector<8x128xf32>
      %cst_125 = arith.constant 0.99999988 : f32
      %647 = vector.broadcast %cst_125 : f32 to vector<8x128xf32>
      %648 = arith.minimumf %644, %647 : vector<8x128xf32>
      %cst_126 = arith.constant 0.99999988 : f32
      %649 = vector.broadcast %cst_126 : f32 to vector<8x128xf32>
      %650 = arith.minimumf %646, %649 : vector<8x128xf32>
      %cst_127 = arith.constant 1.000000e-07 : f32
      %651 = vector.broadcast %cst_127 : f32 to vector<8x128xf32>
      %652 = arith.maximumf %648, %651 : vector<8x128xf32>
      %653 = arith.subf %650, %481 : vector<8x128xf32>
      %654 = math.absf %653 : vector<8x128xf32>
      %655 = arith.subf %652, %482 : vector<8x128xf32>
      %656 = math.absf %655 : vector<8x128xf32>
      %657 = arith.minimumf %654, %656 : vector<8x128xf32>
      %cst_128 = arith.constant 9.99999997E-7 : f32
      %658 = vector.broadcast %cst_128 : f32 to vector<8x128xf32>
      %659 = arith.cmpf ogt, %483, %658 : vector<8x128xf32>
      %660 = arith.select %659, %650, %481 : vector<8x128xi1>, vector<8x128xf32>
      %661 = arith.select %659, %652, %482 : vector<8x128xi1>, vector<8x128xf32>
      %662 = arith.select %659, %657, %483 : vector<8x128xi1>, vector<8x128xf32>
      %cst_129 = arith.constant 1.000000e+00 : f32
      %663 = vector.broadcast %cst_129 : f32 to vector<8x128xf32>
      %664 = arith.subf %663, %660 : vector<8x128xf32>
      %cst_130 = arith.constant 2.000000e+00 : f32
      %665 = vector.broadcast %cst_130 : f32 to vector<8x128xf32>
      %666 = arith.mulf %665, %660 : vector<8x128xf32>
      %cst_131 = arith.constant 1.000000e+00 : f32
      %667 = vector.broadcast %cst_131 : f32 to vector<8x128xf32>
      %668 = arith.subf %667, %666 : vector<8x128xf32>
      %669 = arith.mulf %660, %664 : vector<8x128xf32>
      %670 = math.log %660 : vector<8x128xf32>
      %671 = math.log %664 : vector<8x128xf32>
      %672 = arith.mulf %16, %668 : vector<8x128xf32>
      %673 = arith.addf %14, %672 : vector<8x128xf32>
      %674 = arith.mulf %668, %673 : vector<8x128xf32>
      %675 = arith.addf %3, %674 : vector<8x128xf32>
      %676 = arith.mulf %7, %668 : vector<8x128xf32>
      %677 = arith.addf %5, %676 : vector<8x128xf32>
      %678 = arith.mulf %668, %677 : vector<8x128xf32>
      %679 = arith.addf %3, %678 : vector<8x128xf32>
      %680 = arith.mulf %668, %679 : vector<8x128xf32>
      %681 = arith.addf %1, %680 : vector<8x128xf32>
      %682 = arith.mulf %9, %660 : vector<8x128xf32>
      %683 = arith.mulf %660, %670 : vector<8x128xf32>
      %684 = arith.mulf %664, %671 : vector<8x128xf32>
      %685 = arith.addf %683, %684 : vector<8x128xf32>
      %686 = arith.mulf %12, %685 : vector<8x128xf32>
      %687 = arith.addf %682, %686 : vector<8x128xf32>
      %688 = arith.mulf %669, %681 : vector<8x128xf32>
      %689 = arith.addf %687, %688 : vector<8x128xf32>
      %690 = arith.subf %670, %671 : vector<8x128xf32>
      %691 = arith.mulf %12, %690 : vector<8x128xf32>
      %692 = arith.addf %9, %691 : vector<8x128xf32>
      %693 = arith.mulf %668, %681 : vector<8x128xf32>
      %694 = arith.addf %692, %693 : vector<8x128xf32>
      %cst_132 = arith.constant 2.000000e+00 : f32
      %695 = vector.broadcast %cst_132 : f32 to vector<8x128xf32>
      %696 = arith.mulf %695, %669 : vector<8x128xf32>
      %697 = arith.mulf %696, %675 : vector<8x128xf32>
      %698 = arith.subf %694, %697 : vector<8x128xf32>
      %699 = arith.addf %673, %672 : vector<8x128xf32>
      %700 = tpu.reciprocal %669 {approx = true} : vector<8x128xf32> -> vector<8x128xf32>
      %701 = arith.mulf %12, %700 : vector<8x128xf32>
      %702 = arith.mulf %668, %675 : vector<8x128xf32>
      %703 = arith.mulf %669, %699 : vector<8x128xf32>
      %704 = arith.subf %702, %703 : vector<8x128xf32>
      %cst_133 = arith.constant 2.000000e+00 : f32
      %705 = vector.broadcast %cst_133 : f32 to vector<8x128xf32>
      %706 = arith.mulf %705, %704 : vector<8x128xf32>
      %707 = arith.addf %681, %706 : vector<8x128xf32>
      %cst_134 = arith.constant 2.000000e+00 : f32
      %708 = vector.broadcast %cst_134 : f32 to vector<8x128xf32>
      %709 = arith.mulf %708, %707 : vector<8x128xf32>
      %710 = arith.subf %701, %709 : vector<8x128xf32>
      %cst_135 = arith.constant 1.000000e+00 : f32
      %711 = vector.broadcast %cst_135 : f32 to vector<8x128xf32>
      %712 = arith.subf %711, %661 : vector<8x128xf32>
      %cst_136 = arith.constant 2.000000e+00 : f32
      %713 = vector.broadcast %cst_136 : f32 to vector<8x128xf32>
      %714 = arith.mulf %713, %661 : vector<8x128xf32>
      %cst_137 = arith.constant 1.000000e+00 : f32
      %715 = vector.broadcast %cst_137 : f32 to vector<8x128xf32>
      %716 = arith.subf %715, %714 : vector<8x128xf32>
      %717 = arith.mulf %661, %712 : vector<8x128xf32>
      %718 = math.log %661 : vector<8x128xf32>
      %719 = math.log %712 : vector<8x128xf32>
      %720 = arith.mulf %16, %716 : vector<8x128xf32>
      %721 = arith.addf %14, %720 : vector<8x128xf32>
      %722 = arith.mulf %716, %721 : vector<8x128xf32>
      %723 = arith.addf %3, %722 : vector<8x128xf32>
      %724 = arith.mulf %7, %716 : vector<8x128xf32>
      %725 = arith.addf %5, %724 : vector<8x128xf32>
      %726 = arith.mulf %716, %725 : vector<8x128xf32>
      %727 = arith.addf %3, %726 : vector<8x128xf32>
      %728 = arith.mulf %716, %727 : vector<8x128xf32>
      %729 = arith.addf %1, %728 : vector<8x128xf32>
      %730 = arith.mulf %9, %661 : vector<8x128xf32>
      %731 = arith.mulf %661, %718 : vector<8x128xf32>
      %732 = arith.mulf %712, %719 : vector<8x128xf32>
      %733 = arith.addf %731, %732 : vector<8x128xf32>
      %734 = arith.mulf %12, %733 : vector<8x128xf32>
      %735 = arith.addf %730, %734 : vector<8x128xf32>
      %736 = arith.mulf %717, %729 : vector<8x128xf32>
      %737 = arith.addf %735, %736 : vector<8x128xf32>
      %738 = arith.subf %718, %719 : vector<8x128xf32>
      %739 = arith.mulf %12, %738 : vector<8x128xf32>
      %740 = arith.addf %9, %739 : vector<8x128xf32>
      %741 = arith.mulf %716, %729 : vector<8x128xf32>
      %742 = arith.addf %740, %741 : vector<8x128xf32>
      %cst_138 = arith.constant 2.000000e+00 : f32
      %743 = vector.broadcast %cst_138 : f32 to vector<8x128xf32>
      %744 = arith.mulf %743, %717 : vector<8x128xf32>
      %745 = arith.mulf %744, %723 : vector<8x128xf32>
      %746 = arith.subf %742, %745 : vector<8x128xf32>
      %747 = arith.addf %721, %720 : vector<8x128xf32>
      %748 = tpu.reciprocal %717 {approx = true} : vector<8x128xf32> -> vector<8x128xf32>
      %749 = arith.mulf %12, %748 : vector<8x128xf32>
      %750 = arith.mulf %716, %723 : vector<8x128xf32>
      %751 = arith.mulf %717, %747 : vector<8x128xf32>
      %752 = arith.subf %750, %751 : vector<8x128xf32>
      %cst_139 = arith.constant 2.000000e+00 : f32
      %753 = vector.broadcast %cst_139 : f32 to vector<8x128xf32>
      %754 = arith.mulf %753, %752 : vector<8x128xf32>
      %755 = arith.addf %729, %754 : vector<8x128xf32>
      %cst_140 = arith.constant 2.000000e+00 : f32
      %756 = vector.broadcast %cst_140 : f32 to vector<8x128xf32>
      %757 = arith.mulf %756, %755 : vector<8x128xf32>
      %758 = arith.subf %749, %757 : vector<8x128xf32>
      %759 = arith.subf %737, %689 : vector<8x128xf32>
      %cst_141 = arith.constant 1.000000e-07 : f32
      %760 = vector.broadcast %cst_141 : f32 to vector<8x128xf32>
      %761 = arith.addf %698, %760 : vector<8x128xf32>
      %cst_142 = arith.constant 1.000000e+00 : f32
      %762 = vector.broadcast %cst_142 : f32 to vector<8x128xf32>
      %763 = arith.divf %762, %761 : vector<8x128xf32>
      %cst_143 = arith.constant 1.000000e-07 : f32
      %764 = vector.broadcast %cst_143 : f32 to vector<8x128xf32>
      %765 = arith.addf %746, %764 : vector<8x128xf32>
      %cst_144 = arith.constant 1.000000e+00 : f32
      %766 = vector.broadcast %cst_144 : f32 to vector<8x128xf32>
      %767 = arith.divf %766, %765 : vector<8x128xf32>
      %768 = arith.mulf %759, %763 : vector<8x128xf32>
      %769 = arith.mulf %759, %767 : vector<8x128xf32>
      %770 = arith.subf %661, %768 : vector<8x128xf32>
      %771 = arith.addf %660, %769 : vector<8x128xf32>
      %cst_145 = arith.constant 1.000000e-07 : f32
      %cst_146 = arith.constant 0.99999988 : f32
      %772 = vector.broadcast %cst_145 : f32 to vector<8x128xf32>
      %773 = arith.maximumf %772, %770 : vector<8x128xf32>
      %774 = vector.broadcast %cst_146 : f32 to vector<8x128xf32>
      %775 = arith.minimumf %774, %773 : vector<8x128xf32>
      %cst_147 = arith.constant 1.000000e-07 : f32
      %cst_148 = arith.constant 0.99999988 : f32
      %776 = vector.broadcast %cst_147 : f32 to vector<8x128xf32>
      %777 = arith.maximumf %776, %771 : vector<8x128xf32>
      %778 = vector.broadcast %cst_148 : f32 to vector<8x128xf32>
      %779 = arith.minimumf %778, %777 : vector<8x128xf32>
      %780 = arith.mulf %768, %710 : vector<8x128xf32>
      %781 = arith.addf %698, %780 : vector<8x128xf32>
      %782 = arith.mulf %763, %781 : vector<8x128xf32>
      %783 = arith.mulf %746, %763 : vector<8x128xf32>
      %cst_149 = arith.constant 1.000000e+00 : f32
      %784 = vector.broadcast %cst_149 : f32 to vector<8x128xf32>
      %785 = arith.subf %784, %783 : vector<8x128xf32>
      %786 = arith.mulf %698, %767 : vector<8x128xf32>
      %cst_150 = arith.constant 1.000000e+00 : f32
      %787 = vector.broadcast %cst_150 : f32 to vector<8x128xf32>
      %788 = arith.subf %787, %786 : vector<8x128xf32>
      %789 = arith.mulf %769, %758 : vector<8x128xf32>
      %790 = arith.subf %746, %789 : vector<8x128xf32>
      %791 = arith.mulf %767, %790 : vector<8x128xf32>
      %792 = arith.cmpf oeq, %770, %775 : vector<8x128xf32>
      %793 = arith.cmpf oeq, %771, %779 : vector<8x128xf32>
      %cst_151 = arith.constant 0.000000e+00 : f32
      %794 = vector.broadcast %cst_151 : f32 to vector<8x128xf32>
      %795 = arith.select %792, %782, %794 : vector<8x128xi1>, vector<8x128xf32>
      %cst_152 = arith.constant 1.000000e+00 : f32
      %796 = vector.broadcast %cst_152 : f32 to vector<8x128xf32>
      %797 = arith.subf %795, %796 : vector<8x128xf32>
      %798 = arith.select %792, %785, %794 : vector<8x128xi1>, vector<8x128xf32>
      %799 = arith.select %793, %788, %794 : vector<8x128xi1>, vector<8x128xf32>
      %800 = arith.select %793, %791, %794 : vector<8x128xi1>, vector<8x128xf32>
      %cst_153 = arith.constant 1.000000e+00 : f32
      %801 = vector.broadcast %cst_153 : f32 to vector<8x128xf32>
      %802 = arith.subf %800, %801 : vector<8x128xf32>
      %803 = arith.subf %775, %660 : vector<8x128xf32>
      %804 = arith.subf %779, %661 : vector<8x128xf32>
      %805 = arith.mulf %797, %802 : vector<8x128xf32>
      %806 = arith.mulf %798, %799 : vector<8x128xf32>
      %807 = arith.subf %805, %806 : vector<8x128xf32>
      %808 = math.absf %807 : vector<8x128xf32>
      %cst_154 = arith.constant 0.000000e+00 : f32
      %809 = vector.broadcast %cst_154 : f32 to vector<8x128xf32>
      %810 = arith.cmpf ogt, %808, %809 : vector<8x128xf32>
      %cst_155 = arith.constant 1.000000e-30 : f32
      %811 = vector.broadcast %cst_155 : f32 to vector<8x128xf32>
      %812 = arith.select %810, %807, %811 : vector<8x128xi1>, vector<8x128xf32>
      %813 = tpu.reciprocal %812 {approx = true} : vector<8x128xf32> -> vector<8x128xf32>
      %814 = arith.mulf %802, %803 : vector<8x128xf32>
      %815 = arith.mulf %798, %804 : vector<8x128xf32>
      %816 = arith.subf %814, %815 : vector<8x128xf32>
      %817 = arith.mulf %816, %813 : vector<8x128xf32>
      %818 = arith.subf %660, %817 : vector<8x128xf32>
      %819 = arith.mulf %797, %804 : vector<8x128xf32>
      %820 = arith.mulf %799, %803 : vector<8x128xf32>
      %821 = arith.subf %819, %820 : vector<8x128xf32>
      %822 = arith.mulf %821, %813 : vector<8x128xf32>
      %823 = arith.subf %661, %822 : vector<8x128xf32>
      %cst_156 = arith.constant 1.000000e-07 : f32
      %824 = vector.broadcast %cst_156 : f32 to vector<8x128xf32>
      %825 = arith.maximumf %818, %824 : vector<8x128xf32>
      %cst_157 = arith.constant 0.99999988 : f32
      %826 = vector.broadcast %cst_157 : f32 to vector<8x128xf32>
      %827 = arith.minimumf %823, %826 : vector<8x128xf32>
      %cst_158 = arith.constant 0.99999988 : f32
      %828 = vector.broadcast %cst_158 : f32 to vector<8x128xf32>
      %829 = arith.minimumf %825, %828 : vector<8x128xf32>
      %cst_159 = arith.constant 1.000000e-07 : f32
      %830 = vector.broadcast %cst_159 : f32 to vector<8x128xf32>
      %831 = arith.maximumf %827, %830 : vector<8x128xf32>
      %832 = arith.subf %829, %660 : vector<8x128xf32>
      %833 = math.absf %832 : vector<8x128xf32>
      %834 = arith.subf %831, %661 : vector<8x128xf32>
      %835 = math.absf %834 : vector<8x128xf32>
      %836 = arith.minimumf %833, %835 : vector<8x128xf32>
      %cst_160 = arith.constant 9.99999997E-7 : f32
      %837 = vector.broadcast %cst_160 : f32 to vector<8x128xf32>
      %838 = arith.cmpf ogt, %662, %837 : vector<8x128xf32>
      %839 = arith.select %838, %829, %660 : vector<8x128xi1>, vector<8x128xf32>
      %840 = arith.select %838, %831, %661 : vector<8x128xi1>, vector<8x128xf32>
      %841 = arith.select %838, %836, %662 : vector<8x128xi1>, vector<8x128xf32>
      %cst_161 = arith.constant 1.000000e+00 : f32
      %842 = vector.broadcast %cst_161 : f32 to vector<8x128xf32>
      %843 = arith.subf %842, %839 : vector<8x128xf32>
      %cst_162 = arith.constant 2.000000e+00 : f32
      %844 = vector.broadcast %cst_162 : f32 to vector<8x128xf32>
      %845 = arith.mulf %844, %839 : vector<8x128xf32>
      %cst_163 = arith.constant 1.000000e+00 : f32
      %846 = vector.broadcast %cst_163 : f32 to vector<8x128xf32>
      %847 = arith.subf %846, %845 : vector<8x128xf32>
      %848 = arith.mulf %839, %843 : vector<8x128xf32>
      %849 = math.log %839 : vector<8x128xf32>
      %850 = math.log %843 : vector<8x128xf32>
      %851 = arith.mulf %16, %847 : vector<8x128xf32>
      %852 = arith.addf %14, %851 : vector<8x128xf32>
      %853 = arith.mulf %847, %852 : vector<8x128xf32>
      %854 = arith.addf %3, %853 : vector<8x128xf32>
      %855 = arith.mulf %7, %847 : vector<8x128xf32>
      %856 = arith.addf %5, %855 : vector<8x128xf32>
      %857 = arith.mulf %847, %856 : vector<8x128xf32>
      %858 = arith.addf %3, %857 : vector<8x128xf32>
      %859 = arith.mulf %847, %858 : vector<8x128xf32>
      %860 = arith.addf %1, %859 : vector<8x128xf32>
      %861 = arith.mulf %9, %839 : vector<8x128xf32>
      %862 = arith.mulf %839, %849 : vector<8x128xf32>
      %863 = arith.mulf %843, %850 : vector<8x128xf32>
      %864 = arith.addf %862, %863 : vector<8x128xf32>
      %865 = arith.mulf %12, %864 : vector<8x128xf32>
      %866 = arith.addf %861, %865 : vector<8x128xf32>
      %867 = arith.mulf %848, %860 : vector<8x128xf32>
      %868 = arith.addf %866, %867 : vector<8x128xf32>
      %869 = arith.subf %849, %850 : vector<8x128xf32>
      %870 = arith.mulf %12, %869 : vector<8x128xf32>
      %871 = arith.addf %9, %870 : vector<8x128xf32>
      %872 = arith.mulf %847, %860 : vector<8x128xf32>
      %873 = arith.addf %871, %872 : vector<8x128xf32>
      %cst_164 = arith.constant 2.000000e+00 : f32
      %874 = vector.broadcast %cst_164 : f32 to vector<8x128xf32>
      %875 = arith.mulf %874, %848 : vector<8x128xf32>
      %876 = arith.mulf %875, %854 : vector<8x128xf32>
      %877 = arith.subf %873, %876 : vector<8x128xf32>
      %878 = arith.addf %852, %851 : vector<8x128xf32>
      %879 = tpu.reciprocal %848 {approx = true} : vector<8x128xf32> -> vector<8x128xf32>
      %880 = arith.mulf %12, %879 : vector<8x128xf32>
      %881 = arith.mulf %847, %854 : vector<8x128xf32>
      %882 = arith.mulf %848, %878 : vector<8x128xf32>
      %883 = arith.subf %881, %882 : vector<8x128xf32>
      %cst_165 = arith.constant 2.000000e+00 : f32
      %884 = vector.broadcast %cst_165 : f32 to vector<8x128xf32>
      %885 = arith.mulf %884, %883 : vector<8x128xf32>
      %886 = arith.addf %860, %885 : vector<8x128xf32>
      %cst_166 = arith.constant 2.000000e+00 : f32
      %887 = vector.broadcast %cst_166 : f32 to vector<8x128xf32>
      %888 = arith.mulf %887, %886 : vector<8x128xf32>
      %889 = arith.subf %880, %888 : vector<8x128xf32>
      %cst_167 = arith.constant 1.000000e+00 : f32
      %890 = vector.broadcast %cst_167 : f32 to vector<8x128xf32>
      %891 = arith.subf %890, %840 : vector<8x128xf32>
      %cst_168 = arith.constant 2.000000e+00 : f32
      %892 = vector.broadcast %cst_168 : f32 to vector<8x128xf32>
      %893 = arith.mulf %892, %840 : vector<8x128xf32>
      %cst_169 = arith.constant 1.000000e+00 : f32
      %894 = vector.broadcast %cst_169 : f32 to vector<8x128xf32>
      %895 = arith.subf %894, %893 : vector<8x128xf32>
      %896 = arith.mulf %840, %891 : vector<8x128xf32>
      %897 = math.log %840 : vector<8x128xf32>
      %898 = math.log %891 : vector<8x128xf32>
      %899 = arith.mulf %16, %895 : vector<8x128xf32>
      %900 = arith.addf %14, %899 : vector<8x128xf32>
      %901 = arith.mulf %895, %900 : vector<8x128xf32>
      %902 = arith.addf %3, %901 : vector<8x128xf32>
      %903 = arith.mulf %7, %895 : vector<8x128xf32>
      %904 = arith.addf %5, %903 : vector<8x128xf32>
      %905 = arith.mulf %895, %904 : vector<8x128xf32>
      %906 = arith.addf %3, %905 : vector<8x128xf32>
      %907 = arith.mulf %895, %906 : vector<8x128xf32>
      %908 = arith.addf %1, %907 : vector<8x128xf32>
      %909 = arith.mulf %9, %840 : vector<8x128xf32>
      %910 = arith.mulf %840, %897 : vector<8x128xf32>
      %911 = arith.mulf %891, %898 : vector<8x128xf32>
      %912 = arith.addf %910, %911 : vector<8x128xf32>
      %913 = arith.mulf %12, %912 : vector<8x128xf32>
      %914 = arith.addf %909, %913 : vector<8x128xf32>
      %915 = arith.mulf %896, %908 : vector<8x128xf32>
      %916 = arith.addf %914, %915 : vector<8x128xf32>
      %917 = arith.subf %897, %898 : vector<8x128xf32>
      %918 = arith.mulf %12, %917 : vector<8x128xf32>
      %919 = arith.addf %9, %918 : vector<8x128xf32>
      %920 = arith.mulf %895, %908 : vector<8x128xf32>
      %921 = arith.addf %919, %920 : vector<8x128xf32>
      %cst_170 = arith.constant 2.000000e+00 : f32
      %922 = vector.broadcast %cst_170 : f32 to vector<8x128xf32>
      %923 = arith.mulf %922, %896 : vector<8x128xf32>
      %924 = arith.mulf %923, %902 : vector<8x128xf32>
      %925 = arith.subf %921, %924 : vector<8x128xf32>
      %926 = arith.addf %900, %899 : vector<8x128xf32>
      %927 = tpu.reciprocal %896 {approx = true} : vector<8x128xf32> -> vector<8x128xf32>
      %928 = arith.mulf %12, %927 : vector<8x128xf32>
      %929 = arith.mulf %895, %902 : vector<8x128xf32>
      %930 = arith.mulf %896, %926 : vector<8x128xf32>
      %931 = arith.subf %929, %930 : vector<8x128xf32>
      %cst_171 = arith.constant 2.000000e+00 : f32
      %932 = vector.broadcast %cst_171 : f32 to vector<8x128xf32>
      %933 = arith.mulf %932, %931 : vector<8x128xf32>
      %934 = arith.addf %908, %933 : vector<8x128xf32>
      %cst_172 = arith.constant 2.000000e+00 : f32
      %935 = vector.broadcast %cst_172 : f32 to vector<8x128xf32>
      %936 = arith.mulf %935, %934 : vector<8x128xf32>
      %937 = arith.subf %928, %936 : vector<8x128xf32>
      %938 = arith.subf %916, %868 : vector<8x128xf32>
      %cst_173 = arith.constant 1.000000e-07 : f32
      %939 = vector.broadcast %cst_173 : f32 to vector<8x128xf32>
      %940 = arith.addf %877, %939 : vector<8x128xf32>
      %cst_174 = arith.constant 1.000000e+00 : f32
      %941 = vector.broadcast %cst_174 : f32 to vector<8x128xf32>
      %942 = arith.divf %941, %940 : vector<8x128xf32>
      %cst_175 = arith.constant 1.000000e-07 : f32
      %943 = vector.broadcast %cst_175 : f32 to vector<8x128xf32>
      %944 = arith.addf %925, %943 : vector<8x128xf32>
      %cst_176 = arith.constant 1.000000e+00 : f32
      %945 = vector.broadcast %cst_176 : f32 to vector<8x128xf32>
      %946 = arith.divf %945, %944 : vector<8x128xf32>
      %947 = arith.mulf %938, %942 : vector<8x128xf32>
      %948 = arith.mulf %938, %946 : vector<8x128xf32>
      %949 = arith.subf %840, %947 : vector<8x128xf32>
      %950 = arith.addf %839, %948 : vector<8x128xf32>
      %cst_177 = arith.constant 1.000000e-07 : f32
      %cst_178 = arith.constant 0.99999988 : f32
      %951 = vector.broadcast %cst_177 : f32 to vector<8x128xf32>
      %952 = arith.maximumf %951, %949 : vector<8x128xf32>
      %953 = vector.broadcast %cst_178 : f32 to vector<8x128xf32>
      %954 = arith.minimumf %953, %952 : vector<8x128xf32>
      %cst_179 = arith.constant 1.000000e-07 : f32
      %cst_180 = arith.constant 0.99999988 : f32
      %955 = vector.broadcast %cst_179 : f32 to vector<8x128xf32>
      %956 = arith.maximumf %955, %950 : vector<8x128xf32>
      %957 = vector.broadcast %cst_180 : f32 to vector<8x128xf32>
      %958 = arith.minimumf %957, %956 : vector<8x128xf32>
      %959 = arith.mulf %947, %889 : vector<8x128xf32>
      %960 = arith.addf %877, %959 : vector<8x128xf32>
      %961 = arith.mulf %942, %960 : vector<8x128xf32>
      %962 = arith.mulf %925, %942 : vector<8x128xf32>
      %cst_181 = arith.constant 1.000000e+00 : f32
      %963 = vector.broadcast %cst_181 : f32 to vector<8x128xf32>
      %964 = arith.subf %963, %962 : vector<8x128xf32>
      %965 = arith.mulf %877, %946 : vector<8x128xf32>
      %cst_182 = arith.constant 1.000000e+00 : f32
      %966 = vector.broadcast %cst_182 : f32 to vector<8x128xf32>
      %967 = arith.subf %966, %965 : vector<8x128xf32>
      %968 = arith.mulf %948, %937 : vector<8x128xf32>
      %969 = arith.subf %925, %968 : vector<8x128xf32>
      %970 = arith.mulf %946, %969 : vector<8x128xf32>
      %971 = arith.cmpf oeq, %949, %954 : vector<8x128xf32>
      %972 = arith.cmpf oeq, %950, %958 : vector<8x128xf32>
      %cst_183 = arith.constant 0.000000e+00 : f32
      %973 = vector.broadcast %cst_183 : f32 to vector<8x128xf32>
      %974 = arith.select %971, %961, %973 : vector<8x128xi1>, vector<8x128xf32>
      %cst_184 = arith.constant 1.000000e+00 : f32
      %975 = vector.broadcast %cst_184 : f32 to vector<8x128xf32>
      %976 = arith.subf %974, %975 : vector<8x128xf32>
      %977 = arith.select %971, %964, %973 : vector<8x128xi1>, vector<8x128xf32>
      %978 = arith.select %972, %967, %973 : vector<8x128xi1>, vector<8x128xf32>
      %979 = arith.select %972, %970, %973 : vector<8x128xi1>, vector<8x128xf32>
      %cst_185 = arith.constant 1.000000e+00 : f32
      %980 = vector.broadcast %cst_185 : f32 to vector<8x128xf32>
      %981 = arith.subf %979, %980 : vector<8x128xf32>
      %982 = arith.subf %954, %839 : vector<8x128xf32>
      %983 = arith.subf %958, %840 : vector<8x128xf32>
      %984 = arith.mulf %976, %981 : vector<8x128xf32>
      %985 = arith.mulf %977, %978 : vector<8x128xf32>
      %986 = arith.subf %984, %985 : vector<8x128xf32>
      %987 = math.absf %986 : vector<8x128xf32>
      %cst_186 = arith.constant 0.000000e+00 : f32
      %988 = vector.broadcast %cst_186 : f32 to vector<8x128xf32>
      %989 = arith.cmpf ogt, %987, %988 : vector<8x128xf32>
      %cst_187 = arith.constant 1.000000e-30 : f32
      %990 = vector.broadcast %cst_187 : f32 to vector<8x128xf32>
      %991 = arith.select %989, %986, %990 : vector<8x128xi1>, vector<8x128xf32>
      %992 = tpu.reciprocal %991 {approx = true} : vector<8x128xf32> -> vector<8x128xf32>
      %993 = arith.mulf %981, %982 : vector<8x128xf32>
      %994 = arith.mulf %977, %983 : vector<8x128xf32>
      %995 = arith.subf %993, %994 : vector<8x128xf32>
      %996 = arith.mulf %995, %992 : vector<8x128xf32>
      %997 = arith.subf %839, %996 : vector<8x128xf32>
      %998 = arith.mulf %976, %983 : vector<8x128xf32>
      %999 = arith.mulf %978, %982 : vector<8x128xf32>
      %1000 = arith.subf %998, %999 : vector<8x128xf32>
      %1001 = arith.mulf %1000, %992 : vector<8x128xf32>
      %1002 = arith.subf %840, %1001 : vector<8x128xf32>
      %cst_188 = arith.constant 1.000000e-07 : f32
      %1003 = vector.broadcast %cst_188 : f32 to vector<8x128xf32>
      %1004 = arith.maximumf %997, %1003 : vector<8x128xf32>
      %cst_189 = arith.constant 0.99999988 : f32
      %1005 = vector.broadcast %cst_189 : f32 to vector<8x128xf32>
      %1006 = arith.minimumf %1002, %1005 : vector<8x128xf32>
      %cst_190 = arith.constant 0.99999988 : f32
      %1007 = vector.broadcast %cst_190 : f32 to vector<8x128xf32>
      %1008 = arith.minimumf %1004, %1007 : vector<8x128xf32>
      %cst_191 = arith.constant 1.000000e-07 : f32
      %1009 = vector.broadcast %cst_191 : f32 to vector<8x128xf32>
      %1010 = arith.maximumf %1006, %1009 : vector<8x128xf32>
      %1011 = arith.subf %1008, %839 : vector<8x128xf32>
      %1012 = math.absf %1011 : vector<8x128xf32>
      %1013 = arith.subf %1010, %840 : vector<8x128xf32>
      %1014 = math.absf %1013 : vector<8x128xf32>
      %1015 = arith.minimumf %1012, %1014 : vector<8x128xf32>
      %cst_192 = arith.constant 9.99999997E-7 : f32
      %1016 = vector.broadcast %cst_192 : f32 to vector<8x128xf32>
      %1017 = arith.cmpf ogt, %841, %1016 : vector<8x128xf32>
      %1018 = arith.select %1017, %1008, %839 : vector<8x128xi1>, vector<8x128xf32>
      %1019 = arith.select %1017, %1010, %840 : vector<8x128xi1>, vector<8x128xf32>
      %1020 = arith.select %1017, %1015, %841 : vector<8x128xi1>, vector<8x128xf32>
      %cst_193 = arith.constant 1.000000e+00 : f32
      %1021 = vector.broadcast %cst_193 : f32 to vector<8x128xf32>
      %1022 = arith.subf %1021, %1018 : vector<8x128xf32>
      %cst_194 = arith.constant 2.000000e+00 : f32
      %1023 = vector.broadcast %cst_194 : f32 to vector<8x128xf32>
      %1024 = arith.mulf %1023, %1018 : vector<8x128xf32>
      %cst_195 = arith.constant 1.000000e+00 : f32
      %1025 = vector.broadcast %cst_195 : f32 to vector<8x128xf32>
      %1026 = arith.subf %1025, %1024 : vector<8x128xf32>
      %1027 = arith.mulf %1018, %1022 : vector<8x128xf32>
      %1028 = math.log %1018 : vector<8x128xf32>
      %1029 = math.log %1022 : vector<8x128xf32>
      %1030 = arith.mulf %16, %1026 : vector<8x128xf32>
      %1031 = arith.addf %14, %1030 : vector<8x128xf32>
      %1032 = arith.mulf %1026, %1031 : vector<8x128xf32>
      %1033 = arith.addf %3, %1032 : vector<8x128xf32>
      %1034 = arith.mulf %7, %1026 : vector<8x128xf32>
      %1035 = arith.addf %5, %1034 : vector<8x128xf32>
      %1036 = arith.mulf %1026, %1035 : vector<8x128xf32>
      %1037 = arith.addf %3, %1036 : vector<8x128xf32>
      %1038 = arith.mulf %1026, %1037 : vector<8x128xf32>
      %1039 = arith.addf %1, %1038 : vector<8x128xf32>
      %1040 = arith.mulf %9, %1018 : vector<8x128xf32>
      %1041 = arith.mulf %1018, %1028 : vector<8x128xf32>
      %1042 = arith.mulf %1022, %1029 : vector<8x128xf32>
      %1043 = arith.addf %1041, %1042 : vector<8x128xf32>
      %1044 = arith.mulf %12, %1043 : vector<8x128xf32>
      %1045 = arith.addf %1040, %1044 : vector<8x128xf32>
      %1046 = arith.mulf %1027, %1039 : vector<8x128xf32>
      %1047 = arith.addf %1045, %1046 : vector<8x128xf32>
      %1048 = arith.subf %1028, %1029 : vector<8x128xf32>
      %1049 = arith.mulf %12, %1048 : vector<8x128xf32>
      %1050 = arith.addf %9, %1049 : vector<8x128xf32>
      %1051 = arith.mulf %1026, %1039 : vector<8x128xf32>
      %1052 = arith.addf %1050, %1051 : vector<8x128xf32>
      %cst_196 = arith.constant 2.000000e+00 : f32
      %1053 = vector.broadcast %cst_196 : f32 to vector<8x128xf32>
      %1054 = arith.mulf %1053, %1027 : vector<8x128xf32>
      %1055 = arith.mulf %1054, %1033 : vector<8x128xf32>
      %1056 = arith.subf %1052, %1055 : vector<8x128xf32>
      %1057 = arith.addf %1031, %1030 : vector<8x128xf32>
      %1058 = tpu.reciprocal %1027 {approx = true} : vector<8x128xf32> -> vector<8x128xf32>
      %1059 = arith.mulf %12, %1058 : vector<8x128xf32>
      %1060 = arith.mulf %1026, %1033 : vector<8x128xf32>
      %1061 = arith.mulf %1027, %1057 : vector<8x128xf32>
      %1062 = arith.subf %1060, %1061 : vector<8x128xf32>
      %cst_197 = arith.constant 2.000000e+00 : f32
      %1063 = vector.broadcast %cst_197 : f32 to vector<8x128xf32>
      %1064 = arith.mulf %1063, %1062 : vector<8x128xf32>
      %1065 = arith.addf %1039, %1064 : vector<8x128xf32>
      %cst_198 = arith.constant 2.000000e+00 : f32
      %1066 = vector.broadcast %cst_198 : f32 to vector<8x128xf32>
      %1067 = arith.mulf %1066, %1065 : vector<8x128xf32>
      %1068 = arith.subf %1059, %1067 : vector<8x128xf32>
      %cst_199 = arith.constant 1.000000e+00 : f32
      %1069 = vector.broadcast %cst_199 : f32 to vector<8x128xf32>
      %1070 = arith.subf %1069, %1019 : vector<8x128xf32>
      %cst_200 = arith.constant 2.000000e+00 : f32
      %1071 = vector.broadcast %cst_200 : f32 to vector<8x128xf32>
      %1072 = arith.mulf %1071, %1019 : vector<8x128xf32>
      %cst_201 = arith.constant 1.000000e+00 : f32
      %1073 = vector.broadcast %cst_201 : f32 to vector<8x128xf32>
      %1074 = arith.subf %1073, %1072 : vector<8x128xf32>
      %1075 = arith.mulf %1019, %1070 : vector<8x128xf32>
      %1076 = math.log %1019 : vector<8x128xf32>
      %1077 = math.log %1070 : vector<8x128xf32>
      %1078 = arith.mulf %16, %1074 : vector<8x128xf32>
      %1079 = arith.addf %14, %1078 : vector<8x128xf32>
      %1080 = arith.mulf %1074, %1079 : vector<8x128xf32>
      %1081 = arith.addf %3, %1080 : vector<8x128xf32>
      %1082 = arith.mulf %7, %1074 : vector<8x128xf32>
      %1083 = arith.addf %5, %1082 : vector<8x128xf32>
      %1084 = arith.mulf %1074, %1083 : vector<8x128xf32>
      %1085 = arith.addf %3, %1084 : vector<8x128xf32>
      %1086 = arith.mulf %1074, %1085 : vector<8x128xf32>
      %1087 = arith.addf %1, %1086 : vector<8x128xf32>
      %1088 = arith.mulf %9, %1019 : vector<8x128xf32>
      %1089 = arith.mulf %1019, %1076 : vector<8x128xf32>
      %1090 = arith.mulf %1070, %1077 : vector<8x128xf32>
      %1091 = arith.addf %1089, %1090 : vector<8x128xf32>
      %1092 = arith.mulf %12, %1091 : vector<8x128xf32>
      %1093 = arith.addf %1088, %1092 : vector<8x128xf32>
      %1094 = arith.mulf %1075, %1087 : vector<8x128xf32>
      %1095 = arith.addf %1093, %1094 : vector<8x128xf32>
      %1096 = arith.subf %1076, %1077 : vector<8x128xf32>
      %1097 = arith.mulf %12, %1096 : vector<8x128xf32>
      %1098 = arith.addf %9, %1097 : vector<8x128xf32>
      %1099 = arith.mulf %1074, %1087 : vector<8x128xf32>
      %1100 = arith.addf %1098, %1099 : vector<8x128xf32>
      %cst_202 = arith.constant 2.000000e+00 : f32
      %1101 = vector.broadcast %cst_202 : f32 to vector<8x128xf32>
      %1102 = arith.mulf %1101, %1075 : vector<8x128xf32>
      %1103 = arith.mulf %1102, %1081 : vector<8x128xf32>
      %1104 = arith.subf %1100, %1103 : vector<8x128xf32>
      %1105 = arith.addf %1079, %1078 : vector<8x128xf32>
      %1106 = tpu.reciprocal %1075 {approx = true} : vector<8x128xf32> -> vector<8x128xf32>
      %1107 = arith.mulf %12, %1106 : vector<8x128xf32>
      %1108 = arith.mulf %1074, %1081 : vector<8x128xf32>
      %1109 = arith.mulf %1075, %1105 : vector<8x128xf32>
      %1110 = arith.subf %1108, %1109 : vector<8x128xf32>
      %cst_203 = arith.constant 2.000000e+00 : f32
      %1111 = vector.broadcast %cst_203 : f32 to vector<8x128xf32>
      %1112 = arith.mulf %1111, %1110 : vector<8x128xf32>
      %1113 = arith.addf %1087, %1112 : vector<8x128xf32>
      %cst_204 = arith.constant 2.000000e+00 : f32
      %1114 = vector.broadcast %cst_204 : f32 to vector<8x128xf32>
      %1115 = arith.mulf %1114, %1113 : vector<8x128xf32>
      %1116 = arith.subf %1107, %1115 : vector<8x128xf32>
      %1117 = arith.subf %1095, %1047 : vector<8x128xf32>
      %cst_205 = arith.constant 1.000000e-07 : f32
      %1118 = vector.broadcast %cst_205 : f32 to vector<8x128xf32>
      %1119 = arith.addf %1056, %1118 : vector<8x128xf32>
      %cst_206 = arith.constant 1.000000e+00 : f32
      %1120 = vector.broadcast %cst_206 : f32 to vector<8x128xf32>
      %1121 = arith.divf %1120, %1119 : vector<8x128xf32>
      %cst_207 = arith.constant 1.000000e-07 : f32
      %1122 = vector.broadcast %cst_207 : f32 to vector<8x128xf32>
      %1123 = arith.addf %1104, %1122 : vector<8x128xf32>
      %cst_208 = arith.constant 1.000000e+00 : f32
      %1124 = vector.broadcast %cst_208 : f32 to vector<8x128xf32>
      %1125 = arith.divf %1124, %1123 : vector<8x128xf32>
      %1126 = arith.mulf %1117, %1121 : vector<8x128xf32>
      %1127 = arith.mulf %1117, %1125 : vector<8x128xf32>
      %1128 = arith.subf %1019, %1126 : vector<8x128xf32>
      %1129 = arith.addf %1018, %1127 : vector<8x128xf32>
      %cst_209 = arith.constant 1.000000e-07 : f32
      %cst_210 = arith.constant 0.99999988 : f32
      %1130 = vector.broadcast %cst_209 : f32 to vector<8x128xf32>
      %1131 = arith.maximumf %1130, %1128 : vector<8x128xf32>
      %1132 = vector.broadcast %cst_210 : f32 to vector<8x128xf32>
      %1133 = arith.minimumf %1132, %1131 : vector<8x128xf32>
      %cst_211 = arith.constant 1.000000e-07 : f32
      %cst_212 = arith.constant 0.99999988 : f32
      %1134 = vector.broadcast %cst_211 : f32 to vector<8x128xf32>
      %1135 = arith.maximumf %1134, %1129 : vector<8x128xf32>
      %1136 = vector.broadcast %cst_212 : f32 to vector<8x128xf32>
      %1137 = arith.minimumf %1136, %1135 : vector<8x128xf32>
      %1138 = arith.mulf %1126, %1068 : vector<8x128xf32>
      %1139 = arith.addf %1056, %1138 : vector<8x128xf32>
      %1140 = arith.mulf %1121, %1139 : vector<8x128xf32>
      %1141 = arith.mulf %1104, %1121 : vector<8x128xf32>
      %cst_213 = arith.constant 1.000000e+00 : f32
      %1142 = vector.broadcast %cst_213 : f32 to vector<8x128xf32>
      %1143 = arith.subf %1142, %1141 : vector<8x128xf32>
      %1144 = arith.mulf %1056, %1125 : vector<8x128xf32>
      %cst_214 = arith.constant 1.000000e+00 : f32
      %1145 = vector.broadcast %cst_214 : f32 to vector<8x128xf32>
      %1146 = arith.subf %1145, %1144 : vector<8x128xf32>
      %1147 = arith.mulf %1127, %1116 : vector<8x128xf32>
      %1148 = arith.subf %1104, %1147 : vector<8x128xf32>
      %1149 = arith.mulf %1125, %1148 : vector<8x128xf32>
      %1150 = arith.cmpf oeq, %1128, %1133 : vector<8x128xf32>
      %1151 = arith.cmpf oeq, %1129, %1137 : vector<8x128xf32>
      %cst_215 = arith.constant 0.000000e+00 : f32
      %1152 = vector.broadcast %cst_215 : f32 to vector<8x128xf32>
      %1153 = arith.select %1150, %1140, %1152 : vector<8x128xi1>, vector<8x128xf32>
      %cst_216 = arith.constant 1.000000e+00 : f32
      %1154 = vector.broadcast %cst_216 : f32 to vector<8x128xf32>
      %1155 = arith.subf %1153, %1154 : vector<8x128xf32>
      %1156 = arith.select %1150, %1143, %1152 : vector<8x128xi1>, vector<8x128xf32>
      %1157 = arith.select %1151, %1146, %1152 : vector<8x128xi1>, vector<8x128xf32>
      %1158 = arith.select %1151, %1149, %1152 : vector<8x128xi1>, vector<8x128xf32>
      %cst_217 = arith.constant 1.000000e+00 : f32
      %1159 = vector.broadcast %cst_217 : f32 to vector<8x128xf32>
      %1160 = arith.subf %1158, %1159 : vector<8x128xf32>
      %1161 = arith.subf %1133, %1018 : vector<8x128xf32>
      %1162 = arith.subf %1137, %1019 : vector<8x128xf32>
      %1163 = arith.mulf %1155, %1160 : vector<8x128xf32>
      %1164 = arith.mulf %1156, %1157 : vector<8x128xf32>
      %1165 = arith.subf %1163, %1164 : vector<8x128xf32>
      %1166 = math.absf %1165 : vector<8x128xf32>
      %cst_218 = arith.constant 0.000000e+00 : f32
      %1167 = vector.broadcast %cst_218 : f32 to vector<8x128xf32>
      %1168 = arith.cmpf ogt, %1166, %1167 : vector<8x128xf32>
      %cst_219 = arith.constant 1.000000e-30 : f32
      %1169 = vector.broadcast %cst_219 : f32 to vector<8x128xf32>
      %1170 = arith.select %1168, %1165, %1169 : vector<8x128xi1>, vector<8x128xf32>
      %1171 = tpu.reciprocal %1170 {approx = true} : vector<8x128xf32> -> vector<8x128xf32>
      %1172 = arith.mulf %1160, %1161 : vector<8x128xf32>
      %1173 = arith.mulf %1156, %1162 : vector<8x128xf32>
      %1174 = arith.subf %1172, %1173 : vector<8x128xf32>
      %1175 = arith.mulf %1174, %1171 : vector<8x128xf32>
      %1176 = arith.subf %1018, %1175 : vector<8x128xf32>
      %1177 = arith.mulf %1155, %1162 : vector<8x128xf32>
      %1178 = arith.mulf %1157, %1161 : vector<8x128xf32>
      %1179 = arith.subf %1177, %1178 : vector<8x128xf32>
      %1180 = arith.mulf %1179, %1171 : vector<8x128xf32>
      %1181 = arith.subf %1019, %1180 : vector<8x128xf32>
      %cst_220 = arith.constant 1.000000e-07 : f32
      %1182 = vector.broadcast %cst_220 : f32 to vector<8x128xf32>
      %1183 = arith.maximumf %1176, %1182 : vector<8x128xf32>
      %cst_221 = arith.constant 0.99999988 : f32
      %1184 = vector.broadcast %cst_221 : f32 to vector<8x128xf32>
      %1185 = arith.minimumf %1181, %1184 : vector<8x128xf32>
      %cst_222 = arith.constant 0.99999988 : f32
      %1186 = vector.broadcast %cst_222 : f32 to vector<8x128xf32>
      %1187 = arith.minimumf %1183, %1186 : vector<8x128xf32>
      %cst_223 = arith.constant 1.000000e-07 : f32
      %1188 = vector.broadcast %cst_223 : f32 to vector<8x128xf32>
      %1189 = arith.maximumf %1185, %1188 : vector<8x128xf32>
      %1190 = arith.subf %1187, %1018 : vector<8x128xf32>
      %1191 = math.absf %1190 : vector<8x128xf32>
      %1192 = arith.subf %1189, %1019 : vector<8x128xf32>
      %1193 = math.absf %1192 : vector<8x128xf32>
      %1194 = arith.minimumf %1191, %1193 : vector<8x128xf32>
      %cst_224 = arith.constant 9.99999997E-7 : f32
      %1195 = vector.broadcast %cst_224 : f32 to vector<8x128xf32>
      %1196 = arith.cmpf ogt, %1020, %1195 : vector<8x128xf32>
      %1197 = arith.select %1196, %1187, %1018 : vector<8x128xi1>, vector<8x128xf32>
      %1198 = arith.select %1196, %1189, %1019 : vector<8x128xi1>, vector<8x128xf32>
      %1199 = arith.select %1196, %1194, %1020 : vector<8x128xi1>, vector<8x128xf32>
      %cst_225 = arith.constant 1.000000e+00 : f32
      %1200 = vector.broadcast %cst_225 : f32 to vector<8x128xf32>
      %1201 = arith.subf %1200, %1197 : vector<8x128xf32>
      %cst_226 = arith.constant 2.000000e+00 : f32
      %1202 = vector.broadcast %cst_226 : f32 to vector<8x128xf32>
      %1203 = arith.mulf %1202, %1197 : vector<8x128xf32>
      %cst_227 = arith.constant 1.000000e+00 : f32
      %1204 = vector.broadcast %cst_227 : f32 to vector<8x128xf32>
      %1205 = arith.subf %1204, %1203 : vector<8x128xf32>
      %1206 = arith.mulf %1197, %1201 : vector<8x128xf32>
      %1207 = math.log %1197 : vector<8x128xf32>
      %1208 = math.log %1201 : vector<8x128xf32>
      %1209 = arith.mulf %16, %1205 : vector<8x128xf32>
      %1210 = arith.addf %14, %1209 : vector<8x128xf32>
      %1211 = arith.mulf %1205, %1210 : vector<8x128xf32>
      %1212 = arith.addf %3, %1211 : vector<8x128xf32>
      %1213 = arith.mulf %7, %1205 : vector<8x128xf32>
      %1214 = arith.addf %5, %1213 : vector<8x128xf32>
      %1215 = arith.mulf %1205, %1214 : vector<8x128xf32>
      %1216 = arith.addf %3, %1215 : vector<8x128xf32>
      %1217 = arith.mulf %1205, %1216 : vector<8x128xf32>
      %1218 = arith.addf %1, %1217 : vector<8x128xf32>
      %1219 = arith.mulf %9, %1197 : vector<8x128xf32>
      %1220 = arith.mulf %1197, %1207 : vector<8x128xf32>
      %1221 = arith.mulf %1201, %1208 : vector<8x128xf32>
      %1222 = arith.addf %1220, %1221 : vector<8x128xf32>
      %1223 = arith.mulf %12, %1222 : vector<8x128xf32>
      %1224 = arith.addf %1219, %1223 : vector<8x128xf32>
      %1225 = arith.mulf %1206, %1218 : vector<8x128xf32>
      %1226 = arith.addf %1224, %1225 : vector<8x128xf32>
      %1227 = arith.subf %1207, %1208 : vector<8x128xf32>
      %1228 = arith.mulf %12, %1227 : vector<8x128xf32>
      %1229 = arith.addf %9, %1228 : vector<8x128xf32>
      %1230 = arith.mulf %1205, %1218 : vector<8x128xf32>
      %1231 = arith.addf %1229, %1230 : vector<8x128xf32>
      %cst_228 = arith.constant 2.000000e+00 : f32
      %1232 = vector.broadcast %cst_228 : f32 to vector<8x128xf32>
      %1233 = arith.mulf %1232, %1206 : vector<8x128xf32>
      %1234 = arith.mulf %1233, %1212 : vector<8x128xf32>
      %1235 = arith.subf %1231, %1234 : vector<8x128xf32>
      %1236 = arith.addf %1210, %1209 : vector<8x128xf32>
      %1237 = tpu.reciprocal %1206 {approx = true} : vector<8x128xf32> -> vector<8x128xf32>
      %1238 = arith.mulf %12, %1237 : vector<8x128xf32>
      %1239 = arith.mulf %1205, %1212 : vector<8x128xf32>
      %1240 = arith.mulf %1206, %1236 : vector<8x128xf32>
      %1241 = arith.subf %1239, %1240 : vector<8x128xf32>
      %cst_229 = arith.constant 2.000000e+00 : f32
      %1242 = vector.broadcast %cst_229 : f32 to vector<8x128xf32>
      %1243 = arith.mulf %1242, %1241 : vector<8x128xf32>
      %1244 = arith.addf %1218, %1243 : vector<8x128xf32>
      %cst_230 = arith.constant 2.000000e+00 : f32
      %1245 = vector.broadcast %cst_230 : f32 to vector<8x128xf32>
      %1246 = arith.mulf %1245, %1244 : vector<8x128xf32>
      %1247 = arith.subf %1238, %1246 : vector<8x128xf32>
      %cst_231 = arith.constant 1.000000e+00 : f32
      %1248 = vector.broadcast %cst_231 : f32 to vector<8x128xf32>
      %1249 = arith.subf %1248, %1198 : vector<8x128xf32>
      %cst_232 = arith.constant 2.000000e+00 : f32
      %1250 = vector.broadcast %cst_232 : f32 to vector<8x128xf32>
      %1251 = arith.mulf %1250, %1198 : vector<8x128xf32>
      %cst_233 = arith.constant 1.000000e+00 : f32
      %1252 = vector.broadcast %cst_233 : f32 to vector<8x128xf32>
      %1253 = arith.subf %1252, %1251 : vector<8x128xf32>
      %1254 = arith.mulf %1198, %1249 : vector<8x128xf32>
      %1255 = math.log %1198 : vector<8x128xf32>
      %1256 = math.log %1249 : vector<8x128xf32>
      %1257 = arith.mulf %16, %1253 : vector<8x128xf32>
      %1258 = arith.addf %14, %1257 : vector<8x128xf32>
      %1259 = arith.mulf %1253, %1258 : vector<8x128xf32>
      %1260 = arith.addf %3, %1259 : vector<8x128xf32>
      %1261 = arith.mulf %7, %1253 : vector<8x128xf32>
      %1262 = arith.addf %5, %1261 : vector<8x128xf32>
      %1263 = arith.mulf %1253, %1262 : vector<8x128xf32>
      %1264 = arith.addf %3, %1263 : vector<8x128xf32>
      %1265 = arith.mulf %1253, %1264 : vector<8x128xf32>
      %1266 = arith.addf %1, %1265 : vector<8x128xf32>
      %1267 = arith.mulf %9, %1198 : vector<8x128xf32>
      %1268 = arith.mulf %1198, %1255 : vector<8x128xf32>
      %1269 = arith.mulf %1249, %1256 : vector<8x128xf32>
      %1270 = arith.addf %1268, %1269 : vector<8x128xf32>
      %1271 = arith.mulf %12, %1270 : vector<8x128xf32>
      %1272 = arith.addf %1267, %1271 : vector<8x128xf32>
      %1273 = arith.mulf %1254, %1266 : vector<8x128xf32>
      %1274 = arith.addf %1272, %1273 : vector<8x128xf32>
      %1275 = arith.subf %1255, %1256 : vector<8x128xf32>
      %1276 = arith.mulf %12, %1275 : vector<8x128xf32>
      %1277 = arith.addf %9, %1276 : vector<8x128xf32>
      %1278 = arith.mulf %1253, %1266 : vector<8x128xf32>
      %1279 = arith.addf %1277, %1278 : vector<8x128xf32>
      %cst_234 = arith.constant 2.000000e+00 : f32
      %1280 = vector.broadcast %cst_234 : f32 to vector<8x128xf32>
      %1281 = arith.mulf %1280, %1254 : vector<8x128xf32>
      %1282 = arith.mulf %1281, %1260 : vector<8x128xf32>
      %1283 = arith.subf %1279, %1282 : vector<8x128xf32>
      %1284 = arith.addf %1258, %1257 : vector<8x128xf32>
      %1285 = tpu.reciprocal %1254 {approx = true} : vector<8x128xf32> -> vector<8x128xf32>
      %1286 = arith.mulf %12, %1285 : vector<8x128xf32>
      %1287 = arith.mulf %1253, %1260 : vector<8x128xf32>
      %1288 = arith.mulf %1254, %1284 : vector<8x128xf32>
      %1289 = arith.subf %1287, %1288 : vector<8x128xf32>
      %cst_235 = arith.constant 2.000000e+00 : f32
      %1290 = vector.broadcast %cst_235 : f32 to vector<8x128xf32>
      %1291 = arith.mulf %1290, %1289 : vector<8x128xf32>
      %1292 = arith.addf %1266, %1291 : vector<8x128xf32>
      %cst_236 = arith.constant 2.000000e+00 : f32
      %1293 = vector.broadcast %cst_236 : f32 to vector<8x128xf32>
      %1294 = arith.mulf %1293, %1292 : vector<8x128xf32>
      %1295 = arith.subf %1286, %1294 : vector<8x128xf32>
      %1296 = arith.subf %1274, %1226 : vector<8x128xf32>
      %cst_237 = arith.constant 1.000000e-07 : f32
      %1297 = vector.broadcast %cst_237 : f32 to vector<8x128xf32>
      %1298 = arith.addf %1235, %1297 : vector<8x128xf32>
      %cst_238 = arith.constant 1.000000e+00 : f32
      %1299 = vector.broadcast %cst_238 : f32 to vector<8x128xf32>
      %1300 = arith.divf %1299, %1298 : vector<8x128xf32>
      %cst_239 = arith.constant 1.000000e-07 : f32
      %1301 = vector.broadcast %cst_239 : f32 to vector<8x128xf32>
      %1302 = arith.addf %1283, %1301 : vector<8x128xf32>
      %cst_240 = arith.constant 1.000000e+00 : f32
      %1303 = vector.broadcast %cst_240 : f32 to vector<8x128xf32>
      %1304 = arith.divf %1303, %1302 : vector<8x128xf32>
      %1305 = arith.mulf %1296, %1300 : vector<8x128xf32>
      %1306 = arith.mulf %1296, %1304 : vector<8x128xf32>
      %1307 = arith.subf %1198, %1305 : vector<8x128xf32>
      %1308 = arith.addf %1197, %1306 : vector<8x128xf32>
      %cst_241 = arith.constant 1.000000e-07 : f32
      %cst_242 = arith.constant 0.99999988 : f32
      %1309 = vector.broadcast %cst_241 : f32 to vector<8x128xf32>
      %1310 = arith.maximumf %1309, %1307 : vector<8x128xf32>
      %1311 = vector.broadcast %cst_242 : f32 to vector<8x128xf32>
      %1312 = arith.minimumf %1311, %1310 : vector<8x128xf32>
      %cst_243 = arith.constant 1.000000e-07 : f32
      %cst_244 = arith.constant 0.99999988 : f32
      %1313 = vector.broadcast %cst_243 : f32 to vector<8x128xf32>
      %1314 = arith.maximumf %1313, %1308 : vector<8x128xf32>
      %1315 = vector.broadcast %cst_244 : f32 to vector<8x128xf32>
      %1316 = arith.minimumf %1315, %1314 : vector<8x128xf32>
      %1317 = arith.mulf %1305, %1247 : vector<8x128xf32>
      %1318 = arith.addf %1235, %1317 : vector<8x128xf32>
      %1319 = arith.mulf %1300, %1318 : vector<8x128xf32>
      %1320 = arith.mulf %1283, %1300 : vector<8x128xf32>
      %cst_245 = arith.constant 1.000000e+00 : f32
      %1321 = vector.broadcast %cst_245 : f32 to vector<8x128xf32>
      %1322 = arith.subf %1321, %1320 : vector<8x128xf32>
      %1323 = arith.mulf %1235, %1304 : vector<8x128xf32>
      %cst_246 = arith.constant 1.000000e+00 : f32
      %1324 = vector.broadcast %cst_246 : f32 to vector<8x128xf32>
      %1325 = arith.subf %1324, %1323 : vector<8x128xf32>
      %1326 = arith.mulf %1306, %1295 : vector<8x128xf32>
      %1327 = arith.subf %1283, %1326 : vector<8x128xf32>
      %1328 = arith.mulf %1304, %1327 : vector<8x128xf32>
      %1329 = arith.cmpf oeq, %1307, %1312 : vector<8x128xf32>
      %1330 = arith.cmpf oeq, %1308, %1316 : vector<8x128xf32>
      %cst_247 = arith.constant 0.000000e+00 : f32
      %1331 = vector.broadcast %cst_247 : f32 to vector<8x128xf32>
      %1332 = arith.select %1329, %1319, %1331 : vector<8x128xi1>, vector<8x128xf32>
      %cst_248 = arith.constant 1.000000e+00 : f32
      %1333 = vector.broadcast %cst_248 : f32 to vector<8x128xf32>
      %1334 = arith.subf %1332, %1333 : vector<8x128xf32>
      %1335 = arith.select %1329, %1322, %1331 : vector<8x128xi1>, vector<8x128xf32>
      %1336 = arith.select %1330, %1325, %1331 : vector<8x128xi1>, vector<8x128xf32>
      %1337 = arith.select %1330, %1328, %1331 : vector<8x128xi1>, vector<8x128xf32>
      %cst_249 = arith.constant 1.000000e+00 : f32
      %1338 = vector.broadcast %cst_249 : f32 to vector<8x128xf32>
      %1339 = arith.subf %1337, %1338 : vector<8x128xf32>
      %1340 = arith.subf %1312, %1197 : vector<8x128xf32>
      %1341 = arith.subf %1316, %1198 : vector<8x128xf32>
      %1342 = arith.mulf %1334, %1339 : vector<8x128xf32>
      %1343 = arith.mulf %1335, %1336 : vector<8x128xf32>
      %1344 = arith.subf %1342, %1343 : vector<8x128xf32>
      %1345 = math.absf %1344 : vector<8x128xf32>
      %cst_250 = arith.constant 0.000000e+00 : f32
      %1346 = vector.broadcast %cst_250 : f32 to vector<8x128xf32>
      %1347 = arith.cmpf ogt, %1345, %1346 : vector<8x128xf32>
      %cst_251 = arith.constant 1.000000e-30 : f32
      %1348 = vector.broadcast %cst_251 : f32 to vector<8x128xf32>
      %1349 = arith.select %1347, %1344, %1348 : vector<8x128xi1>, vector<8x128xf32>
      %1350 = tpu.reciprocal %1349 {approx = true} : vector<8x128xf32> -> vector<8x128xf32>
      %1351 = arith.mulf %1339, %1340 : vector<8x128xf32>
      %1352 = arith.mulf %1335, %1341 : vector<8x128xf32>
      %1353 = arith.subf %1351, %1352 : vector<8x128xf32>
      %1354 = arith.mulf %1353, %1350 : vector<8x128xf32>
      %1355 = arith.subf %1197, %1354 : vector<8x128xf32>
      %1356 = arith.mulf %1334, %1341 : vector<8x128xf32>
      %1357 = arith.mulf %1336, %1340 : vector<8x128xf32>
      %1358 = arith.subf %1356, %1357 : vector<8x128xf32>
      %1359 = arith.mulf %1358, %1350 : vector<8x128xf32>
      %1360 = arith.subf %1198, %1359 : vector<8x128xf32>
      %cst_252 = arith.constant 1.000000e-07 : f32
      %1361 = vector.broadcast %cst_252 : f32 to vector<8x128xf32>
      %1362 = arith.maximumf %1355, %1361 : vector<8x128xf32>
      %cst_253 = arith.constant 0.99999988 : f32
      %1363 = vector.broadcast %cst_253 : f32 to vector<8x128xf32>
      %1364 = arith.minimumf %1360, %1363 : vector<8x128xf32>
      %cst_254 = arith.constant 0.99999988 : f32
      %1365 = vector.broadcast %cst_254 : f32 to vector<8x128xf32>
      %1366 = arith.minimumf %1362, %1365 : vector<8x128xf32>
      %cst_255 = arith.constant 1.000000e-07 : f32
      %1367 = vector.broadcast %cst_255 : f32 to vector<8x128xf32>
      %1368 = arith.maximumf %1364, %1367 : vector<8x128xf32>
      %1369 = arith.subf %1366, %1197 : vector<8x128xf32>
      %1370 = math.absf %1369 : vector<8x128xf32>
      %1371 = arith.subf %1368, %1198 : vector<8x128xf32>
      %1372 = math.absf %1371 : vector<8x128xf32>
      %1373 = arith.minimumf %1370, %1372 : vector<8x128xf32>
      %cst_256 = arith.constant 9.99999997E-7 : f32
      %1374 = vector.broadcast %cst_256 : f32 to vector<8x128xf32>
      %1375 = arith.cmpf ogt, %1199, %1374 : vector<8x128xf32>
      %1376 = arith.select %1375, %1366, %1197 : vector<8x128xi1>, vector<8x128xf32>
      %1377 = arith.select %1375, %1368, %1198 : vector<8x128xi1>, vector<8x128xf32>
      %1378 = arith.select %1375, %1373, %1199 : vector<8x128xi1>, vector<8x128xf32>
      %cst_257 = arith.constant 1.000000e+00 : f32
      %1379 = vector.broadcast %cst_257 : f32 to vector<8x128xf32>
      %1380 = arith.subf %1379, %1376 : vector<8x128xf32>
      %cst_258 = arith.constant 2.000000e+00 : f32
      %1381 = vector.broadcast %cst_258 : f32 to vector<8x128xf32>
      %1382 = arith.mulf %1381, %1376 : vector<8x128xf32>
      %cst_259 = arith.constant 1.000000e+00 : f32
      %1383 = vector.broadcast %cst_259 : f32 to vector<8x128xf32>
      %1384 = arith.subf %1383, %1382 : vector<8x128xf32>
      %1385 = arith.mulf %1376, %1380 : vector<8x128xf32>
      %1386 = math.log %1376 : vector<8x128xf32>
      %1387 = math.log %1380 : vector<8x128xf32>
      %1388 = arith.mulf %16, %1384 : vector<8x128xf32>
      %1389 = arith.addf %14, %1388 : vector<8x128xf32>
      %1390 = arith.mulf %1384, %1389 : vector<8x128xf32>
      %1391 = arith.addf %3, %1390 : vector<8x128xf32>
      %1392 = arith.mulf %7, %1384 : vector<8x128xf32>
      %1393 = arith.addf %5, %1392 : vector<8x128xf32>
      %1394 = arith.mulf %1384, %1393 : vector<8x128xf32>
      %1395 = arith.addf %3, %1394 : vector<8x128xf32>
      %1396 = arith.mulf %1384, %1395 : vector<8x128xf32>
      %1397 = arith.addf %1, %1396 : vector<8x128xf32>
      %1398 = arith.mulf %9, %1376 : vector<8x128xf32>
      %1399 = arith.mulf %1376, %1386 : vector<8x128xf32>
      %1400 = arith.mulf %1380, %1387 : vector<8x128xf32>
      %1401 = arith.addf %1399, %1400 : vector<8x128xf32>
      %1402 = arith.mulf %12, %1401 : vector<8x128xf32>
      %1403 = arith.addf %1398, %1402 : vector<8x128xf32>
      %1404 = arith.mulf %1385, %1397 : vector<8x128xf32>
      %1405 = arith.addf %1403, %1404 : vector<8x128xf32>
      %1406 = arith.subf %1386, %1387 : vector<8x128xf32>
      %1407 = arith.mulf %12, %1406 : vector<8x128xf32>
      %1408 = arith.addf %9, %1407 : vector<8x128xf32>
      %1409 = arith.mulf %1384, %1397 : vector<8x128xf32>
      %1410 = arith.addf %1408, %1409 : vector<8x128xf32>
      %cst_260 = arith.constant 2.000000e+00 : f32
      %1411 = vector.broadcast %cst_260 : f32 to vector<8x128xf32>
      %1412 = arith.mulf %1411, %1385 : vector<8x128xf32>
      %1413 = arith.mulf %1412, %1391 : vector<8x128xf32>
      %1414 = arith.subf %1410, %1413 : vector<8x128xf32>
      %1415 = arith.addf %1389, %1388 : vector<8x128xf32>
      %1416 = tpu.reciprocal %1385 {approx = true} : vector<8x128xf32> -> vector<8x128xf32>
      %1417 = arith.mulf %12, %1416 : vector<8x128xf32>
      %1418 = arith.mulf %1384, %1391 : vector<8x128xf32>
      %1419 = arith.mulf %1385, %1415 : vector<8x128xf32>
      %1420 = arith.subf %1418, %1419 : vector<8x128xf32>
      %cst_261 = arith.constant 2.000000e+00 : f32
      %1421 = vector.broadcast %cst_261 : f32 to vector<8x128xf32>
      %1422 = arith.mulf %1421, %1420 : vector<8x128xf32>
      %1423 = arith.addf %1397, %1422 : vector<8x128xf32>
      %cst_262 = arith.constant 2.000000e+00 : f32
      %1424 = vector.broadcast %cst_262 : f32 to vector<8x128xf32>
      %1425 = arith.mulf %1424, %1423 : vector<8x128xf32>
      %1426 = arith.subf %1417, %1425 : vector<8x128xf32>
      %cst_263 = arith.constant 1.000000e+00 : f32
      %1427 = vector.broadcast %cst_263 : f32 to vector<8x128xf32>
      %1428 = arith.subf %1427, %1377 : vector<8x128xf32>
      %cst_264 = arith.constant 2.000000e+00 : f32
      %1429 = vector.broadcast %cst_264 : f32 to vector<8x128xf32>
      %1430 = arith.mulf %1429, %1377 : vector<8x128xf32>
      %cst_265 = arith.constant 1.000000e+00 : f32
      %1431 = vector.broadcast %cst_265 : f32 to vector<8x128xf32>
      %1432 = arith.subf %1431, %1430 : vector<8x128xf32>
      %1433 = arith.mulf %1377, %1428 : vector<8x128xf32>
      %1434 = math.log %1377 : vector<8x128xf32>
      %1435 = math.log %1428 : vector<8x128xf32>
      %1436 = arith.mulf %16, %1432 : vector<8x128xf32>
      %1437 = arith.addf %14, %1436 : vector<8x128xf32>
      %1438 = arith.mulf %1432, %1437 : vector<8x128xf32>
      %1439 = arith.addf %3, %1438 : vector<8x128xf32>
      %1440 = arith.mulf %7, %1432 : vector<8x128xf32>
      %1441 = arith.addf %5, %1440 : vector<8x128xf32>
      %1442 = arith.mulf %1432, %1441 : vector<8x128xf32>
      %1443 = arith.addf %3, %1442 : vector<8x128xf32>
      %1444 = arith.mulf %1432, %1443 : vector<8x128xf32>
      %1445 = arith.addf %1, %1444 : vector<8x128xf32>
      %1446 = arith.mulf %9, %1377 : vector<8x128xf32>
      %1447 = arith.mulf %1377, %1434 : vector<8x128xf32>
      %1448 = arith.mulf %1428, %1435 : vector<8x128xf32>
      %1449 = arith.addf %1447, %1448 : vector<8x128xf32>
      %1450 = arith.mulf %12, %1449 : vector<8x128xf32>
      %1451 = arith.addf %1446, %1450 : vector<8x128xf32>
      %1452 = arith.mulf %1433, %1445 : vector<8x128xf32>
      %1453 = arith.addf %1451, %1452 : vector<8x128xf32>
      %1454 = arith.subf %1434, %1435 : vector<8x128xf32>
      %1455 = arith.mulf %12, %1454 : vector<8x128xf32>
      %1456 = arith.addf %9, %1455 : vector<8x128xf32>
      %1457 = arith.mulf %1432, %1445 : vector<8x128xf32>
      %1458 = arith.addf %1456, %1457 : vector<8x128xf32>
      %cst_266 = arith.constant 2.000000e+00 : f32
      %1459 = vector.broadcast %cst_266 : f32 to vector<8x128xf32>
      %1460 = arith.mulf %1459, %1433 : vector<8x128xf32>
      %1461 = arith.mulf %1460, %1439 : vector<8x128xf32>
      %1462 = arith.subf %1458, %1461 : vector<8x128xf32>
      %1463 = arith.addf %1437, %1436 : vector<8x128xf32>
      %1464 = tpu.reciprocal %1433 {approx = true} : vector<8x128xf32> -> vector<8x128xf32>
      %1465 = arith.mulf %12, %1464 : vector<8x128xf32>
      %1466 = arith.mulf %1432, %1439 : vector<8x128xf32>
      %1467 = arith.mulf %1433, %1463 : vector<8x128xf32>
      %1468 = arith.subf %1466, %1467 : vector<8x128xf32>
      %cst_267 = arith.constant 2.000000e+00 : f32
      %1469 = vector.broadcast %cst_267 : f32 to vector<8x128xf32>
      %1470 = arith.mulf %1469, %1468 : vector<8x128xf32>
      %1471 = arith.addf %1445, %1470 : vector<8x128xf32>
      %cst_268 = arith.constant 2.000000e+00 : f32
      %1472 = vector.broadcast %cst_268 : f32 to vector<8x128xf32>
      %1473 = arith.mulf %1472, %1471 : vector<8x128xf32>
      %1474 = arith.subf %1465, %1473 : vector<8x128xf32>
      %1475 = arith.subf %1453, %1405 : vector<8x128xf32>
      %cst_269 = arith.constant 1.000000e-07 : f32
      %1476 = vector.broadcast %cst_269 : f32 to vector<8x128xf32>
      %1477 = arith.addf %1414, %1476 : vector<8x128xf32>
      %cst_270 = arith.constant 1.000000e+00 : f32
      %1478 = vector.broadcast %cst_270 : f32 to vector<8x128xf32>
      %1479 = arith.divf %1478, %1477 : vector<8x128xf32>
      %cst_271 = arith.constant 1.000000e-07 : f32
      %1480 = vector.broadcast %cst_271 : f32 to vector<8x128xf32>
      %1481 = arith.addf %1462, %1480 : vector<8x128xf32>
      %cst_272 = arith.constant 1.000000e+00 : f32
      %1482 = vector.broadcast %cst_272 : f32 to vector<8x128xf32>
      %1483 = arith.divf %1482, %1481 : vector<8x128xf32>
      %1484 = arith.mulf %1475, %1479 : vector<8x128xf32>
      %1485 = arith.mulf %1475, %1483 : vector<8x128xf32>
      %1486 = arith.subf %1377, %1484 : vector<8x128xf32>
      %1487 = arith.addf %1376, %1485 : vector<8x128xf32>
      %cst_273 = arith.constant 1.000000e-07 : f32
      %cst_274 = arith.constant 0.99999988 : f32
      %1488 = vector.broadcast %cst_273 : f32 to vector<8x128xf32>
      %1489 = arith.maximumf %1488, %1486 : vector<8x128xf32>
      %1490 = vector.broadcast %cst_274 : f32 to vector<8x128xf32>
      %1491 = arith.minimumf %1490, %1489 : vector<8x128xf32>
      %cst_275 = arith.constant 1.000000e-07 : f32
      %cst_276 = arith.constant 0.99999988 : f32
      %1492 = vector.broadcast %cst_275 : f32 to vector<8x128xf32>
      %1493 = arith.maximumf %1492, %1487 : vector<8x128xf32>
      %1494 = vector.broadcast %cst_276 : f32 to vector<8x128xf32>
      %1495 = arith.minimumf %1494, %1493 : vector<8x128xf32>
      %1496 = arith.mulf %1484, %1426 : vector<8x128xf32>
      %1497 = arith.addf %1414, %1496 : vector<8x128xf32>
      %1498 = arith.mulf %1479, %1497 : vector<8x128xf32>
      %1499 = arith.mulf %1462, %1479 : vector<8x128xf32>
      %cst_277 = arith.constant 1.000000e+00 : f32
      %1500 = vector.broadcast %cst_277 : f32 to vector<8x128xf32>
      %1501 = arith.subf %1500, %1499 : vector<8x128xf32>
      %1502 = arith.mulf %1414, %1483 : vector<8x128xf32>
      %cst_278 = arith.constant 1.000000e+00 : f32
      %1503 = vector.broadcast %cst_278 : f32 to vector<8x128xf32>
      %1504 = arith.subf %1503, %1502 : vector<8x128xf32>
      %1505 = arith.mulf %1485, %1474 : vector<8x128xf32>
      %1506 = arith.subf %1462, %1505 : vector<8x128xf32>
      %1507 = arith.mulf %1483, %1506 : vector<8x128xf32>
      %1508 = arith.cmpf oeq, %1486, %1491 : vector<8x128xf32>
      %1509 = arith.cmpf oeq, %1487, %1495 : vector<8x128xf32>
      %cst_279 = arith.constant 0.000000e+00 : f32
      %1510 = vector.broadcast %cst_279 : f32 to vector<8x128xf32>
      %1511 = arith.select %1508, %1498, %1510 : vector<8x128xi1>, vector<8x128xf32>
      %cst_280 = arith.constant 1.000000e+00 : f32
      %1512 = vector.broadcast %cst_280 : f32 to vector<8x128xf32>
      %1513 = arith.subf %1511, %1512 : vector<8x128xf32>
      %1514 = arith.select %1508, %1501, %1510 : vector<8x128xi1>, vector<8x128xf32>
      %1515 = arith.select %1509, %1504, %1510 : vector<8x128xi1>, vector<8x128xf32>
      %1516 = arith.select %1509, %1507, %1510 : vector<8x128xi1>, vector<8x128xf32>
      %cst_281 = arith.constant 1.000000e+00 : f32
      %1517 = vector.broadcast %cst_281 : f32 to vector<8x128xf32>
      %1518 = arith.subf %1516, %1517 : vector<8x128xf32>
      %1519 = arith.subf %1491, %1376 : vector<8x128xf32>
      %1520 = arith.subf %1495, %1377 : vector<8x128xf32>
      %1521 = arith.mulf %1513, %1518 : vector<8x128xf32>
      %1522 = arith.mulf %1514, %1515 : vector<8x128xf32>
      %1523 = arith.subf %1521, %1522 : vector<8x128xf32>
      %1524 = math.absf %1523 : vector<8x128xf32>
      %cst_282 = arith.constant 0.000000e+00 : f32
      %1525 = vector.broadcast %cst_282 : f32 to vector<8x128xf32>
      %1526 = arith.cmpf ogt, %1524, %1525 : vector<8x128xf32>
      %cst_283 = arith.constant 1.000000e-30 : f32
      %1527 = vector.broadcast %cst_283 : f32 to vector<8x128xf32>
      %1528 = arith.select %1526, %1523, %1527 : vector<8x128xi1>, vector<8x128xf32>
      %1529 = tpu.reciprocal %1528 {approx = true} : vector<8x128xf32> -> vector<8x128xf32>
      %1530 = arith.mulf %1518, %1519 : vector<8x128xf32>
      %1531 = arith.mulf %1514, %1520 : vector<8x128xf32>
      %1532 = arith.subf %1530, %1531 : vector<8x128xf32>
      %1533 = arith.mulf %1532, %1529 : vector<8x128xf32>
      %1534 = arith.subf %1376, %1533 : vector<8x128xf32>
      %1535 = arith.mulf %1513, %1520 : vector<8x128xf32>
      %1536 = arith.mulf %1515, %1519 : vector<8x128xf32>
      %1537 = arith.subf %1535, %1536 : vector<8x128xf32>
      %1538 = arith.mulf %1537, %1529 : vector<8x128xf32>
      %1539 = arith.subf %1377, %1538 : vector<8x128xf32>
      %cst_284 = arith.constant 1.000000e-07 : f32
      %1540 = vector.broadcast %cst_284 : f32 to vector<8x128xf32>
      %1541 = arith.maximumf %1534, %1540 : vector<8x128xf32>
      %cst_285 = arith.constant 0.99999988 : f32
      %1542 = vector.broadcast %cst_285 : f32 to vector<8x128xf32>
      %1543 = arith.minimumf %1539, %1542 : vector<8x128xf32>
      %cst_286 = arith.constant 0.99999988 : f32
      %1544 = vector.broadcast %cst_286 : f32 to vector<8x128xf32>
      %1545 = arith.minimumf %1541, %1544 : vector<8x128xf32>
      %cst_287 = arith.constant 1.000000e-07 : f32
      %1546 = vector.broadcast %cst_287 : f32 to vector<8x128xf32>
      %1547 = arith.maximumf %1543, %1546 : vector<8x128xf32>
      %1548 = arith.subf %1545, %1376 : vector<8x128xf32>
      %1549 = math.absf %1548 : vector<8x128xf32>
      %1550 = arith.subf %1547, %1377 : vector<8x128xf32>
      %1551 = math.absf %1550 : vector<8x128xf32>
      %1552 = arith.minimumf %1549, %1551 : vector<8x128xf32>
      %cst_288 = arith.constant 9.99999997E-7 : f32
      %1553 = vector.broadcast %cst_288 : f32 to vector<8x128xf32>
      %1554 = arith.cmpf ogt, %1378, %1553 : vector<8x128xf32>
      %1555 = arith.select %1554, %1545, %1376 : vector<8x128xi1>, vector<8x128xf32>
      %1556 = arith.select %1554, %1547, %1377 : vector<8x128xi1>, vector<8x128xf32>
      %1557 = arith.select %1554, %1552, %1378 : vector<8x128xi1>, vector<8x128xf32>
      %c8_i32 = arith.constant 8 : i32
      %1558 = arith.addi %arg4, %c8_i32 : i32
      scf.yield %1558, %1555, %1556, %1557 : i32, vector<8x128xf32>, vector<8x128xf32>, vector<8x128xf32>
    }
    %cst_13 = arith.constant 1.000000e+00 : f32
    %31 = vector.broadcast %cst_13 : f32 to vector<8x128xf32>
    %32 = arith.subf %31, %30#1 : vector<8x128xf32>
    %cst_14 = arith.constant 2.000000e+00 : f32
    %33 = vector.broadcast %cst_14 : f32 to vector<8x128xf32>
    %34 = arith.mulf %33, %30#1 : vector<8x128xf32>
    %cst_15 = arith.constant 1.000000e+00 : f32
    %35 = vector.broadcast %cst_15 : f32 to vector<8x128xf32>
    %36 = arith.subf %35, %34 : vector<8x128xf32>
    %37 = arith.mulf %30#1, %32 : vector<8x128xf32>
    %38 = math.log %30#1 : vector<8x128xf32>
    %39 = math.log %32 : vector<8x128xf32>
    %40 = arith.mulf %16, %36 : vector<8x128xf32>
    %41 = arith.addf %14, %40 : vector<8x128xf32>
    %42 = arith.mulf %36, %41 : vector<8x128xf32>
    %43 = arith.addf %3, %42 : vector<8x128xf32>
    %44 = arith.mulf %7, %36 : vector<8x128xf32>
    %45 = arith.addf %5, %44 : vector<8x128xf32>
    %46 = arith.mulf %36, %45 : vector<8x128xf32>
    %47 = arith.addf %3, %46 : vector<8x128xf32>
    %48 = arith.mulf %36, %47 : vector<8x128xf32>
    %49 = arith.addf %1, %48 : vector<8x128xf32>
    %50 = arith.mulf %9, %30#1 : vector<8x128xf32>
    %51 = arith.mulf %30#1, %38 : vector<8x128xf32>
    %52 = arith.mulf %32, %39 : vector<8x128xf32>
    %53 = arith.addf %51, %52 : vector<8x128xf32>
    %54 = arith.mulf %12, %53 : vector<8x128xf32>
    %55 = arith.addf %50, %54 : vector<8x128xf32>
    %56 = arith.mulf %37, %49 : vector<8x128xf32>
    %57 = arith.addf %55, %56 : vector<8x128xf32>
    %58 = arith.subf %38, %39 : vector<8x128xf32>
    %59 = arith.mulf %12, %58 : vector<8x128xf32>
    %60 = arith.addf %9, %59 : vector<8x128xf32>
    %61 = arith.mulf %36, %49 : vector<8x128xf32>
    %62 = arith.addf %60, %61 : vector<8x128xf32>
    %cst_16 = arith.constant 2.000000e+00 : f32
    %63 = vector.broadcast %cst_16 : f32 to vector<8x128xf32>
    %64 = arith.mulf %63, %37 : vector<8x128xf32>
    %65 = arith.mulf %64, %43 : vector<8x128xf32>
    %66 = arith.subf %62, %65 : vector<8x128xf32>
    %cst_17 = arith.constant 1.000000e+00 : f32
    %67 = vector.broadcast %cst_17 : f32 to vector<8x128xf32>
    %68 = arith.subf %67, %30#2 : vector<8x128xf32>
    %cst_18 = arith.constant 2.000000e+00 : f32
    %69 = vector.broadcast %cst_18 : f32 to vector<8x128xf32>
    %70 = arith.mulf %69, %30#2 : vector<8x128xf32>
    %cst_19 = arith.constant 1.000000e+00 : f32
    %71 = vector.broadcast %cst_19 : f32 to vector<8x128xf32>
    %72 = arith.subf %71, %70 : vector<8x128xf32>
    %73 = arith.mulf %30#2, %68 : vector<8x128xf32>
    %74 = math.log %30#2 : vector<8x128xf32>
    %75 = math.log %68 : vector<8x128xf32>
    %76 = arith.mulf %16, %72 : vector<8x128xf32>
    %77 = arith.addf %14, %76 : vector<8x128xf32>
    %78 = arith.mulf %72, %77 : vector<8x128xf32>
    %79 = arith.addf %3, %78 : vector<8x128xf32>
    %80 = arith.mulf %7, %72 : vector<8x128xf32>
    %81 = arith.addf %5, %80 : vector<8x128xf32>
    %82 = arith.mulf %72, %81 : vector<8x128xf32>
    %83 = arith.addf %3, %82 : vector<8x128xf32>
    %84 = arith.mulf %72, %83 : vector<8x128xf32>
    %85 = arith.addf %1, %84 : vector<8x128xf32>
    %86 = arith.mulf %9, %30#2 : vector<8x128xf32>
    %87 = arith.mulf %30#2, %74 : vector<8x128xf32>
    %88 = arith.mulf %68, %75 : vector<8x128xf32>
    %89 = arith.addf %87, %88 : vector<8x128xf32>
    %90 = arith.mulf %12, %89 : vector<8x128xf32>
    %91 = arith.addf %86, %90 : vector<8x128xf32>
    %92 = arith.mulf %73, %85 : vector<8x128xf32>
    %93 = arith.addf %91, %92 : vector<8x128xf32>
    %94 = arith.subf %74, %75 : vector<8x128xf32>
    %95 = arith.mulf %12, %94 : vector<8x128xf32>
    %96 = arith.addf %9, %95 : vector<8x128xf32>
    %97 = arith.mulf %72, %85 : vector<8x128xf32>
    %98 = arith.addf %96, %97 : vector<8x128xf32>
    %cst_20 = arith.constant 2.000000e+00 : f32
    %99 = vector.broadcast %cst_20 : f32 to vector<8x128xf32>
    %100 = arith.mulf %99, %73 : vector<8x128xf32>
    %101 = arith.mulf %100, %79 : vector<8x128xf32>
    %102 = arith.subf %98, %101 : vector<8x128xf32>
    %103 = arith.subf %93, %57 : vector<8x128xf32>
    %cst_21 = arith.constant 1.000000e-07 : f32
    %104 = vector.broadcast %cst_21 : f32 to vector<8x128xf32>
    %105 = arith.addf %66, %104 : vector<8x128xf32>
    %106 = arith.divf %103, %105 : vector<8x128xf32>
    %107 = arith.subf %30#2, %106 : vector<8x128xf32>
    %cst_22 = arith.constant 1.000000e-07 : f32
    %cst_23 = arith.constant 0.99999988 : f32
    %108 = vector.broadcast %cst_22 : f32 to vector<8x128xf32>
    %109 = arith.maximumf %108, %107 : vector<8x128xf32>
    %110 = vector.broadcast %cst_23 : f32 to vector<8x128xf32>
    %111 = arith.minimumf %110, %109 : vector<8x128xf32>
    %cst_24 = arith.constant 1.000000e-07 : f32
    %112 = vector.broadcast %cst_24 : f32 to vector<8x128xf32>
    %113 = arith.addf %102, %112 : vector<8x128xf32>
    %114 = arith.divf %103, %113 : vector<8x128xf32>
    %115 = arith.addf %30#1, %114 : vector<8x128xf32>
    %cst_25 = arith.constant 1.000000e-07 : f32
    %cst_26 = arith.constant 0.99999988 : f32
    %116 = vector.broadcast %cst_25 : f32 to vector<8x128xf32>
    %117 = arith.maximumf %116, %115 : vector<8x128xf32>
    %118 = vector.broadcast %cst_26 : f32 to vector<8x128xf32>
    %119 = arith.minimumf %118, %117 : vector<8x128xf32>
    %c0_27 = arith.constant 0 : index
    %c0_28 = arith.constant 0 : index
    %c0_29 = arith.constant 0 : index
    %120 = vector.load %arg3[%c0_27, %c0_28, %c0_29] : memref<2x8x128xf32, #tpu.memory_space<vmem>>, vector<1x8x128xf32>
    %121 = vector.shape_cast %120 : vector<1x8x128xf32> to vector<8x128xf32>
    %122 = vector.shape_cast %111 : vector<8x128xf32> to vector<1x8x128xf32>
    tpu.vector_store %arg3[%c0_27, %c0_28, %c0_29], %122 {strides = array<i32>} : memref<2x8x128xf32, #tpu.memory_space<vmem>>, vector<1x8x128xf32>,
    %c1_30 = arith.constant 1 : index
    %c0_31 = arith.constant 0 : index
    %c0_32 = arith.constant 0 : index
    %123 = vector.load %arg3[%c1_30, %c0_31, %c0_32] : memref<2x8x128xf32, #tpu.memory_space<vmem>>, vector<1x8x128xf32>
    %124 = vector.shape_cast %123 : vector<1x8x128xf32> to vector<8x128xf32>
    %125 = vector.shape_cast %119 : vector<8x128xf32> to vector<1x8x128xf32>
    tpu.vector_store %arg3[%c1_30, %c0_31, %c0_32], %125 {strides = array<i32>} : memref<2x8x128xf32, #tpu.memory_space<vmem>>, vector<1x8x128xf32>,
    return
  }
  func.func @transform_0(%arg0: i32) -> (i32, i32, i32) {
    %c0_i32 = arith.constant 0 : i32
    %c0_i32_0 = arith.constant 0 : i32
    %c0_i32_1 = arith.constant 0 : i32
    return %c0_i32, %arg0, %c0_i32_0 : i32, i32, i32
  }
  func.func @transform_1(%arg0: i32) -> i32 {
    %c0_i32 = arith.constant 0 : i32
    %c0_i32_0 = arith.constant 0 : i32
    return %c0_i32 : i32
  }
  func.func @transform_2(%arg0: i32) -> (i32, i32, i32) {
    %c0_i32 = arith.constant 0 : i32
    %c0_i32_0 = arith.constant 0 : i32
    %c0_i32_1 = arith.constant 0 : i32
    return %c0_i32, %arg0, %c0_i32_0 : i32, i32, i32
  }
}

</mosaic_0001>

<bundles_post_ra>
// kernel: tpu_custom_call.1
= control target key start
LH: loop header
LB: loop body
LE: loop exit
PB: predicated region body
PF: predicated region fallthrough
CT: control target
= control target key end

     0   :  { %7 = vsyncpa [#allocation3], 0  ;;  %s2380_s0 = inlined_call_operand.hbm [shape: f32[2,8,128], index: 0, kind: input, shape index: {}]   ;;  %s2381_s1 = inlined_call_operand.vmem [shape: f32[6], index: 1, kind: input, shape index: {}]   ;;  %s2382_s2 = inlined_call_operand.hbm [shape: f32[2,8,128], index: 2, kind: output, shape index: {}]  }
   0x1   :  { %8 = vsyncpa [#allocation5], 0 }
   0x2   :  { %9 = vsyncpa [#allocation4], 0  ;;  %s1775_s9 = smov [#allocation2]   ;;  %s28_s13 = sshll.u32 %s2381_s1, 4  ;;  %s29_s13 = int_to_ptr.vmem [resolvable:$true] %s28_s13 }
   0x3   :  { %s15_s10 = sshll.u32 %s1775_s9, 4  ;;  %s16_s10 = int_to_ptr.vmem [resolvable:$true] %s15_s10 }
   0x4   :  { %s1677_s14 = scalar_lea.vmem %s16_s10, 256  ;;  %p1682_p1 = scmp.lt.s32.totalorder %s16_s10, %s16_s10 }
   0x5   :  { %p1678_p0 = scmp.ne.s32.totalorder %s16_s10, %s1677_s14  ;;  %p1683_p2 = scmp.lt.s32.totalorder %s1677_s14, %s1677_s14 }
   0x7   :  { %p1684_p3 = por %p1683_p2, %p1682_p1 }
   0x9   :  { %p1685_p4 = pnand %p1684_p3, %p1678_p0 }
   0xb   :  { %1688 = shalt.err (!%p1685_p4)
}
   0xc   :  { %s1776_s15 = smov 128   ;;  %s1777_s16 = smov 8  }
   0xd   :  { %21 = dma.hbm_to_vmem [thread:$0]  %s2380_s0, 256, %s16_s10, [#allocation3], %s1776_s15, %s1776_s15, %s1777_s16  }
   0xe   :  { %s1689_s19 = scalar_lea.vmem %s29_s13, 16  ;;  %p1694_p6 = scmp.lt.s32.totalorder %s29_s13, %s29_s13 }
   0xf   :  { %p1690_p5 = scmp.ne.s32.totalorder %s29_s13, %s1689_s19  ;;  %p1695_p7 = scmp.lt.s32.totalorder %s1689_s19, %s1689_s19 }
  0x11   :  { %p1696_p8 = por %p1695_p7, %p1694_p6 }
  0x13   :  { %p1697_p9 = pnand %p1696_p8, %p1690_p5 }
  0x15   :  { %1700 = shalt.err (!%p1697_p9)
}
  0x16   :  { %s1778_s1 = smov [#allocation6]  }
  0x17   :  { %31 = dma.vmem_to_smem %s29_s13, 16, %s1778_s1, [#allocation5]  }
  0x18   :  { %1745 = dma.done.wait [#allocation3], 256  }
  0x19   :  { %1746 = vsyncadd [#allocation3], 4294967040 }
  0x1a   :  { %1747 = dma.done.wait [#allocation5], 16  }
  0x1b   :  { %1748 = vsyncadd [#allocation5], 4294967280 }
  0x1c   :  { %38 = sfence }
  0x1d   :  { %s39_s20 = sld [smem:[#allocation6]]  ;;  %v54_v0 = vld [vmem:[#allocation2] sm:$0xff]  ;;  %v58_v1 = vld [vmem:[#allocation2 + $0x8] sm:$0xff]  ;;  %v1779_v14 = vmov 10000000.0  }
  0x1e   :  { %s1433_s21 = sld [smem:[#allocation6 + $0x1]]  ;;  %v55_v2 = vmax.f32 %v54_v0, 1e-07  ;;  %v59_v3 = vmax.f32 %v58_v1, 1e-07  ;;  %1413 = vmax.xlane.f32.xlu0 %v1779_v14 }
  0x1f   :  { %s1434_s0 = sld [smem:[#allocation6 + $0x2]] }
  0x20   :  { %s1435_s22 = sld [smem:[#allocation6 + $0x3]]  ;;  %v56_v4 = vmin.f32 %v55_v2, 0.9999999   ;;  %v60_v5 = vmin.f32 %v59_v3, 0.9999999  }
  0x21   :  { %s1436_s23 = sld [smem:[#allocation6 + $0x4]] }
  0x22   :  { %s1437_s24 = sld [smem:[#allocation6 + $0x5]]  ;;  %v2383_v22 = vmov %v60_v5  ;;  %v2384_v23 = vmov %v56_v4 }
  0x23   :  { %v1805_v6 = vstv %s39_s20 }
  0x24   :  { %v1807_v7 = vstv %s1433_s21 }
  0x25   :  { %v1809_v8 = vstv %s1434_s0 }
  0x26   :  { %v1811_v9 = vstv %s1435_s22  ;;  %v1814_v10 = vmul.f32 2.0, %v1809_v8 }
  0x27   :  { %v1816_v11 = vstv %s1436_s23  ;;  %v1819_v12 = vmul.f32 3.0, %v1811_v9 }
  0x28   :  { %s50_s25 = smul.f32 8.314, %s1437_s24 }
  0x2a   :  { %v1821_v13 = vstv %s50_s25 }
  0xa7   :  { %v1414_v15 = vpop.xlane.xlu0 %1413 }
  0xa8   :  { %v1415_v16 = vrot.slane %v1414_v15, 4 }
  0xaa   :  { %v1416_v17 = vmax.f32 %v1414_v15, %v1415_v16 }
  0xac   :  { %v1417_v18 = vrot.slane %v1416_v17, 2 }
  0xae   :  { %v1418_v19 = vmax.f32 %v1416_v17, %v1417_v18 }
  0xb0   :  { %v1419_v20 = vrot.slane %v1418_v19, 1 }
  0xb2   :  { %v1420_v21 = vmax.f32 %v1418_v19, %v1419_v20 }
  0xb4   :  { %1455 = vpush %v1420_v21 }
  0xe5   :  { %s1456_s26 = spop %1455 }
  0xe6   :  { %p1422_p10 = scmp.gt.f32.partialorder %s1456_s26, 1e-06 }
  0xe7   :  { %v1827_v24 = vmov (%p1422_p10), 10000000.0   ;;  %s1833_s27 = smov (%p1422_p10), 0  }
  0xe8   :  { %1424 = sbr.rel (!%p1422_p10) target bundleno = 1163 (0x48b), region = 39 }
  0xed LB: > { %v81_v25 = vsub.f32 1.0, %v1761_v4  ;;  %v82_v26 = vmul.f32 2.0, %v1761_v4  ;;  %1513 = vlog2.f32 %v1761_v4  ;;  %v125_v27 = vsub.f32 1.0, %v1757_v5  ;;  %s1305_s28 = sadd.s32 8, %s1765_s27   ;;  %s1765_s27 = sphi %s1833_s27, %s2387_s27   ;;  %v1761_v4 = vphi %v56_v4, %v2386_v4   ;;  %v1757_v5 = vphi %v60_v5, %v2385_v5   ;;  %v1753_v24 = vphi %v1827_v24, %v1304_v24  }
  0xee   : > { %v126_v28 = vmul.f32 2.0, %v1757_v5  ;;  %1515 = vlog2.f32 %v1757_v5  ;;  %vm230_vm3 = vcmp.gt.f32.partialorder %v1753_v24, 1e-06  ;;  %p66_p11 = scmp.lt.s32.totalorder %s1305_s28, 1000  ;;  %s2387_s27 = smov %s1305_s28 }
  0xef   : > { %v83_v29 = vsub.f32 1.0, %v82_v26  ;;  %1517 = vlog2.f32 %v81_v25  ;;  %v84_v43 = vmul.f32 %v1761_v4, %v81_v25  ;;  %v128_v46 = vmul.f32 %v1757_v5, %v125_v27 }
  0xf0   : > { %v127_v30 = vsub.f32 1.0, %v126_v28  ;;  %1519 = vlog2.f32 %v125_v27 }
  0xf1   : > { %v93_v31 = vmul.f32 %v83_v29, %v1811_v9  ;;  %v89_v33 = vmul.f32 %v83_v29, %v1819_v12  ;;  %v112_v57 = vmul.f32 2.0, %v84_v43  ;;  %1521 = vrcp.f32 %v84_v43 }
  0xf2   : > { %v137_v32 = vmul.f32 %v127_v30, %v1811_v9  ;;  %v133_v35 = vmul.f32 %v127_v30, %v1819_v12  ;;  %v156_v60 = vmul.f32 2.0, %v128_v46  ;;  %1523 = vrcp.f32 %v128_v46 }
  0xf3   : > { %v94_v34 = vadd.f32 %v93_v31, %v1809_v8  ;;  %v90_v39 = vadd.f32 %v89_v33, %v1814_v10 }
  0xf4   : > { %v138_v36 = vadd.f32 %v137_v32, %v1809_v8  ;;  %v134_v41 = vadd.f32 %v133_v35, %v1814_v10 }
  0xf5   : > { %v95_v37 = vmul.f32 %v94_v34, %v83_v29  ;;  %v91_v50 = vmul.f32 %v90_v39, %v83_v29  ;;  %v115_v63 = vadd.f32 %v90_v39, %v89_v33 }
  0xf6   : > { %v139_v38 = vmul.f32 %v138_v36, %v127_v30  ;;  %v135_v54 = vmul.f32 %v134_v41, %v127_v30  ;;  %v159_v0 = vadd.f32 %v134_v41, %v133_v35 }
  0xf7   : > { %v96_v40 = vadd.f32 %v95_v37, %v1807_v7  ;;  %v92_v61 = vadd.f32 %v91_v50, %v1807_v7  ;;  %v119_v26 = vmul.f32 %v115_v63, %v84_v43 }
  0xf8   : > { %v140_v42 = vadd.f32 %v139_v38, %v1807_v7  ;;  %v136_v3 = vadd.f32 %v135_v54, %v1807_v7  ;;  %v163_v33 = vmul.f32 %v159_v0, %v128_v46  ;;  %v99_v38 = vmul.f32 %v1761_v4, %v1816_v11 }
  0xf9   : > { %v97_v44 = vmul.f32 %v96_v40, %v83_v29  ;;  %v113_v22 = vmul.f32 %v112_v57, %v92_v61  ;;  %v118_v23 = vmul.f32 %v92_v61, %v83_v29 }
  0xfa   : > { %v1514_v45 = vpop.eup %1513  ;;  %v141_v47 = vmul.f32 %v140_v42, %v127_v30  ;;  %v157_v31 = vmul.f32 %v156_v60, %v136_v3  ;;  %v162_v32 = vmul.f32 %v136_v3, %v127_v30 }
  0xfb   : > { %v1516_v48 = vpop.eup %1515  ;;  %v86_v49 = vmul.f32 0.6931472, %v1514_v45  ;;  %v98_v52 = vadd.f32 %v97_v44, %v1805_v6 }
  0xfc   : > { %v1518_v51 = vpop.eup %1517  ;;  %v130_v53 = vmul.f32 0.6931472, %v1516_v48  ;;  %v142_v59 = vadd.f32 %v141_v47, %v1805_v6  ;;  %v164_v40 = vsub.f32 %v162_v32, %v163_v33 }
  0xfd   : > { %v1520_v55 = vpop.eup %1519  ;;  %v88_v56 = vmul.f32 0.6931472, %v1518_v51  ;;  %v100_v1 = vmul.f32 %v1761_v4, %v86_v49  ;;  %v110_v2 = vmul.f32 %v98_v52, %v83_v29  ;;  %v143_v29 = vmul.f32 %v1757_v5, %v1816_v11 }
  0xfe   : > { %v132_v58 = vmul.f32 0.6931472, %v1520_v55  ;;  %v144_v17 = vmul.f32 %v1757_v5, %v130_v53  ;;  %v154_v20 = vmul.f32 %v142_v59, %v127_v30  ;;  %v1522_v45 = vpop.eup %1521  ;;  %v165_v48 = vmul.f32 2.0, %v164_v40 }
  0xff   : > { %v107_v62 = vsub.f32 %v86_v49, %v88_v56  ;;  %v101_v15 = vmul.f32 %v88_v56, %v81_v25  ;;  %v105_v50 = vmul.f32 %v98_v52, %v84_v43  ;;  %v1524_v54 = vpop.eup %1523  ;;  %v117_v60 = vmul.f32 %v1522_v45, %v1821_v13 }
 0x100   : > { %v151_v14 = vsub.f32 %v130_v53, %v132_v58  ;;  %v145_v18 = vmul.f32 %v132_v58, %v125_v27  ;;  %v120_v27 = vsub.f32 %v118_v23, %v119_v26  ;;  %v149_v53 = vmul.f32 %v142_v59, %v128_v46 }
 0x101   : > { %v108_v16 = vmul.f32 %v107_v62, %v1821_v13  ;;  %v102_v25 = vadd.f32 %v101_v15, %v100_v1  ;;  %v166_v56 = vadd.f32 %v165_v48, %v142_v59  ;;  %v161_v62 = vmul.f32 %v1524_v54, %v1821_v13 }
 0x102   : > { %v152_v19 = vmul.f32 %v151_v14, %v1821_v13  ;;  %v146_v35 = vadd.f32 %v145_v18, %v144_v17  ;;  %v121_v47 = vmul.f32 2.0, %v120_v27 }
 0x103   : > { %v109_v21 = vadd.f32 %v108_v16, %v1816_v11  ;;  %v103_v41 = vmul.f32 %v102_v25, %v1821_v13  ;;  %v167_v63 = vmul.f32 2.0, %v166_v56 }
 0x104   : > { %v153_v28 = vadd.f32 %v152_v19, %v1816_v11  ;;  %v147_v42 = vmul.f32 %v146_v35, %v1821_v13  ;;  %v122_v55 = vadd.f32 %v121_v47, %v98_v52 }
 0x105   : > { %v111_v34 = vadd.f32 %v110_v2, %v109_v21  ;;  %v104_v49 = vadd.f32 %v103_v41, %v99_v38  ;;  %v168_v3 = vsub.f32 %v161_v62, %v167_v63 }
 0x106   : > { %v155_v36 = vadd.f32 %v154_v20, %v153_v28  ;;  %v148_v51 = vadd.f32 %v147_v42, %v143_v29  ;;  %v123_v61 = vmul.f32 2.0, %v122_v55 }
 0x107   : > { %v114_v37 = vsub.f32 %v111_v34, %v113_v22  ;;  %v106_v57 = vadd.f32 %v105_v50, %v104_v49 }
 0x108   : > { %v158_v39 = vsub.f32 %v155_v36, %v157_v31  ;;  %v150_v58 = vadd.f32 %v149_v53, %v148_v51  ;;  %v124_v1 = vsub.f32 %v117_v60, %v123_v61 }
 0x109   : > { %v170_v30 = vadd.f32 1e-07, %v114_v37 }
 0x10a   : > { %v173_v44 = vadd.f32 1e-07, %v158_v39  ;;  %v169_v0 = vsub.f32 %v150_v58, %v106_v57 }
 0x10b   : > { %1525 = vrcp.f32 %v170_v30 }
 0x10c   : > { %1527 = vrcp.f32 %v173_v44 }
 0x118   : > { %v1526_v2 = vpop.eup %1525 }
 0x119   : > { %v1528_v14 = vpop.eup %1527  ;;  %v176_v15 = vmul.f32 %v1526_v2, %v169_v0  ;;  %v187_v16 = vmul.f32 %v1526_v2, %v158_v39 }
 0x11a   : > { %v177_v43 = vmul.f32 %v1528_v14, %v169_v0  ;;  %v189_v59 = vmul.f32 %v1528_v14, %v114_v37 }
 0x11b   : > { %v178_v46 = vsub.f32 %v1757_v5, %v176_v15  ;;  %v184_v52 = vmul.f32 %v176_v15, %v124_v1  ;;  %v188_v22 = vsub.f32 1.0, %v187_v16 }
 0x11c   : > { %v179_v17 = vadd.f32 %v1761_v4, %v177_v43  ;;  %v191_v18 = vmul.f32 %v177_v43, %v168_v3  ;;  %v190_v31 = vsub.f32 1.0, %v189_v59 }
 0x11d   : > { %v180_v19 = vmax.f32 %v178_v46, 1e-07  ;;  %v185_v20 = vadd.f32 %v184_v52, %v114_v37 }
 0x11e   : > { %v182_v21 = vmax.f32 %v179_v17, 1e-07  ;;  %v192_v23 = vsub.f32 %v158_v39, %v191_v18 }
 0x11f   : > { %v181_v26 = vmin.f32 %v180_v19, 0.9999999  ;;  %v186_v28 = vmul.f32 %v1526_v2, %v185_v20 }
 0x120   : > { %v183_v32 = vmin.f32 %v182_v21, 0.9999999  ;;  %v193_v33 = vmul.f32 %v1528_v14, %v192_v23 }
 0x121   : > { %vm194_vm0 = vcmp.eq.f32.partialorder %v178_v46, %v181_v26  ;;  %v202_v39 = vsub.f32 %v181_v26, %v1761_v4 }
 0x122   : > { %vm195_vm1 = vcmp.eq.f32.partialorder %v179_v17, %v183_v32  ;;  %v196_v25 = vsel %vm194_vm0, %v186_v28, 0.0  ;;  %v198_v34 = vsel %vm194_vm0, %v188_v22, 0.0  ;;  %v203_v30 = vsub.f32 %v183_v32, %v1757_v5 }
 0x123   : > { %v1439_v35 = vadd.f32 -1.0, %v196_v25  ;;  %v199_v36 = vsel %vm195_vm1, %v190_v31, 0.0  ;;  %v200_v27 = vsel %vm195_vm1, %v193_v33, 0.0 }
 0x124   : > { %v1440_v38 = vadd.f32 -1.0, %v200_v27  ;;  %v205_v40 = vmul.f32 %v199_v36, %v198_v34  ;;  %v212_v45 = vmul.f32 %v203_v30, %v198_v34  ;;  %v217_v48 = vmul.f32 %v202_v39, %v199_v36 }
 0x125   : > { %v216_v47 = vmul.f32 %v1439_v35, %v203_v30 }
 0x126   : > { %v204_v41 = vmul.f32 %v1440_v38, %v1439_v35  ;;  %v211_v44 = vmul.f32 %v1440_v38, %v202_v39 }
 0x127   : > { %v218_v50 = vsub.f32 %v216_v47, %v217_v48 }
 0x128   : > { %v206_v29 = vsub.f32 %v204_v41, %v205_v40  ;;  %v213_v49 = vsub.f32 %v211_v44, %v212_v45 }
 0x12a   : > { %v207_v37 = vand.u32 2147483647, %v206_v29 }
 0x12c   : > { %vm208_vm2 = vcmp.gt.f32.partialorder %v207_v37, 0.0 }
 0x12d   : > { %v209_v42 = vsel %vm208_vm2, %v206_v29, 1e-30 }
 0x12e   : > { %1529 = vrcp.f32 %v209_v42 }
 0x13b   : > { %v1530_v51 = vpop.eup %1529 }
 0x13c   : > { %v214_v53 = vmul.f32 %v1530_v51, %v213_v49  ;;  %v219_v54 = vmul.f32 %v1530_v51, %v218_v50 }
 0x13e   : > { %v215_v55 = vsub.f32 %v1761_v4, %v214_v53  ;;  %v220_v56 = vsub.f32 %v1757_v5, %v219_v54 }
 0x140   : > { %v221_v57 = vmax.f32 %v215_v55, 1e-07  ;;  %v222_v58 = vmin.f32 %v220_v56, 0.9999999 }
 0x142   : > { %v223_v60 = vmin.f32 %v221_v57, 0.9999999  ;;  %v224_v61 = vmax.f32 %v222_v58, 1e-07 }
 0x144   : > { %v225_v62 = vsub.f32 %v223_v60, %v1761_v4  ;;  %v227_v63 = vsub.f32 %v224_v61, %v1757_v5  ;;  %v1895_v0 = vsel %vm230_vm3, %v223_v60, %v1761_v4  ;;  %v1900_v1 = vsel %vm230_vm3, %v224_v61, %v1757_v5 }
 0x145   : > { %v234_v2 = vsub.f32 1.0, %v1895_v0  ;;  %v235_v3 = vmul.f32 2.0, %v1895_v0  ;;  %1531 = vlog2.f32 %v1895_v0  ;;  %v278_v43 = vsub.f32 1.0, %v1900_v1 }
 0x146   : > { %v226_v14 = vand.u32 2147483647, %v225_v62  ;;  %v228_v15 = vand.u32 2147483647, %v227_v63  ;;  %v279_v16 = vmul.f32 2.0, %v1900_v1 }
 0x147   : > { %v236_v46 = vsub.f32 1.0, %v235_v3  ;;  %1533 = vlog2.f32 %v234_v2  ;;  %v237_v33 = vmul.f32 %v234_v2, %v1895_v0  ;;  %v281_v27 = vmul.f32 %v278_v43, %v1900_v1 }
 0x148   : > { %v229_v4 = vmin.f32 %v226_v14, %v228_v15  ;;  %v280_v52 = vsub.f32 1.0, %v279_v16  ;;  %1535 = vlog2.f32 %v1900_v1 }
 0x149   : > { %v246_v5 = vmul.f32 %v236_v46, %v1811_v9  ;;  %1537 = vlog2.f32 %v278_v43  ;;  %v242_v18 = vmul.f32 %v236_v46, %v1819_v12  ;;  %v265_v37 = vmul.f32 2.0, %v237_v33 }
 0x14a   : > { %v1912_v59 = vsel %vm230_vm3, %v229_v4, %v1753_v24  ;;  %v290_v17 = vmul.f32 %v280_v52, %v1811_v9  ;;  %v286_v22 = vmul.f32 %v280_v52, %v1819_v12  ;;  %1539 = vrcp.f32 %v237_v33 }
 0x14b   : > { %v247_v19 = vadd.f32 %v246_v5, %v1809_v8  ;;  %v243_v26 = vadd.f32 %v242_v18, %v1814_v10  ;;  %v309_v51 = vmul.f32 2.0, %v281_v27  ;;  %1541 = vrcp.f32 %v281_v27 }
 0x14c   : > { %v291_v20 = vadd.f32 %v290_v17, %v1809_v8  ;;  %v287_v25 = vadd.f32 %v286_v22, %v1814_v10  ;;  %vm383_vm7 = vcmp.gt.f32.partialorder %v1912_v59, 1e-06 }
 0x14d   : > { %v248_v21 = vmul.f32 %v247_v19, %v236_v46  ;;  %v244_v35 = vmul.f32 %v243_v26, %v236_v46  ;;  %v268_v47 = vadd.f32 %v243_v26, %v242_v18  ;;  %v296_v26 = vmul.f32 %v1900_v1, %v1816_v11 }
 0x14e   : > { %v292_v23 = vmul.f32 %v291_v20, %v280_v52  ;;  %v288_v39 = vmul.f32 %v287_v25, %v280_v52  ;;  %v312_v61 = vadd.f32 %v287_v25, %v286_v22  ;;  %v252_v22 = vmul.f32 %v1895_v0, %v1816_v11 }
 0x14f   : > { %v249_v28 = vadd.f32 %v248_v21, %v1807_v7  ;;  %v245_v44 = vadd.f32 %v244_v35, %v1807_v7  ;;  %v272_v14 = vmul.f32 %v268_v47, %v237_v33 }
 0x150   : > { %v293_v24 = vadd.f32 %v292_v23, %v1807_v7  ;;  %v289_v57 = vadd.f32 %v288_v39, %v1807_v7  ;;  %v316_v20 = vmul.f32 %v312_v61, %v281_v27 }
 0x151   : > { %v250_v31 = vmul.f32 %v249_v28, %v236_v46  ;;  %v266_v63 = vmul.f32 %v265_v37, %v245_v44  ;;  %v271_v3 = vmul.f32 %v245_v44, %v236_v46 }
 0x152   : > { %v1532_v32 = vpop.eup %1531  ;;  %v294_v38 = vmul.f32 %v293_v24, %v280_v52  ;;  %v310_v18 = vmul.f32 %v309_v51, %v289_v57  ;;  %v315_v19 = vmul.f32 %v289_v57, %v280_v52 }
 0x153   : > { %v239_v34 = vmul.f32 0.6931472, %v1532_v32  ;;  %v251_v29 = vadd.f32 %v250_v31, %v1805_v6  ;;  %v273_v21 = vsub.f32 %v271_v3, %v272_v14 }
 0x154   : > { %v1534_v36 = vpop.eup %1533  ;;  %v295_v50 = vadd.f32 %v294_v38, %v1805_v6  ;;  %v317_v32 = vsub.f32 %v315_v19, %v316_v20 }
 0x155   : > { %v1536_v40 = vpop.eup %1535  ;;  %v241_v41 = vmul.f32 0.6931472, %v1534_v36  ;;  %v253_v48 = vmul.f32 %v239_v34, %v1895_v0  ;;  %v263_v55 = vmul.f32 %v251_v29, %v236_v46  ;;  %v274_v25 = vmul.f32 2.0, %v273_v21 }
 0x156   : > { %v283_v42 = vmul.f32 0.6931472, %v1536_v40  ;;  %v1538_v30 = vpop.eup %1537  ;;  %v307_v16 = vmul.f32 %v295_v50, %v280_v52  ;;  %v258_v36 = vmul.f32 %v251_v29, %v237_v33  ;;  %v302_v40 = vmul.f32 %v295_v50, %v281_v27 }
 0x157   : > { %v260_v45 = vsub.f32 %v239_v34, %v241_v41  ;;  %v285_v49 = vmul.f32 0.6931472, %v1538_v30  ;;  %v254_v53 = vmul.f32 %v241_v41, %v234_v2  ;;  %v1540_v52 = vpop.eup %1539  ;;  %v318_v41 = vmul.f32 2.0, %v317_v32 }
 0x158   : > { %v297_v56 = vmul.f32 %v283_v42, %v1900_v1  ;;  %v275_v37 = vadd.f32 %v274_v25, %v251_v29  ;;  %v1542_v30 = vpop.eup %1541 }
 0x159   : > { %v261_v54 = vmul.f32 %v260_v45, %v1821_v13  ;;  %v298_v58 = vmul.f32 %v285_v49, %v278_v43  ;;  %v304_v60 = vsub.f32 %v283_v42, %v285_v49  ;;  %v255_v4 = vadd.f32 %v254_v53, %v253_v48 }
 0x15a   : > { %v319_v44 = vadd.f32 %v318_v41, %v295_v50  ;;  %v270_v45 = vmul.f32 %v1540_v52, %v1821_v13  ;;  %v276_v47 = vmul.f32 2.0, %v275_v37  ;;  %v314_v49 = vmul.f32 %v1542_v30, %v1821_v13 }
 0x15b   : > { %v262_v62 = vadd.f32 %v261_v54, %v1816_v11  ;;  %v305_v15 = vmul.f32 %v304_v60, %v1821_v13  ;;  %v299_v5 = vadd.f32 %v298_v58, %v297_v56  ;;  %v256_v46 = vmul.f32 %v255_v4, %v1821_v13 }
 0x15c   : > { %v320_v51 = vmul.f32 2.0, %v319_v44  ;;  %v277_v53 = vsub.f32 %v270_v45, %v276_v47 }
 0x15d   : > { %v264_v2 = vadd.f32 %v263_v55, %v262_v62  ;;  %v306_v17 = vadd.f32 %v305_v15, %v1816_v11  ;;  %v300_v28 = vmul.f32 %v299_v5, %v1821_v13  ;;  %v257_v35 = vadd.f32 %v256_v46, %v252_v22 }
 0x15e   : > { %v321_v33 = vsub.f32 %v314_v49, %v320_v51 }
 0x15f   : > { %v267_v43 = vsub.f32 %v264_v2, %v266_v63  ;;  %v308_v23 = vadd.f32 %v307_v16, %v306_v17  ;;  %v301_v38 = vadd.f32 %v300_v28, %v296_v26  ;;  %v259_v42 = vadd.f32 %v258_v36, %v257_v35 }
 0x161   : > { %v323_v24 = vadd.f32 1e-07, %v267_v43  ;;  %v311_v31 = vsub.f32 %v308_v23, %v310_v18  ;;  %v303_v39 = vadd.f32 %v302_v40, %v301_v38 }
 0x163   : > { %1543 = vrcp.f32 %v323_v24  ;;  %v326_v34 = vadd.f32 1e-07, %v311_v31  ;;  %v322_v48 = vsub.f32 %v303_v39, %v259_v42 }
 0x165   : > { %1545 = vrcp.f32 %v326_v34 }
 0x170   : > { %v1544_v54 = vpop.eup %1543 }
 0x171   : > { %v329_v55 = vmul.f32 %v1544_v54, %v322_v48  ;;  %v340_v29 = vmul.f32 %v1544_v54, %v311_v31 }
 0x172   : > { %v1546_v56 = vpop.eup %1545 }
 0x173   : > { %v331_v27 = vsub.f32 %v1900_v1, %v329_v55  ;;  %v337_v57 = vmul.f32 %v329_v55, %v277_v53  ;;  %v330_v58 = vmul.f32 %v1546_v56, %v322_v48  ;;  %v342_v50 = vmul.f32 %v1546_v56, %v267_v43 }
 0x174   : > { %v341_v15 = vsub.f32 1.0, %v340_v29 }
 0x175   : > { %v333_v60 = vmax.f32 %v331_v27, 1e-07  ;;  %v338_v61 = vadd.f32 %v337_v57, %v267_v43  ;;  %v332_v62 = vadd.f32 %v330_v58, %v1895_v0  ;;  %v344_v63 = vmul.f32 %v330_v58, %v321_v33 }
 0x176   : > { %v343_v2 = vsub.f32 1.0, %v342_v50 }
 0x177   : > { %v334_v3 = vmin.f32 %v333_v60, 0.9999999  ;;  %v339_v14 = vmul.f32 %v1544_v54, %v338_v61  ;;  %v335_v16 = vmax.f32 %v332_v62, 1e-07  ;;  %v345_v4 = vsub.f32 %v311_v31, %v344_v63 }
 0x179   : > { %vm347_vm4 = vcmp.eq.f32.partialorder %v331_v27, %v334_v3  ;;  %v336_v5 = vmin.f32 %v335_v16, 0.9999999  ;;  %v346_v17 = vmul.f32 %v1546_v56, %v345_v4  ;;  %v355_v31 = vsub.f32 %v334_v3, %v1895_v0 }
 0x17a   : > { %v349_v18 = vsel %vm347_vm4, %v339_v14, 0.0  ;;  %v351_v19 = vsel %vm347_vm4, %v341_v15, 0.0 }
 0x17b   : > { %vm348_vm5 = vcmp.eq.f32.partialorder %v332_v62, %v336_v5  ;;  %v1441_v20 = vadd.f32 -1.0, %v349_v18  ;;  %v356_v32 = vsub.f32 %v336_v5, %v1900_v1 }
 0x17c   : > { %v352_v21 = vsel %vm348_vm5, %v343_v2, 0.0  ;;  %v353_v22 = vsel %vm348_vm5, %v346_v17, 0.0 }
 0x17d   : > { %v1442_v23 = vadd.f32 -1.0, %v353_v22  ;;  %v358_v43 = vmul.f32 %v352_v21, %v351_v19  ;;  %v365_v52 = vmul.f32 %v356_v32, %v351_v19  ;;  %v369_v34 = vmul.f32 %v1441_v20, %v356_v32 }
 0x17e   : > { %v370_v35 = vmul.f32 %v355_v31, %v352_v21 }
 0x17f   : > { %v357_v46 = vmul.f32 %v1442_v23, %v1441_v20  ;;  %v364_v25 = vmul.f32 %v1442_v23, %v355_v31 }
 0x180   : > { %v371_v38 = vsub.f32 %v369_v34, %v370_v35 }
 0x181   : > { %v359_v26 = vsub.f32 %v357_v46, %v358_v43  ;;  %v366_v36 = vsub.f32 %v364_v25, %v365_v52 }
 0x183   : > { %v360_v28 = vand.u32 2147483647, %v359_v26 }
 0x185   : > { %vm361_vm6 = vcmp.gt.f32.partialorder %v360_v28, 0.0 }
 0x186   : > { %v362_v24 = vsel %vm361_vm6, %v359_v26, 1e-30 }
 0x187   : > { %1547 = vrcp.f32 %v362_v24 }
 0x194   : > { %v1548_v40 = vpop.eup %1547 }
 0x195   : > { %v367_v41 = vmul.f32 %v1548_v40, %v366_v36  ;;  %v372_v37 = vmul.f32 %v1548_v40, %v371_v38 }
 0x197   : > { %v368_v42 = vsub.f32 %v1895_v0, %v367_v41  ;;  %v373_v39 = vsub.f32 %v1900_v1, %v372_v37 }
 0x199   : > { %v374_v30 = vmax.f32 %v368_v42, 1e-07  ;;  %v375_v44 = vmin.f32 %v373_v39, 0.9999999 }
 0x19b   : > { %v376_v45 = vmin.f32 %v374_v30, 0.9999999  ;;  %v377_v47 = vmax.f32 %v375_v44, 1e-07 }
 0x19d   : > { %v378_v48 = vsub.f32 %v376_v45, %v1895_v0  ;;  %v380_v49 = vsub.f32 %v377_v47, %v1900_v1  ;;  %v1955_v51 = vsel %vm383_vm7, %v376_v45, %v1895_v0  ;;  %v1960_v53 = vsel %vm383_vm7, %v377_v47, %v1900_v1 }
 0x19e   : > { %v387_v54 = vsub.f32 1.0, %v1955_v51  ;;  %v388_v55 = vmul.f32 2.0, %v1955_v51  ;;  %1549 = vlog2.f32 %v1955_v51  ;;  %v431_v27 = vsub.f32 1.0, %v1960_v53 }
 0x19f   : > { %v379_v33 = vand.u32 2147483647, %v378_v48  ;;  %v381_v56 = vand.u32 2147483647, %v380_v49  ;;  %v432_v57 = vmul.f32 2.0, %v1960_v53 }
 0x1a0   : > { %v389_v29 = vsub.f32 1.0, %v388_v55  ;;  %1551 = vlog2.f32 %v387_v54  ;;  %v390_v17 = vmul.f32 %v387_v54, %v1955_v51  ;;  %v434_v22 = vmul.f32 %v431_v27, %v1960_v53 }
 0x1a1   : > { %v382_v0 = vmin.f32 %v379_v33, %v381_v56  ;;  %v433_v58 = vsub.f32 1.0, %v432_v57  ;;  %1553 = vlog2.f32 %v1960_v53 }
 0x1a2   : > { %v399_v1 = vmul.f32 %v389_v29, %v1811_v9  ;;  %1555 = vlog2.f32 %v431_v27  ;;  %v395_v50 = vmul.f32 %v389_v29, %v1819_v12  ;;  %v418_v28 = vmul.f32 2.0, %v390_v17 }
 0x1a3   : > { %v1972_v60 = vsel %vm383_vm7, %v382_v0, %v1912_v59  ;;  %v443_v61 = vmul.f32 %v433_v58, %v1811_v9  ;;  %v439_v14 = vmul.f32 %v433_v58, %v1819_v12  ;;  %1557 = vrcp.f32 %v390_v17 }
 0x1a4   : > { %v400_v62 = vadd.f32 %v399_v1, %v1809_v8  ;;  %v396_v16 = vadd.f32 %v395_v50, %v1814_v10  ;;  %v462_v40 = vmul.f32 2.0, %v434_v22  ;;  %1559 = vrcp.f32 %v434_v22 }
 0x1a5   : > { %v444_v63 = vadd.f32 %v443_v61, %v1809_v8  ;;  %v440_v18 = vadd.f32 %v439_v14, %v1814_v10  ;;  %vm536_vm11 = vcmp.gt.f32.partialorder %v1972_v60, 1e-06 }
 0x1a6   : > { %v401_v3 = vmul.f32 %v400_v62, %v389_v29  ;;  %v397_v20 = vmul.f32 %v396_v16, %v389_v29  ;;  %v421_v34 = vadd.f32 %v396_v16, %v395_v50  ;;  %v449_v16 = vmul.f32 %v1960_v53, %v1816_v11 }
 0x1a7   : > { %v445_v15 = vmul.f32 %v444_v63, %v433_v58  ;;  %v441_v31 = vmul.f32 %v440_v18, %v433_v58  ;;  %v465_v47 = vadd.f32 %v440_v18, %v439_v14  ;;  %v405_v14 = vmul.f32 %v1955_v51, %v1816_v11 }
 0x1a8   : > { %v402_v4 = vadd.f32 %v401_v3, %v1807_v7  ;;  %v398_v25 = vadd.f32 %v397_v20, %v1807_v7  ;;  %v425_v33 = vmul.f32 %v421_v34, %v390_v17 }
 0x1a9   : > { %v446_v59 = vadd.f32 %v445_v15, %v1807_v7  ;;  %v442_v30 = vadd.f32 %v441_v31, %v1807_v7  ;;  %v469_v63 = vmul.f32 %v465_v47, %v434_v22 }
 0x1aa   : > { %v403_v2 = vmul.f32 %v402_v4, %v389_v29  ;;  %v419_v49 = vmul.f32 %v418_v28, %v398_v25  ;;  %v424_v55 = vmul.f32 %v398_v25, %v389_v29 }
 0x1ab   : > { %v1550_v5 = vpop.eup %1549  ;;  %v447_v23 = vmul.f32 %v446_v59, %v433_v58  ;;  %v463_v50 = vmul.f32 %v462_v40, %v442_v30  ;;  %v468_v62 = vmul.f32 %v442_v30, %v433_v58 }
 0x1ac   : > { %v392_v19 = vmul.f32 0.6931472, %v1550_v5  ;;  %v404_v26 = vadd.f32 %v403_v2, %v1805_v6  ;;  %v426_v3 = vsub.f32 %v424_v55, %v425_v33 }
 0x1ad   : > { %v1552_v21 = vpop.eup %1551  ;;  %v448_v38 = vadd.f32 %v447_v23, %v1805_v6  ;;  %v470_v5 = vsub.f32 %v468_v62, %v469_v63 }
 0x1ae   : > { %v1554_v43 = vpop.eup %1553  ;;  %v394_v46 = vmul.f32 0.6931472, %v1552_v21  ;;  %v406_v35 = vmul.f32 %v392_v19, %v1955_v51  ;;  %v416_v42 = vmul.f32 %v404_v26, %v389_v29  ;;  %v427_v18 = vmul.f32 2.0, %v426_v3 }
 0x1af   : > { %v436_v24 = vmul.f32 0.6931472, %v1554_v43  ;;  %v1556_v32 = vpop.eup %1555  ;;  %v460_v57 = vmul.f32 %v448_v38, %v433_v58  ;;  %v411_v21 = vmul.f32 %v404_v26, %v390_v17  ;;  %v455_v43 = vmul.f32 %v448_v38, %v434_v22 }
 0x1b0   : > { %v413_v52 = vsub.f32 %v392_v19, %v394_v46  ;;  %v438_v36 = vmul.f32 0.6931472, %v1556_v32  ;;  %v407_v41 = vmul.f32 %v394_v46, %v387_v54  ;;  %v1558_v58 = vpop.eup %1557  ;;  %v471_v46 = vmul.f32 2.0, %v470_v5 }
 0x1b1   : > { %v450_v39 = vmul.f32 %v436_v24, %v1960_v53  ;;  %v428_v28 = vadd.f32 %v427_v18, %v404_v26  ;;  %v1560_v32 = vpop.eup %1559 }
 0x1b2   : > { %v414_v37 = vmul.f32 %v413_v52, %v1821_v13  ;;  %v451_v44 = vmul.f32 %v438_v36, %v431_v27  ;;  %v457_v45 = vsub.f32 %v436_v24, %v438_v36  ;;  %v408_v0 = vadd.f32 %v407_v41, %v406_v35 }
 0x1b3   : > { %v472_v25 = vadd.f32 %v471_v46, %v448_v38  ;;  %v423_v52 = vmul.f32 %v1558_v58, %v1821_v13  ;;  %v429_v34 = vmul.f32 2.0, %v428_v28  ;;  %v467_v36 = vmul.f32 %v1560_v32, %v1821_v13 }
 0x1b4   : > { %v415_v48 = vadd.f32 %v414_v37, %v1816_v11  ;;  %v458_v56 = vmul.f32 %v457_v45, %v1821_v13  ;;  %v452_v1 = vadd.f32 %v451_v44, %v450_v39  ;;  %v409_v29 = vmul.f32 %v408_v0, %v1821_v13 }
 0x1b5   : > { %v473_v40 = vmul.f32 2.0, %v472_v25  ;;  %v430_v41 = vsub.f32 %v423_v52, %v429_v34 }
 0x1b6   : > { %v417_v54 = vadd.f32 %v416_v42, %v415_v48  ;;  %v459_v61 = vadd.f32 %v458_v56, %v1816_v11  ;;  %v453_v4 = vmul.f32 %v452_v1, %v1821_v13  ;;  %v410_v20 = vadd.f32 %v409_v29, %v405_v14 }
 0x1b7   : > { %v474_v17 = vsub.f32 %v467_v36, %v473_v40 }
 0x1b8   : > { %v420_v27 = vsub.f32 %v417_v54, %v419_v49  ;;  %v461_v15 = vadd.f32 %v460_v57, %v459_v61  ;;  %v454_v23 = vadd.f32 %v453_v4, %v449_v16  ;;  %v412_v24 = vadd.f32 %v411_v21, %v410_v20 }
 0x1ba   : > { %v476_v59 = vadd.f32 1e-07, %v420_v27  ;;  %v464_v2 = vsub.f32 %v461_v15, %v463_v50  ;;  %v456_v31 = vadd.f32 %v455_v43, %v454_v23 }
 0x1bc   : > { %1561 = vrcp.f32 %v476_v59  ;;  %v479_v19 = vadd.f32 1e-07, %v464_v2  ;;  %v475_v35 = vsub.f32 %v456_v31, %v412_v24 }
 0x1be   : > { %1563 = vrcp.f32 %v479_v19 }
 0x1c9   : > { %v1562_v37 = vpop.eup %1561 }
 0x1ca   : > { %v482_v42 = vmul.f32 %v1562_v37, %v475_v35  ;;  %v493_v26 = vmul.f32 %v1562_v37, %v464_v2 }
 0x1cb   : > { %v1564_v39 = vpop.eup %1563 }
 0x1cc   : > { %v484_v22 = vsub.f32 %v1960_v53, %v482_v42  ;;  %v490_v30 = vmul.f32 %v482_v42, %v430_v41  ;;  %v483_v44 = vmul.f32 %v1564_v39, %v475_v35  ;;  %v495_v38 = vmul.f32 %v1564_v39, %v420_v27 }
 0x1cd   : > { %v494_v56 = vsub.f32 1.0, %v493_v26 }
 0x1ce   : > { %v486_v45 = vmax.f32 %v484_v22, 1e-07  ;;  %v491_v47 = vadd.f32 %v490_v30, %v420_v27  ;;  %v485_v48 = vadd.f32 %v483_v44, %v1955_v51  ;;  %v497_v49 = vmul.f32 %v483_v44, %v474_v17 }
 0x1cf   : > { %v496_v54 = vsub.f32 1.0, %v495_v38 }
 0x1d0   : > { %v487_v55 = vmin.f32 %v486_v45, 0.9999999  ;;  %v492_v33 = vmul.f32 %v1562_v37, %v491_v47  ;;  %v488_v57 = vmax.f32 %v485_v48, 1e-07  ;;  %v498_v0 = vsub.f32 %v464_v2, %v497_v49 }
 0x1d2   : > { %vm500_vm8 = vcmp.eq.f32.partialorder %v484_v22, %v487_v55  ;;  %v489_v1 = vmin.f32 %v488_v57, 0.9999999  ;;  %v499_v61 = vmul.f32 %v1564_v39, %v498_v0  ;;  %v508_v2 = vsub.f32 %v487_v55, %v1955_v51 }
 0x1d3   : > { %v502_v50 = vsel %vm500_vm8, %v492_v33, 0.0  ;;  %v504_v62 = vsel %vm500_vm8, %v494_v56, 0.0 }
 0x1d4   : > { %vm501_vm9 = vcmp.eq.f32.partialorder %v485_v48, %v489_v1  ;;  %v1443_v63 = vadd.f32 -1.0, %v502_v50  ;;  %v509_v5 = vsub.f32 %v489_v1, %v1960_v53 }
 0x1d5   : > { %v505_v3 = vsel %vm501_vm9, %v496_v54, 0.0  ;;  %v506_v14 = vsel %vm501_vm9, %v499_v61, 0.0 }
 0x1d6   : > { %v1444_v15 = vadd.f32 -1.0, %v506_v14  ;;  %v511_v27 = vmul.f32 %v505_v3, %v504_v62  ;;  %v518_v58 = vmul.f32 %v509_v5, %v504_v62  ;;  %v522_v19 = vmul.f32 %v1443_v63, %v509_v5 }
 0x1d7   : > { %v523_v20 = vmul.f32 %v508_v2, %v505_v3 }
 0x1d8   : > { %v510_v29 = vmul.f32 %v1444_v15, %v1443_v63  ;;  %v517_v18 = vmul.f32 %v1444_v15, %v508_v2 }
 0x1d9   : > { %v524_v23 = vsub.f32 %v522_v19, %v523_v20 }
 0x1da   : > { %v512_v16 = vsub.f32 %v510_v29, %v511_v27  ;;  %v519_v21 = vsub.f32 %v517_v18, %v518_v58 }
 0x1dc   : > { %v513_v4 = vand.u32 2147483647, %v512_v16 }
 0x1de   : > { %vm514_vm10 = vcmp.gt.f32.partialorder %v513_v4, 0.0 }
 0x1df   : > { %v515_v59 = vsel %vm514_vm10, %v512_v16, 1e-30 }
 0x1e0   : > { %1565 = vrcp.f32 %v515_v59 }
 0x1ed   : > { %v1566_v43 = vpop.eup %1565 }
 0x1ee   : > { %v520_v46 = vmul.f32 %v1566_v43, %v519_v21  ;;  %v525_v28 = vmul.f32 %v1566_v43, %v524_v23 }
 0x1f0   : > { %v521_v24 = vsub.f32 %v1955_v51, %v520_v46  ;;  %v526_v31 = vsub.f32 %v1960_v53, %v525_v28 }
 0x1f2   : > { %v527_v32 = vmax.f32 %v521_v24, 1e-07  ;;  %v528_v25 = vmin.f32 %v526_v31, 0.9999999 }
 0x1f4   : > { %v529_v52 = vmin.f32 %v527_v32, 0.9999999  ;;  %v530_v34 = vmax.f32 %v528_v25, 1e-07 }
 0x1f6   : > { %v531_v35 = vsub.f32 %v529_v52, %v1955_v51  ;;  %v533_v36 = vsub.f32 %v530_v34, %v1960_v53  ;;  %v2015_v40 = vsel %vm536_vm11, %v529_v52, %v1955_v51  ;;  %v2020_v41 = vsel %vm536_vm11, %v530_v34, %v1960_v53 }
 0x1f7   : > { %v540_v37 = vsub.f32 1.0, %v2015_v40  ;;  %v541_v42 = vmul.f32 2.0, %v2015_v40  ;;  %1567 = vlog2.f32 %v2015_v40  ;;  %v584_v22 = vsub.f32 1.0, %v2020_v41 }
 0x1f8   : > { %v532_v17 = vand.u32 2147483647, %v531_v35  ;;  %v534_v39 = vand.u32 2147483647, %v533_v36  ;;  %v585_v30 = vmul.f32 2.0, %v2020_v41 }
 0x1f9   : > { %v542_v26 = vsub.f32 1.0, %v541_v42  ;;  %1569 = vlog2.f32 %v540_v37  ;;  %v543_v61 = vmul.f32 %v540_v37, %v2015_v40  ;;  %v587_v14 = vmul.f32 %v584_v22, %v2020_v41 }
 0x1fa   : > { %v535_v51 = vmin.f32 %v532_v17, %v534_v39  ;;  %v586_v44 = vsub.f32 1.0, %v585_v30  ;;  %1571 = vlog2.f32 %v2020_v41 }
 0x1fb   : > { %v552_v53 = vmul.f32 %v542_v26, %v1811_v9  ;;  %1573 = vlog2.f32 %v584_v22  ;;  %v548_v38 = vmul.f32 %v542_v26, %v1819_v12  ;;  %v571_v4 = vmul.f32 2.0, %v543_v61 }
 0x1fc   : > { %v2032_v45 = vsel %vm536_vm11, %v535_v51, %v1972_v60  ;;  %v596_v47 = vmul.f32 %v586_v44, %v1811_v9  ;;  %v592_v33 = vmul.f32 %v586_v44, %v1819_v12  ;;  %1575 = vrcp.f32 %v543_v61 }
 0x1fd   : > { %v553_v48 = vadd.f32 %v552_v53, %v1809_v8  ;;  %v549_v57 = vadd.f32 %v548_v38, %v1814_v10  ;;  %v615_v43 = vmul.f32 2.0, %v587_v14  ;;  %1577 = vrcp.f32 %v587_v14 }
 0x1fe   : > { %v597_v49 = vadd.f32 %v596_v47, %v1809_v8  ;;  %v593_v50 = vadd.f32 %v592_v33, %v1814_v10  ;;  %vm689_vm15 = vcmp.gt.f32.partialorder %v2032_v45, 1e-06 }
 0x1ff   : > { %v554_v55 = vmul.f32 %v553_v48, %v542_v26  ;;  %v550_v63 = vmul.f32 %v549_v57, %v542_v26  ;;  %v574_v19 = vadd.f32 %v549_v57, %v548_v38  ;;  %v602_v57 = vmul.f32 %v2020_v41, %v1816_v11 }
 0x200   : > { %v598_v56 = vmul.f32 %v597_v49, %v586_v44  ;;  %v594_v2 = vmul.f32 %v593_v50, %v586_v44  ;;  %v618_v34 = vadd.f32 %v593_v50, %v592_v33  ;;  %v558_v33 = vmul.f32 %v2015_v40, %v1816_v11 }
 0x201   : > { %v555_v0 = vadd.f32 %v554_v55, %v1807_v7  ;;  %v551_v18 = vadd.f32 %v550_v63, %v1807_v7  ;;  %v578_v17 = vmul.f32 %v574_v19, %v543_v61 }
 0x202   : > { %v599_v60 = vadd.f32 %v598_v56, %v1807_v7  ;;  %v595_v32 = vadd.f32 %v594_v2, %v1807_v7  ;;  %v622_v49 = vmul.f32 %v618_v34, %v587_v14 }
 0x203   : > { %v556_v54 = vmul.f32 %v555_v0, %v542_v26  ;;  %v572_v36 = vmul.f32 %v571_v4, %v551_v18  ;;  %v577_v42 = vmul.f32 %v551_v18, %v542_v26 }
 0x204   : > { %v1568_v1 = vpop.eup %1567  ;;  %v600_v15 = vmul.f32 %v599_v60, %v586_v44  ;;  %v616_v38 = vmul.f32 %v615_v43, %v595_v32  ;;  %v621_v48 = vmul.f32 %v595_v32, %v586_v44 }
 0x205   : > { %v545_v62 = vmul.f32 0.6931472, %v1568_v1  ;;  %v557_v16 = vadd.f32 %v556_v54, %v1805_v6  ;;  %v579_v55 = vsub.f32 %v577_v42, %v578_v17 }
 0x206   : > { %v1570_v3 = vpop.eup %1569  ;;  %v601_v23 = vadd.f32 %v600_v15, %v1805_v6  ;;  %v623_v1 = vsub.f32 %v621_v48, %v622_v49 }
 0x207   : > { %v1572_v27 = vpop.eup %1571  ;;  %v547_v29 = vmul.f32 0.6931472, %v1570_v3  ;;  %v559_v20 = vmul.f32 %v545_v62, %v2015_v40  ;;  %v569_v24 = vmul.f32 %v557_v16, %v542_v26  ;;  %v580_v50 = vmul.f32 2.0, %v579_v55 }
 0x208   : > { %v589_v59 = vmul.f32 0.6931472, %v1572_v27  ;;  %v1574_v5 = vpop.eup %1573  ;;  %v613_v30 = vmul.f32 %v601_v23, %v586_v44  ;;  %v564_v3 = vmul.f32 %v557_v16, %v543_v61  ;;  %v608_v27 = vmul.f32 %v601_v23, %v587_v14 }
 0x209   : > { %v566_v58 = vsub.f32 %v545_v62, %v547_v29  ;;  %v591_v21 = vmul.f32 0.6931472, %v1574_v5  ;;  %v560_v46 = vmul.f32 %v547_v29, %v540_v37  ;;  %v1576_v44 = vpop.eup %1575  ;;  %v624_v29 = vmul.f32 2.0, %v623_v1 }
 0x20a   : > { %v603_v31 = vmul.f32 %v589_v59, %v2020_v41  ;;  %v581_v4 = vadd.f32 %v580_v50, %v557_v16  ;;  %v1578_v5 = vpop.eup %1577 }
 0x20b   : > { %v567_v28 = vmul.f32 %v566_v58, %v1821_v13  ;;  %v604_v25 = vmul.f32 %v591_v21, %v584_v22  ;;  %v610_v52 = vsub.f32 %v589_v59, %v591_v21  ;;  %v561_v51 = vadd.f32 %v560_v46, %v559_v20 }
 0x20c   : > { %v625_v18 = vadd.f32 %v624_v29, %v601_v23  ;;  %v576_v58 = vmul.f32 %v1576_v44, %v1821_v13  ;;  %v582_v19 = vmul.f32 2.0, %v581_v4  ;;  %v620_v21 = vmul.f32 %v1578_v5, %v1821_v13 }
 0x20d   : > { %v568_v35 = vadd.f32 %v567_v28, %v1816_v11  ;;  %v611_v39 = vmul.f32 %v610_v52, %v1821_v13  ;;  %v605_v53 = vadd.f32 %v604_v25, %v603_v31  ;;  %v562_v26 = vmul.f32 %v561_v51, %v1821_v13 }
 0x20e   : > { %v626_v43 = vmul.f32 2.0, %v625_v18  ;;  %v583_v46 = vsub.f32 %v576_v58, %v582_v19 }
 0x20f   : > { %v570_v37 = vadd.f32 %v569_v24, %v568_v35  ;;  %v612_v47 = vadd.f32 %v611_v39, %v1816_v11  ;;  %v606_v0 = vmul.f32 %v605_v53, %v1821_v13  ;;  %v563_v63 = vadd.f32 %v562_v26, %v558_v33 }
 0x210   : > { %v627_v61 = vsub.f32 %v620_v21, %v626_v43 }
 0x211   : > { %v573_v22 = vsub.f32 %v570_v37, %v572_v36  ;;  %v614_v56 = vadd.f32 %v613_v30, %v612_v47  ;;  %v607_v15 = vadd.f32 %v606_v0, %v602_v57  ;;  %v565_v59 = vadd.f32 %v564_v3, %v563_v63 }
 0x213   : > { %v629_v60 = vadd.f32 1e-07, %v573_v22  ;;  %v617_v54 = vsub.f32 %v614_v56, %v616_v38  ;;  %v609_v2 = vadd.f32 %v608_v27, %v607_v15 }
 0x215   : > { %1579 = vrcp.f32 %v629_v60  ;;  %v632_v62 = vadd.f32 1e-07, %v617_v54  ;;  %v628_v20 = vsub.f32 %v609_v2, %v565_v59 }
 0x217   : > { %1581 = vrcp.f32 %v632_v62 }
 0x222   : > { %v1580_v28 = vpop.eup %1579 }
 0x223   : > { %v635_v24 = vmul.f32 %v1580_v28, %v628_v20  ;;  %v646_v16 = vmul.f32 %v1580_v28, %v617_v54 }
 0x224   : > { %v1582_v31 = vpop.eup %1581 }
 0x225   : > { %v637_v14 = vsub.f32 %v2020_v41, %v635_v24  ;;  %v643_v32 = vmul.f32 %v635_v24, %v583_v46  ;;  %v636_v25 = vmul.f32 %v1582_v31, %v628_v20  ;;  %v648_v23 = vmul.f32 %v1582_v31, %v573_v22 }
 0x226   : > { %v647_v39 = vsub.f32 1.0, %v646_v16 }
 0x227   : > { %v639_v52 = vmax.f32 %v637_v14, 1e-07  ;;  %v644_v34 = vadd.f32 %v643_v32, %v573_v22  ;;  %v638_v35 = vadd.f32 %v636_v25, %v2015_v40  ;;  %v650_v36 = vmul.f32 %v636_v25, %v627_v61 }
 0x228   : > { %v649_v37 = vsub.f32 1.0, %v648_v23 }
 0x229   : > { %v640_v42 = vmin.f32 %v639_v52, 0.9999999  ;;  %v645_v17 = vmul.f32 %v1580_v28, %v644_v34  ;;  %v641_v30 = vmax.f32 %v638_v35, 1e-07  ;;  %v651_v51 = vsub.f32 %v617_v54, %v650_v36 }
 0x22b   : > { %vm653_vm12 = vcmp.eq.f32.partialorder %v637_v14, %v640_v42  ;;  %v642_v53 = vmin.f32 %v641_v30, 0.9999999  ;;  %v652_v47 = vmul.f32 %v1582_v31, %v651_v51  ;;  %v661_v54 = vsub.f32 %v640_v42, %v2015_v40 }
 0x22c   : > { %v655_v38 = vsel %vm653_vm12, %v645_v17, 0.0  ;;  %v657_v48 = vsel %vm653_vm12, %v647_v39, 0.0 }
 0x22d   : > { %vm654_vm13 = vcmp.eq.f32.partialorder %v638_v35, %v642_v53  ;;  %v1445_v49 = vadd.f32 -1.0, %v655_v38  ;;  %v662_v1 = vsub.f32 %v642_v53, %v2020_v41 }
 0x22e   : > { %v658_v55 = vsel %vm654_vm13, %v649_v37, 0.0  ;;  %v659_v33 = vsel %vm654_vm13, %v652_v47, 0.0 }
 0x22f   : > { %v1446_v56 = vadd.f32 -1.0, %v659_v33  ;;  %v664_v22 = vmul.f32 %v658_v55, %v657_v48  ;;  %v671_v44 = vmul.f32 %v662_v1, %v657_v48  ;;  %v675_v62 = vmul.f32 %v1445_v49, %v662_v1 }
 0x230   : > { %v676_v63 = vmul.f32 %v661_v54, %v658_v55 }
 0x231   : > { %v663_v26 = vmul.f32 %v1446_v56, %v1445_v49  ;;  %v670_v50 = vmul.f32 %v1446_v56, %v661_v54 }
 0x232   : > { %v677_v15 = vsub.f32 %v675_v62, %v676_v63 }
 0x233   : > { %v665_v57 = vsub.f32 %v663_v26, %v664_v22  ;;  %v672_v3 = vsub.f32 %v670_v50, %v671_v44 }
 0x235   : > { %v666_v0 = vand.u32 2147483647, %v665_v57 }
 0x237   : > { %vm667_vm14 = vcmp.gt.f32.partialorder %v666_v0, 0.0 }
 0x238   : > { %v668_v60 = vsel %vm667_vm14, %v665_v57, 1e-30 }
 0x239   : > { %1583 = vrcp.f32 %v668_v60 }
 0x246   : > { %v1584_v27 = vpop.eup %1583 }
 0x247   : > { %v673_v29 = vmul.f32 %v1584_v27, %v672_v3  ;;  %v678_v4 = vmul.f32 %v1584_v27, %v677_v15 }
 0x249   : > { %v674_v59 = vsub.f32 %v2015_v40, %v673_v29  ;;  %v679_v2 = vsub.f32 %v2020_v41, %v678_v4 }
 0x24b   : > { %v680_v5 = vmax.f32 %v674_v59, 1e-07  ;;  %v681_v18 = vmin.f32 %v679_v2, 0.9999999 }
 0x24d   : > { %v682_v58 = vmin.f32 %v680_v5, 0.9999999  ;;  %v683_v19 = vmax.f32 %v681_v18, 1e-07 }
 0x24f   : > { %v684_v20 = vsub.f32 %v682_v58, %v2015_v40  ;;  %v686_v21 = vsub.f32 %v683_v19, %v2020_v41  ;;  %v2075_v43 = vsel %vm689_vm15, %v682_v58, %v2015_v40  ;;  %v2080_v46 = vsel %vm689_vm15, %v683_v19, %v2020_v41 }
 0x250   : > { %v693_v28 = vsub.f32 1.0, %v2075_v43  ;;  %v694_v24 = vmul.f32 2.0, %v2075_v43  ;;  %1585 = vlog2.f32 %v2075_v43  ;;  %v737_v14 = vsub.f32 1.0, %v2080_v46 }
 0x251   : > { %v685_v61 = vand.u32 2147483647, %v684_v20  ;;  %v687_v31 = vand.u32 2147483647, %v686_v21  ;;  %v738_v32 = vmul.f32 2.0, %v2080_v46 }
 0x252   : > { %v695_v16 = vsub.f32 1.0, %v694_v24  ;;  %1587 = vlog2.f32 %v693_v28  ;;  %v696_v47 = vmul.f32 %v693_v28, %v2075_v43  ;;  %v740_v33 = vmul.f32 %v737_v14, %v2080_v46 }
 0x253   : > { %v688_v40 = vmin.f32 %v685_v61, %v687_v31  ;;  %v739_v25 = vsub.f32 1.0, %v738_v32  ;;  %1589 = vlog2.f32 %v2080_v46 }
 0x254   : > { %v705_v41 = vmul.f32 %v695_v16, %v1811_v9  ;;  %1591 = vlog2.f32 %v737_v14  ;;  %v701_v23 = vmul.f32 %v695_v16, %v1819_v12  ;;  %v724_v0 = vmul.f32 2.0, %v696_v47 }
 0x255   : > { %v2092_v52 = vsel %vm689_vm15, %v688_v40, %v2032_v45  ;;  %v749_v34 = vmul.f32 %v739_v25, %v1811_v9  ;;  %v745_v17 = vmul.f32 %v739_v25, %v1819_v12  ;;  %1593 = vrcp.f32 %v696_v47 }
 0x256   : > { %v706_v35 = vadd.f32 %v705_v41, %v1809_v8  ;;  %v702_v30 = vadd.f32 %v701_v23, %v1814_v10  ;;  %v768_v27 = vmul.f32 2.0, %v740_v33  ;;  %1595 = vrcp.f32 %v740_v33 }
 0x257   : > { %v750_v36 = vadd.f32 %v749_v34, %v1809_v8  ;;  %v746_v38 = vadd.f32 %v745_v17, %v1814_v10  ;;  %vm842_vm3 = vcmp.gt.f32.partialorder %v2092_v52, 1e-06 }
 0x258   : > { %v707_v42 = vmul.f32 %v706_v35, %v695_v16  ;;  %v703_v49 = vmul.f32 %v702_v30, %v695_v16  ;;  %v727_v62 = vadd.f32 %v702_v30, %v701_v23  ;;  %v755_v30 = vmul.f32 %v2080_v46, %v1816_v11 }
 0x259   : > { %v751_v39 = vmul.f32 %v750_v36, %v739_v25  ;;  %v747_v54 = vmul.f32 %v746_v38, %v739_v25  ;;  %v771_v19 = vadd.f32 %v746_v38, %v745_v17  ;;  %v711_v17 = vmul.f32 %v2075_v43, %v1816_v11 }
 0x25a   : > { %v708_v51 = vadd.f32 %v707_v42, %v1807_v7  ;;  %v704_v50 = vadd.f32 %v703_v49, %v1807_v7  ;;  %v731_v61 = vmul.f32 %v727_v62, %v696_v47 }
 0x25b   : > { %v752_v45 = vadd.f32 %v751_v39, %v1807_v7  ;;  %v748_v5 = vadd.f32 %v747_v54, %v1807_v7  ;;  %v775_v36 = vmul.f32 %v771_v19, %v740_v33 }
 0x25c   : > { %v709_v37 = vmul.f32 %v708_v51, %v695_v16  ;;  %v725_v21 = vmul.f32 %v724_v0, %v704_v50  ;;  %v730_v24 = vmul.f32 %v704_v50, %v695_v16 }
 0x25d   : > { %v1586_v53 = vpop.eup %1585  ;;  %v753_v56 = vmul.f32 %v752_v45, %v739_v25  ;;  %v769_v23 = vmul.f32 %v768_v27, %v748_v5  ;;  %v774_v35 = vmul.f32 %v748_v5, %v739_v25 }
 0x25e   : > { %v698_v48 = vmul.f32 0.6931472, %v1586_v53  ;;  %v710_v57 = vadd.f32 %v709_v37, %v1805_v6  ;;  %v732_v42 = vsub.f32 %v730_v24, %v731_v61 }
 0x25f   : > { %v1588_v55 = vpop.eup %1587  ;;  %v754_v15 = vadd.f32 %v753_v56, %v1805_v6  ;;  %v776_v53 = vsub.f32 %v774_v35, %v775_v36 }
 0x260   : > { %v1590_v22 = vpop.eup %1589  ;;  %v700_v26 = vmul.f32 0.6931472, %v1588_v55  ;;  %v712_v63 = vmul.f32 %v698_v48, %v2075_v43  ;;  %v722_v59 = vmul.f32 %v710_v57, %v695_v16  ;;  %v733_v38 = vmul.f32 2.0, %v732_v42 }
 0x261   : > { %v742_v60 = vmul.f32 0.6931472, %v1590_v22  ;;  %v1592_v1 = vpop.eup %1591  ;;  %v766_v32 = vmul.f32 %v754_v15, %v739_v25  ;;  %v717_v55 = vmul.f32 %v710_v57, %v696_v47  ;;  %v761_v22 = vmul.f32 %v754_v15, %v740_v33 }
 0x262   : > { %v719_v44 = vsub.f32 %v698_v48, %v700_v26  ;;  %v744_v3 = vmul.f32 0.6931472, %v1592_v1  ;;  %v713_v29 = vmul.f32 %v700_v26, %v693_v28  ;;  %v1594_v25 = vpop.eup %1593  ;;  %v777_v26 = vmul.f32 2.0, %v776_v53 }
 0x263   : > { %v756_v2 = vmul.f32 %v742_v60, %v2080_v46  ;;  %v734_v0 = vadd.f32 %v733_v38, %v710_v57  ;;  %v1596_v1 = vpop.eup %1595 }
 0x264   : > { %v720_v4 = vmul.f32 %v719_v44, %v1821_v13  ;;  %v757_v18 = vmul.f32 %v744_v3, %v737_v14  ;;  %v763_v58 = vsub.f32 %v742_v60, %v744_v3  ;;  %v714_v40 = vadd.f32 %v713_v29, %v712_v63 }
 0x265   : > { %v778_v50 = vadd.f32 %v777_v26, %v754_v15  ;;  %v729_v44 = vmul.f32 %v1594_v25, %v1821_v13  ;;  %v735_v62 = vmul.f32 2.0, %v734_v0  ;;  %v773_v3 = vmul.f32 %v1596_v1, %v1821_v13 }
 0x266   : > { %v721_v20 = vadd.f32 %v720_v4, %v1816_v11  ;;  %v764_v31 = vmul.f32 %v763_v58, %v1821_v13  ;;  %v758_v41 = vadd.f32 %v757_v18, %v756_v2  ;;  %v715_v16 = vmul.f32 %v714_v40, %v1821_v13 }
 0x267   : > { %v779_v27 = vmul.f32 2.0, %v778_v50  ;;  %v736_v29 = vsub.f32 %v729_v44, %v735_v62 }
 0x268   : > { %v723_v28 = vadd.f32 %v722_v59, %v721_v20  ;;  %v765_v34 = vadd.f32 %v764_v31, %v1816_v11  ;;  %v759_v51 = vmul.f32 %v758_v41, %v1821_v13  ;;  %v716_v49 = vadd.f32 %v715_v16, %v711_v17 }
 0x269   : > { %v780_v47 = vsub.f32 %v773_v3, %v779_v27 }
 0x26a   : > { %v726_v14 = vsub.f32 %v723_v28, %v725_v21  ;;  %v767_v39 = vadd.f32 %v766_v32, %v765_v34  ;;  %v760_v56 = vadd.f32 %v759_v51, %v755_v30  ;;  %v718_v60 = vadd.f32 %v717_v55, %v716_v49 }
 0x26c   : > { %v782_v45 = vadd.f32 1e-07, %v726_v14  ;;  %v770_v37 = vsub.f32 %v767_v39, %v769_v23  ;;  %v762_v54 = vadd.f32 %v761_v22, %v760_v56 }
 0x26e   : > { %1597 = vrcp.f32 %v782_v45  ;;  %v785_v48 = vadd.f32 1e-07, %v770_v37  ;;  %v781_v63 = vsub.f32 %v762_v54, %v718_v60 }
 0x270   : > { %1599 = vrcp.f32 %v785_v48 }
 0x27b   : > { %v1598_v4 = vpop.eup %1597 }
 0x27c   : > { %v788_v59 = vmul.f32 %v1598_v4, %v781_v63  ;;  %v799_v57 = vmul.f32 %v1598_v4, %v770_v37 }
 0x27d   : > { %v1600_v2 = vpop.eup %1599 }
 0x27e   : > { %v790_v33 = vsub.f32 %v2080_v46, %v788_v59  ;;  %v796_v5 = vmul.f32 %v788_v59, %v736_v29  ;;  %v789_v18 = vmul.f32 %v1600_v2, %v781_v63  ;;  %v801_v15 = vmul.f32 %v1600_v2, %v726_v14 }
 0x27f   : > { %v800_v31 = vsub.f32 1.0, %v799_v57 }
 0x280   : > { %v792_v58 = vmax.f32 %v790_v33, 1e-07  ;;  %v797_v19 = vadd.f32 %v796_v5, %v726_v14  ;;  %v791_v20 = vadd.f32 %v789_v18, %v2075_v43  ;;  %v803_v21 = vmul.f32 %v789_v18, %v780_v47 }
 0x281   : > { %v802_v28 = vsub.f32 1.0, %v801_v15 }
 0x282   : > { %v793_v24 = vmin.f32 %v792_v58, 0.9999999  ;;  %v798_v61 = vmul.f32 %v1598_v4, %v797_v19  ;;  %v794_v32 = vmax.f32 %v791_v20, 1e-07  ;;  %v804_v40 = vsub.f32 %v770_v37, %v803_v21 }
 0x284   : > { %vm806_vm0 = vcmp.eq.f32.partialorder %v790_v33, %v793_v24  ;;  %v795_v41 = vmin.f32 %v794_v32, 0.9999999  ;;  %v805_v34 = vmul.f32 %v1600_v2, %v804_v40  ;;  %v814_v37 = vsub.f32 %v793_v24, %v2075_v43 }
 0x285   : > { %v808_v23 = vsel %vm806_vm0, %v798_v61, 0.0  ;;  %v810_v35 = vsel %vm806_vm0, %v800_v31, 0.0 }
 0x286   : > { %vm807_vm1 = vcmp.eq.f32.partialorder %v791_v20, %v795_v41  ;;  %v1447_v36 = vadd.f32 -1.0, %v808_v23  ;;  %v815_v53 = vsub.f32 %v795_v41, %v2080_v46 }
 0x287   : > { %v811_v42 = vsel %vm807_vm1, %v802_v28, 0.0  ;;  %v812_v17 = vsel %vm807_vm1, %v805_v34, 0.0 }
 0x288   : > { %v1448_v39 = vadd.f32 -1.0, %v812_v17  ;;  %v817_v14 = vmul.f32 %v811_v42, %v810_v35  ;;  %v824_v25 = vmul.f32 %v815_v53, %v810_v35  ;;  %v828_v48 = vmul.f32 %v1447_v36, %v815_v53 }
 0x289   : > { %v829_v49 = vmul.f32 %v814_v37, %v811_v42 }
 0x28a   : > { %v816_v16 = vmul.f32 %v1448_v39, %v1447_v36  ;;  %v823_v38 = vmul.f32 %v1448_v39, %v814_v37 }
 0x28b   : > { %v830_v56 = vsub.f32 %v828_v48, %v829_v49 }
 0x28c   : > { %v818_v30 = vsub.f32 %v816_v16, %v817_v14  ;;  %v825_v55 = vsub.f32 %v823_v38, %v824_v25 }
 0x28e   : > { %v819_v51 = vand.u32 2147483647, %v818_v30 }
 0x290   : > { %vm820_vm2 = vcmp.gt.f32.partialorder %v819_v51, 0.0 }
 0x291   : > { %v821_v45 = vsel %vm820_vm2, %v818_v30, 1e-30 }
 0x292   : > { %1601 = vrcp.f32 %v821_v45 }
 0x29f   : > { %v1602_v22 = vpop.eup %1601 }
 0x2a0   : > { %v826_v26 = vmul.f32 %v1602_v22, %v825_v55  ;;  %v831_v0 = vmul.f32 %v1602_v22, %v830_v56 }
 0x2a2   : > { %v827_v60 = vsub.f32 %v2075_v43, %v826_v26  ;;  %v832_v54 = vsub.f32 %v2080_v46, %v831_v0 }
 0x2a4   : > { %v833_v1 = vmax.f32 %v827_v60, 1e-07  ;;  %v834_v50 = vmin.f32 %v832_v54, 0.9999999 }
 0x2a6   : > { %v835_v44 = vmin.f32 %v833_v1, 0.9999999  ;;  %v836_v62 = vmax.f32 %v834_v50, 1e-07 }
 0x2a8   : > { %v837_v63 = vsub.f32 %v835_v44, %v2075_v43  ;;  %v839_v3 = vsub.f32 %v836_v62, %v2080_v46  ;;  %v2135_v27 = vsel %vm842_vm3, %v835_v44, %v2075_v43  ;;  %v2140_v29 = vsel %vm842_vm3, %v836_v62, %v2080_v46 }
 0x2a9   : > { %v846_v4 = vsub.f32 1.0, %v2135_v27  ;;  %v847_v59 = vmul.f32 2.0, %v2135_v27  ;;  %1603 = vlog2.f32 %v2135_v27  ;;  %v890_v33 = vsub.f32 1.0, %v2140_v29 }
 0x2aa   : > { %v838_v47 = vand.u32 2147483647, %v837_v63  ;;  %v840_v2 = vand.u32 2147483647, %v839_v3  ;;  %v891_v5 = vmul.f32 2.0, %v2140_v29 }
 0x2ab   : > { %v848_v57 = vsub.f32 1.0, %v847_v59  ;;  %1605 = vlog2.f32 %v846_v4  ;;  %v849_v34 = vmul.f32 %v846_v4, %v2135_v27  ;;  %v893_v17 = vmul.f32 %v890_v33, %v2140_v29 }
 0x2ac   : > { %v841_v43 = vmin.f32 %v838_v47, %v840_v2  ;;  %v892_v18 = vsub.f32 1.0, %v891_v5  ;;  %1607 = vlog2.f32 %v2140_v29 }
 0x2ad   : > { %v858_v46 = vmul.f32 %v848_v57, %v1811_v9  ;;  %1609 = vlog2.f32 %v890_v33  ;;  %v854_v15 = vmul.f32 %v848_v57, %v1819_v12  ;;  %v877_v51 = vmul.f32 2.0, %v849_v34 }
 0x2ae   : > { %v2152_v58 = vsel %vm842_vm3, %v841_v43, %v2092_v52  ;;  %v902_v19 = vmul.f32 %v892_v18, %v1811_v9  ;;  %v898_v61 = vmul.f32 %v892_v18, %v1819_v12  ;;  %1611 = vrcp.f32 %v849_v34 }
 0x2af   : > { %v859_v20 = vadd.f32 %v858_v46, %v1809_v8  ;;  %v855_v32 = vadd.f32 %v854_v15, %v1814_v10  ;;  %v921_v22 = vmul.f32 2.0, %v893_v17  ;;  %1613 = vrcp.f32 %v893_v17 }
 0x2b0   : > { %v903_v21 = vadd.f32 %v902_v19, %v1809_v8  ;;  %v899_v23 = vadd.f32 %v898_v61, %v1814_v10  ;;  %vm995_vm7 = vcmp.gt.f32.partialorder %v2152_v58, 1e-06 }
 0x2b1   : > { %v860_v24 = vmul.f32 %v859_v20, %v848_v57  ;;  %v856_v36 = vmul.f32 %v855_v32, %v848_v57  ;;  %v880_v48 = vadd.f32 %v855_v32, %v854_v15  ;;  %v908_v32 = vmul.f32 %v2140_v29, %v1816_v11 }
 0x2b2   : > { %v904_v31 = vmul.f32 %v903_v21, %v892_v18  ;;  %v900_v37 = vmul.f32 %v899_v23, %v892_v18  ;;  %v924_v62 = vadd.f32 %v899_v23, %v898_v61  ;;  %v864_v61 = vmul.f32 %v2135_v27, %v1816_v11 }
 0x2b3   : > { %v861_v40 = vadd.f32 %v860_v24, %v1807_v7  ;;  %v857_v38 = vadd.f32 %v856_v36, %v1807_v7  ;;  %v884_v47 = vmul.f32 %v880_v48, %v849_v34 }
 0x2b4   : > { %v905_v52 = vadd.f32 %v904_v31, %v1807_v7  ;;  %v901_v1 = vadd.f32 %v900_v37, %v1807_v7  ;;  %v928_v21 = vmul.f32 %v924_v62, %v893_v17 }
 0x2b5   : > { %v862_v28 = vmul.f32 %v861_v40, %v848_v57  ;;  %v878_v3 = vmul.f32 %v877_v51, %v857_v38  ;;  %v883_v59 = vmul.f32 %v857_v38, %v848_v57 }
 0x2b6   : > { %v1604_v41 = vpop.eup %1603  ;;  %v906_v39 = vmul.f32 %v905_v52, %v892_v18  ;;  %v922_v15 = vmul.f32 %v921_v22, %v901_v1  ;;  %v927_v20 = vmul.f32 %v901_v1, %v892_v18 }
 0x2b7   : > { %v851_v35 = vmul.f32 0.6931472, %v1604_v41  ;;  %v863_v30 = vadd.f32 %v862_v28, %v1805_v6  ;;  %v885_v24 = vsub.f32 %v883_v59, %v884_v47 }
 0x2b8   : > { %v1606_v42 = vpop.eup %1605  ;;  %v907_v56 = vadd.f32 %v906_v39, %v1805_v6  ;;  %v929_v41 = vsub.f32 %v927_v20, %v928_v21 }
 0x2b9   : > { %v1608_v14 = vpop.eup %1607  ;;  %v853_v16 = vmul.f32 0.6931472, %v1606_v42  ;;  %v865_v49 = vmul.f32 %v851_v35, %v2135_v27  ;;  %v875_v60 = vmul.f32 %v863_v30, %v848_v57  ;;  %v886_v23 = vmul.f32 2.0, %v885_v24 }
 0x2ba   : > { %v895_v45 = vmul.f32 0.6931472, %v1608_v14  ;;  %v1610_v53 = vpop.eup %1609  ;;  %v919_v5 = vmul.f32 %v907_v56, %v892_v18  ;;  %v870_v42 = vmul.f32 %v863_v30, %v849_v34  ;;  %v914_v14 = vmul.f32 %v907_v56, %v893_v17 }
 0x2bb   : > { %v872_v25 = vsub.f32 %v851_v35, %v853_v16  ;;  %v897_v55 = vmul.f32 0.6931472, %v1610_v53  ;;  %v866_v26 = vmul.f32 %v853_v16, %v846_v4  ;;  %v1612_v18 = vpop.eup %1611  ;;  %v930_v16 = vmul.f32 2.0, %v929_v41 }
 0x2bc   : > { %v909_v54 = vmul.f32 %v895_v45, %v2140_v29  ;;  %v887_v51 = vadd.f32 %v886_v23, %v863_v30  ;;  %v1614_v53 = vpop.eup %1613 }
 0x2bd   : > { %v873_v0 = vmul.f32 %v872_v25, %v1821_v13  ;;  %v910_v50 = vmul.f32 %v897_v55, %v890_v33  ;;  %v916_v44 = vsub.f32 %v895_v45, %v897_v55  ;;  %v867_v43 = vadd.f32 %v866_v26, %v865_v49 }
 0x2be   : > { %v931_v38 = vadd.f32 %v930_v16, %v907_v56  ;;  %v882_v25 = vmul.f32 %v1612_v18, %v1821_v13  ;;  %v888_v48 = vmul.f32 2.0, %v887_v51  ;;  %v926_v55 = vmul.f32 %v1614_v53, %v1821_v13 }
 0x2bf   : > { %v874_v63 = vadd.f32 %v873_v0, %v1816_v11  ;;  %v917_v2 = vmul.f32 %v916_v44, %v1821_v13  ;;  %v911_v46 = vadd.f32 %v910_v50, %v909_v54  ;;  %v868_v57 = vmul.f32 %v867_v43, %v1821_v13 }
 0x2c0   : > { %v932_v22 = vmul.f32 2.0, %v931_v38  ;;  %v889_v26 = vsub.f32 %v882_v25, %v888_v48 }
 0x2c1   : > { %v876_v4 = vadd.f32 %v875_v60, %v874_v63  ;;  %v918_v19 = vadd.f32 %v917_v2, %v1816_v11  ;;  %v912_v40 = vmul.f32 %v911_v46, %v1821_v13  ;;  %v869_v36 = vadd.f32 %v868_v57, %v864_v61 }
 0x2c2   : > { %v933_v34 = vsub.f32 %v926_v55, %v932_v22 }
 0x2c3   : > { %v879_v33 = vsub.f32 %v876_v4, %v878_v3  ;;  %v920_v31 = vadd.f32 %v919_v5, %v918_v19  ;;  %v913_v39 = vadd.f32 %v912_v40, %v908_v32  ;;  %v871_v45 = vadd.f32 %v870_v42, %v869_v36 }
 0x2c5   : > { %v935_v52 = vadd.f32 1e-07, %v879_v33  ;;  %v923_v28 = vsub.f32 %v920_v31, %v922_v15  ;;  %v915_v37 = vadd.f32 %v914_v14, %v913_v39 }
 0x2c7   : > { %1615 = vrcp.f32 %v935_v52  ;;  %v938_v35 = vadd.f32 1e-07, %v923_v28  ;;  %v934_v49 = vsub.f32 %v915_v37, %v871_v45 }
 0x2c9   : > { %1617 = vrcp.f32 %v938_v35 }
 0x2d4   : > { %v1616_v0 = vpop.eup %1615 }
 0x2d5   : > { %v941_v60 = vmul.f32 %v1616_v0, %v934_v49  ;;  %v952_v30 = vmul.f32 %v1616_v0, %v923_v28 }
 0x2d6   : > { %v1618_v54 = vpop.eup %1617 }
 0x2d7   : > { %v943_v17 = vsub.f32 %v2140_v29, %v941_v60  ;;  %v949_v1 = vmul.f32 %v941_v60, %v889_v26  ;;  %v942_v50 = vmul.f32 %v1618_v54, %v934_v49  ;;  %v954_v56 = vmul.f32 %v1618_v54, %v879_v33 }
 0x2d8   : > { %v953_v2 = vsub.f32 1.0, %v952_v30 }
 0x2d9   : > { %v945_v44 = vmax.f32 %v943_v17, 1e-07  ;;  %v950_v62 = vadd.f32 %v949_v1, %v879_v33  ;;  %v944_v63 = vadd.f32 %v942_v50, %v2135_v27  ;;  %v956_v3 = vmul.f32 %v942_v50, %v933_v34 }
 0x2da   : > { %v955_v4 = vsub.f32 1.0, %v954_v56 }
 0x2db   : > { %v946_v59 = vmin.f32 %v945_v44, 0.9999999  ;;  %v951_v47 = vmul.f32 %v1616_v0, %v950_v62  ;;  %v947_v5 = vmax.f32 %v944_v63, 1e-07  ;;  %v957_v43 = vsub.f32 %v923_v28, %v956_v3 }
 0x2dd   : > { %vm959_vm4 = vcmp.eq.f32.partialorder %v943_v17, %v946_v59  ;;  %v948_v46 = vmin.f32 %v947_v5, 0.9999999  ;;  %v958_v19 = vmul.f32 %v1618_v54, %v957_v43  ;;  %v967_v28 = vsub.f32 %v946_v59, %v2135_v27 }
 0x2de   : > { %v961_v15 = vsel %vm959_vm4, %v951_v47, 0.0  ;;  %v963_v20 = vsel %vm959_vm4, %v953_v2, 0.0 }
 0x2df   : > { %vm960_vm5 = vcmp.eq.f32.partialorder %v944_v63, %v948_v46  ;;  %v1449_v21 = vadd.f32 -1.0, %v961_v15  ;;  %v968_v41 = vsub.f32 %v948_v46, %v2140_v29 }
 0x2e0   : > { %v964_v24 = vsel %vm960_vm5, %v955_v4, 0.0  ;;  %v965_v61 = vsel %vm960_vm5, %v958_v19, 0.0 }
 0x2e1   : > { %v1450_v31 = vadd.f32 -1.0, %v965_v61  ;;  %v970_v33 = vmul.f32 %v964_v24, %v963_v20  ;;  %v977_v18 = vmul.f32 %v968_v41, %v963_v20  ;;  %v981_v35 = vmul.f32 %v1449_v21, %v968_v41 }
 0x2e2   : > { %v982_v36 = vmul.f32 %v967_v28, %v964_v24 }
 0x2e3   : > { %v969_v57 = vmul.f32 %v1450_v31, %v1449_v21  ;;  %v976_v23 = vmul.f32 %v1450_v31, %v967_v28 }
 0x2e4   : > { %v983_v39 = vsub.f32 %v981_v35, %v982_v36 }
 0x2e5   : > { %v971_v32 = vsub.f32 %v969_v57, %v970_v33  ;;  %v978_v42 = vsub.f32 %v976_v23, %v977_v18 }
 0x2e7   : > { %v972_v40 = vand.u32 2147483647, %v971_v32 }
 0x2e9   : > { %vm973_vm6 = vcmp.gt.f32.partialorder %v972_v40, 0.0 }
 0x2ea   : > { %v974_v52 = vsel %vm973_vm6, %v971_v32, 1e-30 }
 0x2eb   : > { %1619 = vrcp.f32 %v974_v52 }
 0x2f8   : > { %v1620_v14 = vpop.eup %1619 }
 0x2f9   : > { %v979_v16 = vmul.f32 %v1620_v14, %v978_v42  ;;  %v984_v51 = vmul.f32 %v1620_v14, %v983_v39 }
 0x2fb   : > { %v980_v45 = vsub.f32 %v2135_v27, %v979_v16  ;;  %v985_v37 = vsub.f32 %v2140_v29, %v984_v51 }
 0x2fd   : > { %v986_v53 = vmax.f32 %v980_v45, 1e-07  ;;  %v987_v38 = vmin.f32 %v985_v37, 0.9999999 }
 0x2ff   : > { %v988_v25 = vmin.f32 %v986_v53, 0.9999999  ;;  %v989_v48 = vmax.f32 %v987_v38, 1e-07 }
 0x301   : > { %v990_v49 = vsub.f32 %v988_v25, %v2135_v27  ;;  %v992_v55 = vsub.f32 %v989_v48, %v2140_v29  ;;  %v2195_v22 = vsel %vm995_vm7, %v988_v25, %v2135_v27  ;;  %v2200_v26 = vsel %vm995_vm7, %v989_v48, %v2140_v29 }
 0x302   : > { %v999_v0 = vsub.f32 1.0, %v2195_v22  ;;  %v1000_v60 = vmul.f32 2.0, %v2195_v22  ;;  %1621 = vlog2.f32 %v2195_v22  ;;  %v1043_v17 = vsub.f32 1.0, %v2200_v26 }
 0x303   : > { %v991_v34 = vand.u32 2147483647, %v990_v49  ;;  %v993_v54 = vand.u32 2147483647, %v992_v55  ;;  %v1044_v1 = vmul.f32 2.0, %v2200_v26 }
 0x304   : > { %v1001_v30 = vsub.f32 1.0, %v1000_v60  ;;  %1623 = vlog2.f32 %v999_v0  ;;  %v1002_v19 = vmul.f32 %v999_v0, %v2195_v22  ;;  %v1046_v61 = vmul.f32 %v1043_v17, %v2200_v26 }
 0x305   : > { %v994_v27 = vmin.f32 %v991_v34, %v993_v54  ;;  %v1045_v50 = vsub.f32 1.0, %v1044_v1  ;;  %1625 = vlog2.f32 %v2200_v26 }
 0x306   : > { %v1011_v29 = vmul.f32 %v1001_v30, %v1811_v9  ;;  %1627 = vlog2.f32 %v1043_v17  ;;  %v1007_v56 = vmul.f32 %v1001_v30, %v1819_v12  ;;  %v1030_v40 = vmul.f32 2.0, %v1002_v19 }
 0x307   : > { %v2212_v44 = vsel %vm995_vm7, %v994_v27, %v2152_v58  ;;  %v1055_v62 = vmul.f32 %v1045_v50, %v1811_v9  ;;  %v1051_v47 = vmul.f32 %v1045_v50, %v1819_v12  ;;  %1629 = vrcp.f32 %v1002_v19 }
 0x308   : > { %v1012_v63 = vadd.f32 %v1011_v29, %v1809_v8  ;;  %v1008_v5 = vadd.f32 %v1007_v56, %v1814_v10  ;;  %v1074_v14 = vmul.f32 2.0, %v1046_v61  ;;  %1631 = vrcp.f32 %v1046_v61 }
 0x309   : > { %v1056_v3 = vadd.f32 %v1055_v62, %v1809_v8  ;;  %v1052_v15 = vadd.f32 %v1051_v47, %v1814_v10  ;;  %vm1148_vm11 = vcmp.gt.f32.partialorder %v2212_v44, 1e-06 }
 0x30a   : > { %v1013_v59 = vmul.f32 %v1012_v63, %v1001_v30  ;;  %v1009_v21 = vmul.f32 %v1008_v5, %v1001_v30  ;;  %v1033_v35 = vadd.f32 %v1008_v5, %v1007_v56  ;;  %v1061_v5 = vmul.f32 %v2200_v26, %v1816_v11 }
 0x30b   : > { %v1057_v2 = vmul.f32 %v1056_v3, %v1045_v50  ;;  %v1053_v28 = vmul.f32 %v1052_v15, %v1045_v50  ;;  %v1077_v48 = vadd.f32 %v1052_v15, %v1051_v47  ;;  %v1017_v47 = vmul.f32 %v2195_v22, %v1816_v11 }
 0x30c   : > { %v1014_v43 = vadd.f32 %v1013_v59, %v1807_v7  ;;  %v1010_v23 = vadd.f32 %v1009_v21, %v1807_v7  ;;  %v1037_v34 = vmul.f32 %v1033_v35, %v1002_v19 }
 0x30d   : > { %v1058_v58 = vadd.f32 %v1057_v2, %v1807_v7  ;;  %v1054_v53 = vadd.f32 %v1053_v28, %v1807_v7  ;;  %v1081_v3 = vmul.f32 %v1077_v48, %v1046_v61 }
 0x30e   : > { %v1015_v4 = vmul.f32 %v1014_v43, %v1001_v30  ;;  %v1031_v55 = vmul.f32 %v1030_v40, %v1010_v23  ;;  %v1036_v60 = vmul.f32 %v1010_v23, %v1001_v30 }
 0x30f   : > { %v1622_v46 = vpop.eup %1621  ;;  %v1059_v31 = vmul.f32 %v1058_v58, %v1045_v50  ;;  %v1075_v56 = vmul.f32 %v1074_v14, %v1054_v53  ;;  %v1080_v63 = vmul.f32 %v1054_v53, %v1045_v50 }
 0x310   : > { %v1004_v20 = vmul.f32 0.6931472, %v1622_v46  ;;  %v1016_v32 = vadd.f32 %v1015_v4, %v1805_v6  ;;  %v1038_v59 = vsub.f32 %v1036_v60, %v1037_v34 }
 0x311   : > { %v1624_v24 = vpop.eup %1623  ;;  %v1060_v39 = vadd.f32 %v1059_v31, %v1805_v6  ;;  %v1082_v46 = vsub.f32 %v1080_v63, %v1081_v3 }
 0x312   : > { %v1626_v33 = vpop.eup %1625  ;;  %v1006_v57 = vmul.f32 0.6931472, %v1624_v24  ;;  %v1018_v36 = vmul.f32 %v1004_v20, %v2195_v22  ;;  %v1028_v45 = vmul.f32 %v1016_v32, %v1001_v30  ;;  %v1039_v15 = vmul.f32 2.0, %v1038_v59 }
 0x313   : > { %v1048_v52 = vmul.f32 0.6931472, %v1626_v33  ;;  %v1628_v41 = vpop.eup %1627  ;;  %v1072_v1 = vmul.f32 %v1060_v39, %v1045_v50  ;;  %v1023_v24 = vmul.f32 %v1016_v32, %v1002_v19  ;;  %v1067_v33 = vmul.f32 %v1060_v39, %v1046_v61 }
 0x314   : > { %v1025_v18 = vsub.f32 %v1004_v20, %v1006_v57  ;;  %v1050_v42 = vmul.f32 0.6931472, %v1628_v41  ;;  %v1019_v16 = vmul.f32 %v1006_v57, %v999_v0  ;;  %v1630_v50 = vpop.eup %1629  ;;  %v1083_v57 = vmul.f32 2.0, %v1082_v46 }
 0x315   : > { %v1062_v37 = vmul.f32 %v1048_v52, %v2200_v26  ;;  %v1040_v40 = vadd.f32 %v1039_v15, %v1016_v32  ;;  %v1632_v41 = vpop.eup %1631 }
 0x316   : > { %v1026_v51 = vmul.f32 %v1025_v18, %v1821_v13  ;;  %v1063_v38 = vmul.f32 %v1050_v42, %v1043_v17  ;;  %v1069_v25 = vsub.f32 %v1048_v52, %v1050_v42  ;;  %v1020_v27 = vadd.f32 %v1019_v16, %v1018_v36 }
 0x317   : > { %v1084_v23 = vadd.f32 %v1083_v57, %v1060_v39  ;;  %v1035_v18 = vmul.f32 %v1630_v50, %v1821_v13  ;;  %v1041_v35 = vmul.f32 2.0, %v1040_v40  ;;  %v1079_v42 = vmul.f32 %v1632_v41, %v1821_v13 }
 0x318   : > { %v1027_v49 = vadd.f32 %v1026_v51, %v1816_v11  ;;  %v1070_v54 = vmul.f32 %v1069_v25, %v1821_v13  ;;  %v1064_v29 = vadd.f32 %v1063_v38, %v1062_v37  ;;  %v1021_v30 = vmul.f32 %v1020_v27, %v1821_v13 }
 0x319   : > { %v1085_v14 = vmul.f32 2.0, %v1084_v23  ;;  %v1042_v16 = vsub.f32 %v1035_v18, %v1041_v35 }
 0x31a   : > { %v1029_v0 = vadd.f32 %v1028_v45, %v1027_v49  ;;  %v1071_v62 = vadd.f32 %v1070_v54, %v1816_v11  ;;  %v1065_v43 = vmul.f32 %v1064_v29, %v1821_v13  ;;  %v1022_v21 = vadd.f32 %v1021_v30, %v1017_v47 }
 0x31b   : > { %v1086_v19 = vsub.f32 %v1079_v42, %v1085_v14 }
 0x31c   : > { %v1032_v17 = vsub.f32 %v1029_v0, %v1031_v55  ;;  %v1073_v2 = vadd.f32 %v1072_v1, %v1071_v62  ;;  %v1066_v31 = vadd.f32 %v1065_v43, %v1061_v5  ;;  %v1024_v52 = vadd.f32 %v1023_v24, %v1022_v21 }
 0x31e   : > { %v1088_v58 = vadd.f32 1e-07, %v1032_v17  ;;  %v1076_v4 = vsub.f32 %v1073_v2, %v1075_v56  ;;  %v1068_v28 = vadd.f32 %v1067_v33, %v1066_v31 }
 0x320   : > { %1633 = vrcp.f32 %v1088_v58  ;;  %v1091_v20 = vadd.f32 1e-07, %v1076_v4  ;;  %v1087_v36 = vsub.f32 %v1068_v28, %v1024_v52 }
 0x322   : > { %1635 = vrcp.f32 %v1091_v20 }
 0x32d   : > { %v1634_v51 = vpop.eup %1633 }
 0x32e   : > { %v1094_v45 = vmul.f32 %v1634_v51, %v1087_v36  ;;  %v1105_v32 = vmul.f32 %v1634_v51, %v1076_v4 }
 0x32f   : > { %v1636_v37 = vpop.eup %1635 }
 0x330   : > { %v1096_v61 = vsub.f32 %v2200_v26, %v1094_v45  ;;  %v1102_v53 = vmul.f32 %v1094_v45, %v1042_v16  ;;  %v1095_v38 = vmul.f32 %v1636_v37, %v1087_v36  ;;  %v1107_v39 = vmul.f32 %v1636_v37, %v1032_v17 }
 0x331   : > { %v1106_v54 = vsub.f32 1.0, %v1105_v32 }
 0x332   : > { %v1098_v25 = vmax.f32 %v1096_v61, 1e-07  ;;  %v1103_v48 = vadd.f32 %v1102_v53, %v1032_v17  ;;  %v1097_v49 = vadd.f32 %v1095_v38, %v2195_v22  ;;  %v1109_v55 = vmul.f32 %v1095_v38, %v1086_v19 }
 0x333   : > { %v1108_v0 = vsub.f32 1.0, %v1107_v39 }
 0x334   : > { %v1099_v60 = vmin.f32 %v1098_v25, 0.9999999  ;;  %v1104_v34 = vmul.f32 %v1634_v51, %v1103_v48  ;;  %v1100_v1 = vmax.f32 %v1097_v49, 1e-07  ;;  %v1110_v27 = vsub.f32 %v1076_v4, %v1109_v55 }
 0x336   : > { %vm1112_vm8 = vcmp.eq.f32.partialorder %v1096_v61, %v1099_v60  ;;  %v1101_v29 = vmin.f32 %v1100_v1, 0.9999999  ;;  %v1111_v62 = vmul.f32 %v1636_v37, %v1110_v27  ;;  %v1120_v4 = vsub.f32 %v1099_v60, %v2195_v22 }
 0x337   : > { %v1114_v56 = vsel %vm1112_vm8, %v1104_v34, 0.0  ;;  %v1116_v63 = vsel %vm1112_vm8, %v1106_v54, 0.0 }
 0x338   : > { %vm1113_vm9 = vcmp.eq.f32.partialorder %v1097_v49, %v1101_v29  ;;  %v1451_v3 = vadd.f32 -1.0, %v1114_v56  ;;  %v1121_v46 = vsub.f32 %v1101_v29, %v2200_v26 }
 0x339   : > { %v1117_v59 = vsel %vm1113_vm9, %v1108_v0, 0.0  ;;  %v1118_v47 = vsel %vm1113_vm9, %v1111_v62, 0.0 }
 0x33a   : > { %v1452_v17 = vadd.f32 -1.0, %v1118_v47  ;;  %v1123_v2 = vmul.f32 %v1117_v59, %v1116_v63  ;;  %v1130_v50 = vmul.f32 %v1121_v46, %v1116_v63  ;;  %v1134_v20 = vmul.f32 %v1451_v3, %v1121_v46 }
 0x33b   : > { %v1135_v21 = vmul.f32 %v1120_v4, %v1117_v59 }
 0x33c   : > { %v1122_v30 = vmul.f32 %v1452_v17, %v1451_v3  ;;  %v1129_v15 = vmul.f32 %v1452_v17, %v1120_v4 }
 0x33d   : > { %v1136_v31 = vsub.f32 %v1134_v20, %v1135_v21 }
 0x33e   : > { %v1124_v5 = vsub.f32 %v1122_v30, %v1123_v2  ;;  %v1131_v24 = vsub.f32 %v1129_v15, %v1130_v50 }
 0x340   : > { %v1125_v43 = vand.u32 2147483647, %v1124_v5 }
 0x342   : > { %vm1126_vm10 = vcmp.gt.f32.partialorder %v1125_v43, 0.0 }
 0x343   : > { %v1127_v58 = vsel %vm1126_vm10, %v1124_v5, 1e-30 }
 0x344   : > { %1637 = vrcp.f32 %v1127_v58 }
 0x351   : > { %v1638_v33 = vpop.eup %1637 }
 0x352   : > { %v1132_v57 = vmul.f32 %v1638_v33, %v1131_v24  ;;  %v1137_v40 = vmul.f32 %v1638_v33, %v1136_v31 }
 0x354   : > { %v1133_v52 = vsub.f32 %v2195_v22, %v1132_v57  ;;  %v1138_v28 = vsub.f32 %v2200_v26, %v1137_v40 }
 0x356   : > { %v1139_v41 = vmax.f32 %v1133_v52, 1e-07  ;;  %v1140_v23 = vmin.f32 %v1138_v28, 0.9999999 }
 0x358   : > { %v1141_v18 = vmin.f32 %v1139_v41, 0.9999999  ;;  %v1142_v35 = vmax.f32 %v1140_v23, 1e-07 }
 0x35a   : > { %v1143_v36 = vsub.f32 %v1141_v18, %v2195_v22  ;;  %v1145_v42 = vsub.f32 %v1142_v35, %v2200_v26  ;;  %v2256_v14 = vsel %vm1148_vm11, %v1141_v18, %v2195_v22  ;;  %v2261_v16 = vsel %vm1148_vm11, %v1142_v35, %v2200_v26 }
 0x35b   : > { %v1152_v51 = vsub.f32 1.0, %v2256_v14  ;;  %v1153_v45 = vmul.f32 2.0, %v2256_v14  ;;  %1639 = vlog2.f32 %v2256_v14  ;;  %v1196_v61 = vsub.f32 1.0, %v2261_v16 }
 0x35c   : > { %v1144_v19 = vand.u32 2147483647, %v1143_v36  ;;  %v1146_v37 = vand.u32 2147483647, %v1145_v42  ;;  %v1197_v53 = vmul.f32 2.0, %v2261_v16 }
 0x35d   : > { %v1154_v32 = vsub.f32 1.0, %v1153_v45  ;;  %1641 = vlog2.f32 %v1152_v51  ;;  %v1155_v62 = vmul.f32 %v1152_v51, %v2256_v14  ;;  %v1199_v47 = vmul.f32 %v1196_v61, %v2261_v16 }
 0x35e   : > { %v1147_v22 = vmin.f32 %v1144_v19, %v1146_v37  ;;  %v1198_v38 = vsub.f32 1.0, %v1197_v53  ;;  %1643 = vlog2.f32 %v2261_v16 }
 0x35f   : > { %v1164_v26 = vmul.f32 %v1154_v32, %v1811_v9  ;;  %1645 = vlog2.f32 %v1196_v61  ;;  %v1160_v39 = vmul.f32 %v1154_v32, %v1819_v12  ;;  %v1183_v43 = vmul.f32 2.0, %v1155_v62 }
 0x360   : > { %v2273_v25 = vsel %vm1148_vm11, %v1147_v22, %v2212_v44  ;;  %v1208_v48 = vmul.f32 %v1198_v38, %v1811_v9  ;;  %v1204_v34 = vmul.f32 %v1198_v38, %v1819_v12  ;;  %1647 = vrcp.f32 %v1155_v62 }
 0x361   : > { %v1165_v49 = vadd.f32 %v1164_v26, %v1809_v8  ;;  %v1161_v1 = vadd.f32 %v1160_v39, %v1814_v10  ;;  %v1227_v33 = vmul.f32 2.0, %v1199_v47  ;;  %1649 = vrcp.f32 %v1199_v47 }
 0x362   : > { %v1209_v55 = vadd.f32 %v1208_v48, %v1809_v8  ;;  %v1205_v56 = vadd.f32 %v1204_v34, %v1814_v10  ;;  %vm1301_vm15 = vcmp.gt.f32.partialorder %v2273_v25, 1e-06 }
 0x363   : > { %v1166_v60 = vmul.f32 %v1165_v49, %v1154_v32  ;;  %v1162_v3 = vmul.f32 %v1161_v1, %v1154_v32  ;;  %v1186_v20 = vadd.f32 %v1161_v1, %v1160_v39  ;;  %v1214_v1 = vmul.f32 %v2261_v16, %v1816_v11 }
 0x364   : > { %v1210_v54 = vmul.f32 %v1209_v55, %v1198_v38  ;;  %v1206_v4 = vmul.f32 %v1205_v56, %v1198_v38  ;;  %v1230_v35 = vadd.f32 %v1205_v56, %v1204_v34  ;;  %v1170_v34 = vmul.f32 %v2256_v14, %v1816_v11 }
 0x365   : > { %v1167_v27 = vadd.f32 %v1166_v60, %v1807_v7  ;;  %v1163_v15 = vadd.f32 %v1162_v3, %v1807_v7  ;;  %v1190_v19 = vmul.f32 %v1186_v20, %v1155_v62 }
 0x366   : > { %v1211_v44 = vadd.f32 %v1210_v54, %v1807_v7  ;;  %v1207_v41 = vadd.f32 %v1206_v4, %v1807_v7  ;;  %v1234_v55 = vmul.f32 %v1230_v35, %v1199_v47 }
 0x367   : > { %v1168_v0 = vmul.f32 %v1167_v27, %v1154_v32  ;;  %v1184_v42 = vmul.f32 %v1183_v43, %v1163_v15  ;;  %v1189_v45 = vmul.f32 %v1163_v15, %v1154_v32 }
 0x368   : > { %v1640_v29 = vpop.eup %1639  ;;  %v1212_v17 = vmul.f32 %v1211_v44, %v1198_v38  ;;  %v1228_v39 = vmul.f32 %v1227_v33, %v1207_v41  ;;  %v1233_v49 = vmul.f32 %v1207_v41, %v1198_v38 }
 0x369   : > { %v1157_v63 = vmul.f32 0.6931472, %v1640_v29  ;;  %v1169_v5 = vadd.f32 %v1168_v0, %v1805_v6  ;;  %v1191_v60 = vsub.f32 %v1189_v45, %v1190_v19 }
 0x36a   : > { %v1642_v59 = vpop.eup %1641  ;;  %v1213_v31 = vadd.f32 %v1212_v17, %v1805_v6  ;;  %v1235_v29 = vsub.f32 %v1233_v49, %v1234_v55 }
 0x36b   : > { %v1644_v2 = vpop.eup %1643  ;;  %v1159_v30 = vmul.f32 0.6931472, %v1642_v59  ;;  %v1171_v21 = vmul.f32 %v1157_v63, %v2256_v14  ;;  %v1181_v52 = vmul.f32 %v1169_v5, %v1154_v32  ;;  %v1192_v56 = vmul.f32 2.0, %v1191_v60 }
 0x36c   : > { %v1201_v58 = vmul.f32 0.6931472, %v1644_v2  ;;  %v1646_v46 = vpop.eup %1645  ;;  %v1225_v53 = vmul.f32 %v1213_v31, %v1198_v38  ;;  %v1176_v59 = vmul.f32 %v1169_v5, %v1155_v62  ;;  %v1220_v2 = vmul.f32 %v1213_v31, %v1199_v47 }
 0x36d   : > { %v1178_v50 = vsub.f32 %v1157_v63, %v1159_v30  ;;  %v1203_v24 = vmul.f32 0.6931472, %v1646_v46  ;;  %v1172_v57 = vmul.f32 %v1159_v30, %v1152_v51  ;;  %v1648_v38 = vpop.eup %1647  ;;  %v1236_v30 = vmul.f32 2.0, %v1235_v29 }
 0x36e   : > { %v1215_v28 = vmul.f32 %v1201_v58, %v2261_v16  ;;  %v1193_v43 = vadd.f32 %v1192_v56, %v1169_v5  ;;  %v1650_v46 = vpop.eup %1649 }
 0x36f   : > { %v1179_v40 = vmul.f32 %v1178_v50, %v1821_v13  ;;  %v1216_v23 = vmul.f32 %v1203_v24, %v1196_v61  ;;  %v1222_v18 = vsub.f32 %v1201_v58, %v1203_v24  ;;  %v1173_v22 = vadd.f32 %v1172_v57, %v1171_v21 }
 0x370   : > { %v1237_v15 = vadd.f32 %v1236_v30, %v1213_v31  ;;  %v1188_v50 = vmul.f32 %v1648_v38, %v1821_v13  ;;  %v1194_v20 = vmul.f32 2.0, %v1193_v43  ;;  %v1232_v24 = vmul.f32 %v1650_v46, %v1821_v13 }
 0x371   : > { %v1180_v36 = vadd.f32 %v1179_v40, %v1816_v11  ;;  %v1223_v37 = vmul.f32 %v1222_v18, %v1821_v13  ;;  %v1217_v26 = vadd.f32 %v1216_v23, %v1215_v28  ;;  %v1174_v32 = vmul.f32 %v1173_v22, %v1821_v13 }
 0x372   : > { %v1238_v33 = vmul.f32 2.0, %v1237_v15  ;;  %v1195_v57 = vsub.f32 %v1188_v50, %v1194_v20 }
 0x373   : > { %v1182_v51 = vadd.f32 %v1181_v52, %v1180_v36  ;;  %v1224_v48 = vadd.f32 %v1223_v37, %v1816_v11  ;;  %v1218_v27 = vmul.f32 %v1217_v26, %v1821_v13  ;;  %v1175_v3 = vadd.f32 %v1174_v32, %v1170_v34 }
 0x374   : > { %v1239_v62 = vsub.f32 %v1232_v24, %v1238_v33 }
 0x375   : > { %v1185_v61 = vsub.f32 %v1182_v51, %v1184_v42  ;;  %v1226_v54 = vadd.f32 %v1225_v53, %v1224_v48  ;;  %v1219_v17 = vadd.f32 %v1218_v27, %v1214_v1  ;;  %v1177_v58 = vadd.f32 %v1176_v59, %v1175_v3 }
 0x377   : > { %v1241_v44 = vadd.f32 1e-07, %v1185_v61  ;;  %v1229_v0 = vsub.f32 %v1226_v54, %v1228_v39  ;;  %v1221_v4 = vadd.f32 %v1220_v2, %v1219_v17 }
 0x379   : > { %1651 = vrcp.f32 %v1241_v44  ;;  %v1244_v63 = vadd.f32 1e-07, %v1229_v0  ;;  %v1240_v21 = vsub.f32 %v1221_v4, %v1177_v58 }
 0x37b   : > { %1653 = vrcp.f32 %v1244_v63 }
 0x386   : > { %v1652_v40 = vpop.eup %1651 }
 0x387   : > { %v1247_v52 = vmul.f32 %v1652_v40, %v1240_v21  ;;  %v1258_v5 = vmul.f32 %v1652_v40, %v1229_v0 }
 0x388   : > { %v1654_v28 = vpop.eup %1653 }
 0x389   : > { %v1249_v47 = vsub.f32 %v2261_v16, %v1247_v52  ;;  %v1255_v41 = vmul.f32 %v1247_v52, %v1195_v57  ;;  %v1248_v23 = vmul.f32 %v1654_v28, %v1240_v21  ;;  %v1260_v31 = vmul.f32 %v1654_v28, %v1185_v61 }
 0x38a   : > { %v1259_v37 = vsub.f32 1.0, %v1258_v5 }
 0x38b   : > { %v1251_v18 = vmax.f32 %v1249_v47, 1e-07  ;;  %v1256_v35 = vadd.f32 %v1255_v41, %v1185_v61  ;;  %v1250_v36 = vadd.f32 %v1248_v23, %v2256_v14  ;;  %v1262_v42 = vmul.f32 %v1248_v23, %v1239_v62 }
 0x38c   : > { %v1261_v51 = vsub.f32 1.0, %v1260_v31 }
 0x38d   : > { %v1252_v45 = vmin.f32 %v1251_v18, 0.9999999  ;;  %v1257_v19 = vmul.f32 %v1652_v40, %v1256_v35  ;;  %v1253_v53 = vmax.f32 %v1250_v36, 1e-07  ;;  %v1263_v22 = vsub.f32 %v1229_v0, %v1262_v42 }
 0x38f   : > { %vm1265_vm12 = vcmp.eq.f32.partialorder %v1249_v47, %v1252_v45  ;;  %v1254_v26 = vmin.f32 %v1253_v53, 0.9999999  ;;  %v1264_v48 = vmul.f32 %v1654_v28, %v1263_v22  ;;  %v1273_v0 = vsub.f32 %v1252_v45, %v2256_v14 }
 0x390   : > { %v1267_v39 = vsel %vm1265_vm12, %v1257_v19, 0.0  ;;  %v1269_v49 = vsel %vm1265_vm12, %v1259_v37, 0.0 }
 0x391   : > { %vm1266_vm13 = vcmp.eq.f32.partialorder %v1250_v36, %v1254_v26  ;;  %v1453_v55 = vadd.f32 -1.0, %v1267_v39  ;;  %v1274_v29 = vsub.f32 %v1254_v26, %v2261_v16 }
 0x392   : > { %v1270_v60 = vsel %vm1266_vm13, %v1261_v51, 0.0  ;;  %v1271_v34 = vsel %vm1266_vm13, %v1264_v48, 0.0 }
 0x393   : > { %v1454_v54 = vadd.f32 -1.0, %v1271_v34  ;;  %v1276_v61 = vmul.f32 %v1270_v60, %v1269_v49  ;;  %v1283_v38 = vmul.f32 %v1274_v29, %v1269_v49  ;;  %v1287_v63 = vmul.f32 %v1453_v55, %v1274_v29 }
 0x394   : > { %v1288_v3 = vmul.f32 %v1273_v0, %v1270_v60 }
 0x395   : > { %v1275_v32 = vmul.f32 %v1454_v54, %v1453_v55  ;;  %v1282_v56 = vmul.f32 %v1454_v54, %v1273_v0 }
 0x396   : > { %v1289_v17 = vsub.f32 %v1287_v63, %v1288_v3 }
 0x397   : > { %v1277_v1 = vsub.f32 %v1275_v32, %v1276_v61  ;;  %v1284_v59 = vsub.f32 %v1282_v56, %v1283_v38 }
 0x399   : > { %v1278_v27 = vand.u32 2147483647, %v1277_v1 }
 0x39b   : > { %vm1279_vm14 = vcmp.gt.f32.partialorder %v1278_v27, 0.0 }
 0x39c   : > { %v1280_v44 = vsel %vm1279_vm14, %v1277_v1, 1e-30 }
 0x39d   : > { %1655 = vrcp.f32 %v1280_v44 }
 0x3aa   : > { %v1656_v2 = vpop.eup %1655 }
 0x3ab   : > { %v1285_v30 = vmul.f32 %v1656_v2, %v1284_v59  ;;  %v1290_v43 = vmul.f32 %v1656_v2, %v1289_v17 }
 0x3ad   : > { %v1286_v58 = vsub.f32 %v2256_v14, %v1285_v30  ;;  %v1291_v4 = vsub.f32 %v2261_v16, %v1290_v43 }
 0x3af   : > { %v1292_v46 = vmax.f32 %v1286_v58, 1e-07  ;;  %v1293_v15 = vmin.f32 %v1291_v4, 0.9999999 }
 0x3b1   : > { %v1294_v50 = vmin.f32 %v1292_v46, 0.9999999  ;;  %v1295_v20 = vmax.f32 %v1293_v15, 1e-07 }
 0x3b3   : > { %v1296_v21 = vsub.f32 %v1294_v50, %v2256_v14  ;;  %v1298_v24 = vsub.f32 %v1295_v20, %v2261_v16  ;;  %v1302_v33 = vsel %vm1301_vm15, %v1294_v50, %v2256_v14   ;;  %v1303_v57 = vsel %vm1301_vm15, %v1295_v20, %v2261_v16  }
 0x3b4   : > { %v2386_v4 = vmov %v1302_v33 }
 0x3b5   : > { %v1297_v40 = vand.u32 2147483647, %v1296_v21  ;;  %v1299_v52 = vand.u32 2147483647, %v1298_v24 }
 0x3b7   : > { %v1300_v62 = vmin.f32 %v1297_v40, %v1299_v52 }
 0x3b9   : > { %v1304_v24 = vsel %vm1301_vm15, %v1300_v62, %v2273_v25  }
 0x3ba   : > { %67 = vmax.xlane.f32.xlu0 %v1304_v24 }
 0x443   : > { %v68_v28 = vpop.xlane.xlu0 %67 }
 0x444   : > { %v69_v47 = vrot.slane %v68_v28, 4 }
 0x446   : > { %v70_v41 = vmax.f32 %v68_v28, %v69_v47 }
 0x448   : > { %v71_v5 = vrot.slane %v70_v41, 2 }
 0x44a   : > { %v72_v23 = vmax.f32 %v70_v41, %v71_v5  ;;  %v2385_v5 = vmov %v1303_v57 }
 0x44c   : > { %v73_v18 = vrot.slane %v72_v23, 1 }
 0x44e   : > { %v74_v35 = vmax.f32 %v72_v23, %v73_v18 }
 0x450   : > { %1457 = vpush %v74_v35 }
 0x481   : > { %s1458_s29 = spop %1457 }
 0x482   : > { %p76_p12 = scmp.gt.f32.partialorder %s1458_s29, 1e-06 }
 0x484   : > { %p77_p13 = pnand %p76_p12, %p66_p11 }
 0x485   :  { %v2388_v22 = vmov (%p77_p13), %v1303_v57  ;;  %v2389_v23 = vmov (%p77_p13), %v1302_v33 }
 0x486   :  { %80 = sbr.rel (!%p77_p13) target bundleno = 237 (0xed), region = 45 }
 0x48b PF:  { %v1306_v14 = vsub.f32 1.0, %v1773_v23  ;;  %v1307_v16 = vmul.f32 2.0, %v1773_v23  ;;  %1657 = vlog2.f32 %v1773_v23  ;;  %v1340_v25 = vsub.f32 1.0, %v1769_v22  ;;  %s1780_s30 = smov [#allocation7]   ;;  %v1773_v23 = vphi %v2384_v23, %v2389_v23   ;;  %v1769_v22 = vphi %v2383_v22, %v2388_v22  }
 0x48c   :  { %v1341_v31 = vmul.f32 2.0, %v1769_v22  ;;  %1659 = vlog2.f32 %v1769_v22  ;;  %v1324_v5 = vmul.f32 %v1773_v23, %v1816_v11  ;;  %s1395_s3 = sshll.u32 %s1780_s30, 4  ;;  %s1396_s3 = int_to_ptr.vmem [resolvable:$true] %s1395_s3 }
 0x48d   :  { %v1308_v36 = vsub.f32 1.0, %v1307_v16  ;;  %1661 = vlog2.f32 %v1306_v14  ;;  %v1309_v1 = vmul.f32 %v1773_v23, %v1306_v14  ;;  %s1701_s4 = scalar_lea.vmem %s1396_s3, 256  ;;  %p1706_p1 = scmp.lt.s32.totalorder %s1396_s3, %s1396_s3 }
 0x48e   :  { %v1342_v42 = vsub.f32 1.0, %v1341_v31  ;;  %1663 = vlog2.f32 %v1340_v25  ;;  %p1702_p0 = scmp.ne.s32.totalorder %s1396_s3, %s1701_s4  ;;  %p1707_p2 = scmp.lt.s32.totalorder %s1701_s4, %s1701_s4 }
 0x48f   :  { %v1318_v45 = vmul.f32 %v1308_v36, %v1811_v9  ;;  %v1314_v37 = vmul.f32 %v1308_v36, %v1819_v12  ;;  %v1337_v2 = vmul.f32 2.0, %v1309_v1 }
 0x490   :  { %v1352_v19 = vmul.f32 %v1342_v42, %v1811_v9  ;;  %v1348_v51 = vmul.f32 %v1342_v42, %v1819_v12  ;;  %p1708_p3 = por %p1707_p2, %p1706_p1 }
 0x491   :  { %v1319_v53 = vadd.f32 %v1318_v45, %v1809_v8  ;;  %v1315_v49 = vadd.f32 %v1314_v37, %v1814_v10 }
 0x492   :  { %v1353_v26 = vadd.f32 %v1352_v19, %v1809_v8  ;;  %v1349_v60 = vadd.f32 %v1348_v51, %v1814_v10  ;;  %v1343_v8 = vmul.f32 %v1769_v22, %v1340_v25  ;;  %p1709_p4 = pnand %p1708_p3, %p1702_p0 }
 0x493   :  { %v1320_v48 = vmul.f32 %v1319_v53, %v1308_v36  ;;  %v1316_v12 = vmul.f32 %v1315_v49, %v1308_v36 }
 0x494   :  { %v1354_v39 = vmul.f32 %v1353_v26, %v1342_v42  ;;  %v1350_v56 = vmul.f32 %v1349_v60, %v1342_v42  ;;  %v1371_v30 = vmul.f32 2.0, %v1343_v8 }
 0x495   :  { %v1321_v55 = vadd.f32 %v1320_v48, %v1807_v7  ;;  %v1317_v59 = vadd.f32 %v1316_v12, %v1807_v7 }
 0x496   :  { %v1355_v34 = vadd.f32 %v1354_v39, %v1807_v7  ;;  %v1351_v4 = vadd.f32 %v1350_v56, %v1807_v7 }
 0x497   :  { %v1322_v54 = vmul.f32 %v1321_v55, %v1308_v36  ;;  %v1338_v57 = vmul.f32 %v1337_v2, %v1317_v59 }
 0x498   :  { %v1658_v9 = vpop.eup %1657  ;;  %v1356_v61 = vmul.f32 %v1355_v34, %v1342_v42  ;;  %v1372_v52 = vmul.f32 %v1371_v30, %v1351_v4 }
 0x499   :  { %v1660_v32 = vpop.eup %1659  ;;  %v1311_v27 = vmul.f32 0.6931472, %v1658_v9  ;;  %v1323_v0 = vadd.f32 %v1322_v54, %v1805_v6 }
 0x49a   :  { %v1662_v44 = vpop.eup %1661  ;;  %v1345_v29 = vmul.f32 0.6931472, %v1660_v32  ;;  %v1357_v3 = vadd.f32 %v1356_v61, %v1805_v6 }
 0x49b   :  { %v1664_v38 = vpop.eup %1663  ;;  %v1313_v63 = vmul.f32 0.6931472, %v1662_v44  ;;  %v1325_v43 = vmul.f32 %v1773_v23, %v1311_v27  ;;  %v1335_v58 = vmul.f32 %v1323_v0, %v1308_v36 }
 0x49c   :  { %v1347_v10 = vmul.f32 0.6931472, %v1664_v38  ;;  %v1359_v20 = vmul.f32 %v1769_v22, %v1345_v29  ;;  %v1369_v6 = vmul.f32 %v1357_v3, %v1342_v42  ;;  %v1330_v42 = vmul.f32 %v1323_v0, %v1309_v1 }
 0x49d   :  { %v1332_v17 = vsub.f32 %v1311_v27, %v1313_v63  ;;  %v1326_v15 = vmul.f32 %v1313_v63, %v1306_v14  ;;  %v1358_v14 = vmul.f32 %v1769_v22, %v1816_v11  ;;  %v1364_v19 = vmul.f32 %v1357_v3, %v1343_v8 }
 0x49e   :  { %v1366_v46 = vsub.f32 %v1345_v29, %v1347_v10  ;;  %v1360_v21 = vmul.f32 %v1347_v10, %v1340_v25 }
 0x49f   :  { %v1333_v50 = vmul.f32 %v1332_v17, %v1821_v13  ;;  %v1327_v62 = vadd.f32 %v1326_v15, %v1325_v43 }
 0x4a0   :  { %v1367_v24 = vmul.f32 %v1366_v46, %v1821_v13  ;;  %v1361_v47 = vadd.f32 %v1360_v21, %v1359_v20 }
 0x4a1   :  { %v1334_v33 = vadd.f32 %v1333_v50, %v1816_v11  ;;  %v1328_v35 = vmul.f32 %v1327_v62, %v1821_v13 }
 0x4a2   :  { %v1368_v40 = vadd.f32 %v1367_v24, %v1816_v11  ;;  %v1362_v16 = vmul.f32 %v1361_v47, %v1821_v13 }
 0x4a3   :  { %v1336_v28 = vadd.f32 %v1335_v58, %v1334_v33  ;;  %v1329_v36 = vadd.f32 %v1328_v35, %v1324_v5 }
 0x4a4   :  { %v1370_v7 = vadd.f32 %v1369_v6, %v1368_v40  ;;  %v1363_v45 = vadd.f32 %v1362_v16, %v1358_v14 }
 0x4a5   :  { %v1339_v41 = vsub.f32 %v1336_v28, %v1338_v57  ;;  %v1331_v37 = vadd.f32 %v1330_v42, %v1329_v36 }
 0x4a6   :  { %v1373_v18 = vsub.f32 %v1370_v7, %v1372_v52  ;;  %v1365_v53 = vadd.f32 %v1364_v19, %v1363_v45 }
 0x4a7   :  { %v1375_v25 = vadd.f32 1e-07, %v1339_v41 }
 0x4a8   :  { %v1381_v31 = vadd.f32 1e-07, %v1373_v18  ;;  %v1374_v51 = vsub.f32 %v1365_v53, %v1331_v37 }
 0x4a9   :  { %1665 = vrcp.f32 %v1375_v25 }
 0x4aa   :  { %1667 = vrcp.f32 %v1381_v31 }
 0x4b6   :  { %v1666_v26 = vpop.eup %1665 }
 0x4b7   :  { %v1668_v48 = vpop.eup %1667  ;;  %v1377_v39 = vmul.f32 %v1666_v26, %v1374_v51 }
 0x4b8   :  { %v1383_v49 = vmul.f32 %v1668_v48, %v1374_v51 }
 0x4b9   :  { %v1378_v55 = vsub.f32 %v1769_v22, %v1377_v39 }
 0x4ba   :  { %v1384_v11 = vadd.f32 %v1773_v23, %v1383_v49 }
 0x4bb   :  { %v1379_v13 = vmax.f32 %v1378_v55, 1e-07 }
 0x4bc   :  { %v1385_v60 = vmax.f32 %v1384_v11, 1e-07 }
 0x4bd   :  { %v1380_v34 = vmin.f32 %v1379_v13, 0.9999999 }
 0x4be   :  { %v1386_v54 = vmin.f32 %v1385_v60, 0.9999999 }
 0x4bf   :  { %1387 = vst [vmem:[#allocation7] sm:$0xff] %v1380_v34 }
 0x4c0   :  { %1389 = vst [vmem:[#allocation7 + $0x8] sm:$0xff] %v1386_v54 }
 0x4c1   :  { %1712 = shalt.err (!%p1709_p4)
}
 0x4c2   :  { %1401 = dma.vmem_to_hbm [thread:$0]  %s1396_s3, 256, %s2382_s2, [#allocation4], %s1776_s15, %s1776_s15, %s1777_s16  }
 0x4c3   :  { %1749 = dma.done.wait [#allocation4], 256  }
 0x4c4   :  { %1750 = vsyncadd [#allocation4], 4294967040 }
 0x4c5   :  { %1405 = vsyncpa [#allocation3], 1 }
 0x4c6   :  { %1406 = vsyncpa [#allocation4], 1 }
 0x4c7   :  { %1407 = vsyncpa [#allocation5], 1 }

</bundles_post_ra>
